<compile_context>
chip_gen: v7x
topology: tpu7x:2x2x1
jax: 0.10.0
libtpu: 0.0.40
codegen_flags: <defaults>
</compile_context>

<pallas_src>
import jax
import jax.numpy as jnp
from jax import lax
from jax.experimental import pallas as pl
from jax.experimental.pallas import tpu as pltpu


def lstm_attn_kernel(x_ref, w_ih_ref, w_hh_ref, b_ref,
                     w_attn_ref, b_attn_ref, v_ref,
                     w_fc_ref, b_fc_ref,
                     out_ref,
                     h_ref, c_ref, hs_ref, pre_ref, scores_ref):
    """Grid = (batch_shards, n_chunks); one grid step = one time chunk of one shard.

    x_ref:      (TC, B, D)   bf16  time chunk of the input (time-major, B = per-shard)
    w_ih_ref:   (D, 4H)      bf16  fused input weights (gate order i, f, g, o)
    w_hh_ref:   (H, 4H)      bf16  fused recurrent weights
    b_ref:      (1, 4H)      f32   fused bias (b_ih + b_hh)
    w_attn_ref: (H, H)       bf16  attention Linear weight (transposed)
    b_attn_ref: (1, H)       f32   attention Linear bias
    v_ref:      (1, H)       f32   attention vector v
    w_fc_ref:   (H, O)       bf16  fc weight (transposed)
    b_fc_ref:   (1, O)       f32   fc bias
    out_ref:    (B, O)       f32   output block (written on the shard's last chunk)
    h_ref:      (B, H)       bf16  persistent hidden-state carry
    c_ref:      (B, H)       f32   persistent cell-state carry
    hs_ref:     (T, B, H)    bf16  all hidden states of the current shard
    pre_ref:    (TC, B, 4H)  bf16  fused pre-gate input projections for the chunk
    scores_ref: (NC, TC, B)  f32   per-chunk attention scores
    """
    TC, B, D = x_ref.shape
    T = hs_ref.shape[0]
    H = w_hh_ref.shape[0]
    chunk = pl.program_id(1)
    n_chunks = T // TC                                    # static

    # ---- init the recurrence carry at the start of every batch shard ----
    @pl.when(chunk == 0)
    def _init():
        h_ref[...] = jnp.zeros_like(h_ref)
        c_ref[...] = jnp.zeros_like(c_ref)

    # ---- phase 1: fused input projection for the whole chunk (one MXU matmul,
    #      M = TC*B, N = 4H); bias folded in; stored bf16 ----
    x2d = x_ref[...].reshape(TC * B, D)
    pre = jnp.dot(x2d, w_ih_ref[...],
                  preferred_element_type=jnp.float32) + b_ref[...]
    pre_ref[...] = pre.reshape(TC, B, 4 * H).astype(jnp.bfloat16)

    # ---- phase 2: serial recurrence; critical path is one (B,H)@(H,4H) matmul
    #      plus elementwise gate math (EUP/VPU) per step ----
    def step(t, carry):
        h, c = carry                                              # h bf16, c f32
        gates = (jnp.dot(h, w_hh_ref[...], preferred_element_type=jnp.float32)
                 + pre_ref[t].astype(jnp.float32))                # (B, 4H) f32
        i_g = jax.nn.sigmoid(gates[:, 0 * H:1 * H])
        f_g = jax.nn.sigmoid(gates[:, 1 * H:2 * H])
        g_g = jnp.tanh(gates[:, 2 * H:3 * H])
        o_g = jax.nn.sigmoid(gates[:, 3 * H:4 * H])
        c_new = f_g * c + i_g * g_g                               # f32 cell state
        h_new = o_g * jnp.tanh(c_new)
        h_bf = h_new.astype(jnp.bfloat16)
        hs_ref[chunk * TC + t] = h_bf                             # store h_t
        return (h_bf, c_new)

    # TODO(synk): keep W_hh in the MXU staging registers across this loop with
    # pltpu.matmul_push_rhs / matmul_acc_lhs instead of re-streaming it from VMEM.
    h_fin, c_fin = lax.fori_loop(0, TC, step, (h_ref[...], c_ref[...]),
                                 unroll=(TC if TC <= 8 else 8))
    h_ref[...] = h_fin
    c_ref[...] = c_fin

    # ---- phase 2.5: attention scores for THIS chunk (attention blocked over T,
    #      overlapped with the chunk pipeline; no giant epilogue intermediates) ----
    hs_chunk = hs_ref[pl.ds(chunk * TC, TC), :, :]                # (TC, B, H) bf16
    s = jnp.tanh(jnp.dot(hs_chunk.reshape(TC * B, H), w_attn_ref[...],
                         preferred_element_type=jnp.float32)
                 + b_attn_ref[...])                               # (TC*B, H) f32
    scores_ref[chunk] = jnp.sum(
        s.reshape(TC, B, H) * v_ref[...].reshape(1, 1, H), axis=-1)   # (TC, B)

    # ---- phase 3: softmax over T + blocked context reduction + fc (last chunk) ----
    @pl.when(chunk == n_chunks - 1)
    def _attn_fc():
        sc = scores_ref[...]                                      # (NC, TC, B) f32
        m = jnp.max(jnp.max(sc, axis=1, keepdims=True), axis=0, keepdims=True)
        e = jnp.exp(sc - m)
        denom = jnp.sum(jnp.sum(e, axis=1, keepdims=True), axis=0, keepdims=True)
        scores_ref[...] = e / denom                               # exact softmax

        def ctx_step(bi, acc):
            w_blk = scores_ref[bi]                                # (TC, B) f32
            hs_blk = hs_ref[pl.ds(bi * TC, TC), :, :].astype(jnp.float32)
            return acc + jnp.sum(w_blk[:, :, None] * hs_blk, axis=0)

        ctx = lax.fori_loop(0, n_chunks, ctx_step,
                            jnp.zeros((B, H), jnp.float32))       # (B, H) f32
        out_ref[...] = (jnp.dot(ctx.astype(jnp.bfloat16), w_fc_ref[...],
                                preferred_element_type=jnp.float32)
                        + b_fc_ref[...])


def _pick_time_chunk(T, B, H, D, budget_bytes=8 << 20):
    """Largest divisor of T whose per-chunk footprint (bf16 fused pre-gates + the
    double-buffered x chunk) fits the budget.  Only prefer >= 2 chunks (so the x
    DMA pipeline overlaps the recurrence) once the projection M = chunk*B is
    already a good MXU shape (>= 256 rows)."""
    per_step = B * (4 * H * 2 + 2 * D * 2)
    divisors = [d for d in range(1, T + 1) if T % d == 0]
    fits = [d for d in divisors if d * per_step <= budget_bytes] or [1]
    best = fits[-1]
    if best == T:
        smaller = [d for d in fits if d < T]
        if smaller and smaller[-1] * B >= 256:
            best = smaller[-1]
    return best


def lstm_with_attention(x_btd, params, *, t_chunk=None, batch_shards=1):
    """x_btd: (B, T, D) float32; params from pack_kernel_params. Returns (B, O) f32.

    batch_shards > 1 adds a leading "parallel" grid axis (v7x megacore); it requires
    the per-shard batch to be a multiple of 8 (sublane tiling)."""
    B, T, D = x_btd.shape
    H = params["w_hh"].shape[0]
    O = params["w_fc"].shape[1]
    assert params["w_ih"].shape == (D, 4 * H)
    assert B % batch_shards == 0
    Bs = B // batch_shards
    assert batch_shards == 1 or Bs % 8 == 0

    if t_chunk is None:
        t_chunk = _pick_time_chunk(T, Bs, H, D)
    assert T % t_chunk == 0
    n_chunks = T // t_chunk

    # bf16 cast fused with the time-major transpose by XLA (single pass over x).
    x_tbd = jnp.transpose(x_btd.astype(jnp.bfloat16), (1, 0, 2))       # (T, B, D)

    scratch_shapes = [
        pltpu.VMEM((Bs, H), jnp.bfloat16),                  # h carry
        pltpu.VMEM((Bs, H), jnp.float32),                   # c carry
        pltpu.VMEM((T, Bs, H), jnp.bfloat16),               # hidden states
        pltpu.VMEM((t_chunk, Bs, 4 * H), jnp.bfloat16),     # fused bf16 pre-gates
        pltpu.VMEM((n_chunks, t_chunk, Bs), jnp.float32),   # per-chunk attn scores
    ]

    # --- generation-aware VMEM budget (v7x: 64 MiB physical; v5e/v6e: 128 MiB) ---
    try:
        vmem_cap = int(pltpu.get_tpu_info().vmem_capacity_bytes)
    except Exception:
        vmem_cap = 64 * 1024 * 1024                         # conservative fallback
    weight_bytes = ((D * 4 * H + H * 4 * H + H * H + H * O) * 2    # bf16 matrices
                    + (4 * H + H + H + O) * 4)                     # f32 biases + v
    vmem_need = (2 * t_chunk * Bs * D * 2         # x chunk, double-buffered, bf16
                 + 2 * weight_bytes               # weights, counted double-buffered
                 + 2 * Bs * O * 4                 # output block
                 + Bs * H * (2 + 4)               # h, c carries
                 + T * Bs * H * 2                 # hidden-state scratch (bf16)
                 + t_chunk * Bs * 4 * H * 2       # fused bf16 pre-gates
                 + T * Bs * 4)                    # scores scratch
    vmem_limit = min(max(int(1.5 * vmem_need), 32 * 1024 * 1024),
                     int(0.85 * vmem_cap))

    def build(weight_pipeline_mode):
        wkw = ({} if weight_pipeline_mode is None
               else {"pipeline_mode": weight_pipeline_mode})

        def wspec(shape):                 # grid-invariant (all weights are 2-D)
            return pl.BlockSpec(shape, lambda b, c: (0, 0), **wkw)

        in_specs = [
            pl.BlockSpec((t_chunk, Bs, D), lambda b, c: (c, b, 0)),    # x (time-chunked)
            wspec((D, 4 * H)),                                         # w_ih
            wspec((H, 4 * H)),                                         # w_hh
            wspec((1, 4 * H)),                                         # b_lstm
            wspec((H, H)),                                             # w_attn
            wspec((1, H)),                                             # b_attn
            wspec((1, H)),                                             # v
            wspec((H, O)),                                             # w_fc
            wspec((1, O)),                                             # b_fc
        ]
        out_specs = pl.BlockSpec((Bs, O), lambda b, c: (b, 0))
        return pl.pallas_call(
            lstm_attn_kernel,
            out_shape=jax.ShapeDtypeStruct((B, O), jnp.float32),
            grid=(batch_shards, n_chunks),
            in_specs=in_specs,
            out_specs=out_specs,
            scratch_shapes=scratch_shapes,
            compiler_params=pltpu.CompilerParams(
                dimension_semantics=("parallel", "arbitrary"),
                vmem_limit_bytes=vmem_limit),
        )

    args = (x_tbd, params["w_ih"], params["w_hh"], params["b_lstm"],
            params["w_attn"], params["b_attn"], params["v"],
            params["w_fc"], params["b_fc"])
    try:
        # Single-buffer the grid-invariant weights (halves their VMEM residency,
        # which matters most on v7x's 64 MiB VMEM at realistic H).
        out = build(pl.Buffered(1))(*args)
        return jax.block_until_ready(out)
    except Exception:
        # Fallback: default double-buffering (pipeline_mode unsupported here).
        return build(None)(*args)


def init_params(key, input_dim, hidden_dim, output_dim):
    """Raw f32 parameters in PyTorch layout (deterministic)."""
    ks = jax.random.split(key, 10)
    k_lstm = 1.0 / jnp.sqrt(hidden_dim)
    k_fc = 1.0 / jnp.sqrt(hidden_dim)

    def u(k, shape, bound):
        return jax.random.uniform(k, shape, jnp.float32, -bound, bound)

    return {
        "w_ih": u(ks[0], (4 * hidden_dim, input_dim), k_lstm),   # (4H, D)
        "w_hh": u(ks[1], (4 * hidden_dim, hidden_dim), k_lstm),  # (4H, H)
        "b_ih": u(ks[2], (4 * hidden_dim,), k_lstm),
        "b_hh": u(ks[3], (4 * hidden_dim,), k_lstm),
        "w_attn": u(ks[4], (hidden_dim, hidden_dim), k_fc),      # (H, H)
        "b_attn": u(ks[5], (hidden_dim,), k_fc),
        "v": jax.random.normal(ks[6], (hidden_dim,), jnp.float32),
        "w_fc": u(ks[7], (output_dim, hidden_dim), k_fc),        # (O, H)
        "b_fc": u(ks[8], (output_dim,), k_fc),
    }


def pack_kernel_params(raw):
    """Re-layout raw PyTorch-style params for the kernel: gates fused along the lane
    axis (torch.nn.LSTM's contiguous i,f,g,o block ordering is preserved by the
    plain transpose), bf16 matmul operands, f32 biases."""
    fourH, D = raw["w_ih"].shape
    assert fourH % 4 == 0, "w_ih must stack the 4 gates (i,f,g,o) along dim 0"
    H = fourH // 4
    O = raw["w_fc"].shape[0]
    assert raw["w_hh"].shape == (fourH, H)
    return {
        "w_ih": raw["w_ih"].T.astype(jnp.bfloat16),                      # (D, 4H)
        "w_hh": raw["w_hh"].T.astype(jnp.bfloat16),                      # (H, 4H)
        "b_lstm": (raw["b_ih"] + raw["b_hh"]).reshape(1, fourH).astype(jnp.float32),
        "w_attn": raw["w_attn"].T.astype(jnp.bfloat16),                  # (H, H)
        "b_attn": raw["b_attn"].reshape(1, H).astype(jnp.float32),
        "v": raw["v"].reshape(1, H).astype(jnp.float32),
        "w_fc": raw["w_fc"].T.astype(jnp.bfloat16),                      # (H, O)
        "b_fc": raw["b_fc"].reshape(1, O).astype(jnp.float32),
    }


def reference_forward(x_btd, raw):
    """Pure-JAX f32 reference mirroring the PyTorch module."""
    B, T, D = x_btd.shape
    H = raw["w_hh"].shape[1]
    w_ih_t = raw["w_ih"].T                                 # (D, 4H)
    w_hh_t = raw["w_hh"].T                                 # (H, 4H)
    b = (raw["b_ih"] + raw["b_hh"])[None, :]               # (1, 4H)

    def step(carry, x_t):
        h, c = carry
        gates = x_t @ w_ih_t + h @ w_hh_t + b
        i = jax.nn.sigmoid(gates[:, 0 * H:1 * H])
        f = jax.nn.sigmoid(gates[:, 1 * H:2 * H])
        g = jnp.tanh(gates[:, 2 * H:3 * H])
        o = jax.nn.sigmoid(gates[:, 3 * H:4 * H])
        c_new = f * c + i * g
        h_new = o * jnp.tanh(c_new)
        return (h_new, c_new), h_new

    h0 = jnp.zeros((B, H), jnp.float32)
    c0 = jnp.zeros((B, H), jnp.float32)
    _, hs = lax.scan(step, (h0, c0), jnp.transpose(x_btd, (1, 0, 2)))   # (T,B,H)
    hs_bth = jnp.transpose(hs, (1, 0, 2))                               # (B,T,H)

    s = jnp.tanh(hs_bth @ raw["w_attn"].T + raw["b_attn"])              # (B,T,H)
    scores = jnp.einsum("bth,h->bt", s, raw["v"])
    attn_w = jax.nn.softmax(scores, axis=1)
    context = jnp.einsum("bt,bth->bh", attn_w, hs_bth)
    return context @ raw["w_fc"].T + raw["b_fc"][None, :]


if __name__ == "__main__":
    B, T, D, H, O = 2, 8, 16, 32, 8

    key = jax.random.PRNGKey(0)
    k_x, k_p = jax.random.split(key)
    x = jax.random.normal(k_x, (B, T, D), jnp.float32)
    raw = init_params(k_p, D, H, O)
    kparams = pack_kernel_params(raw)

    # t_chunk=4 -> 2 time chunks: exercises the chunked recurrence, the x DMA
    # pipeline, the persistent carries and the blocked attention epilogue.
    out = lstm_with_attention(x, kparams, t_chunk=4)
    out = jax.block_until_ready(out)

    ref = reference_forward(x, raw)
    assert out.shape == (B, O)
    err = float(jnp.max(jnp.abs(out - ref)))
    assert err < 5e-2, f"max abs error vs f32 reference: {err}"  # bf16 matmul tolerance

    print("KERNEL_OK")
</pallas_src>

<mosaic_0001>
module attributes {stable_mosaic.version = 11 : i64} {
  func.func @lstm_attn_kernel(%arg0: i32, %arg1: i32, %arg2: memref<4x2x16xbf16, #tpu.memory_space<vmem>>, %arg3: memref<16x128xbf16, #tpu.memory_space<vmem>>, %arg4: memref<32x128xbf16, #tpu.memory_space<vmem>>, %arg5: memref<1x128xf32, #tpu.memory_space<vmem>>, %arg6: memref<32x32xbf16, #tpu.memory_space<vmem>>, %arg7: memref<1x32xf32, #tpu.memory_space<vmem>>, %arg8: memref<1x32xf32, #tpu.memory_space<vmem>>, %arg9: memref<32x8xbf16, #tpu.memory_space<vmem>>, %arg10: memref<1x8xf32, #tpu.memory_space<vmem>>, %arg11: memref<2x8xf32, #tpu.memory_space<vmem>>, %arg12: memref<2x32xbf16, #tpu.memory_space<vmem>>, %arg13: memref<2x32xf32, #tpu.memory_space<vmem>>, %arg14: memref<8x2x32xbf16, #tpu.memory_space<vmem>>, %arg15: memref<4x2x128xbf16, #tpu.memory_space<vmem>>, %arg16: memref<2x4x2xf32, #tpu.memory_space<vmem>>) attributes {dimension_semantics = [#tpu.dimension_semantics<parallel>, #tpu.dimension_semantics<arbitrary>], iteration_bounds = array<i64: 1, 2>, scalar_prefetch = 0 : i64, scratch_operands = 5 : i64, tpu.core_type = #tpu.core_type<tc>, window_params = [{transform_indices = @transform_0, window_bounds = array<i64: 4, 2, 16>}, {pipeline_mode = #tpu.pipeline_mode<synchronous>, transform_indices = @transform_1, window_bounds = array<i64: 16, 128>}, {pipeline_mode = #tpu.pipeline_mode<synchronous>, transform_indices = @transform_2, window_bounds = array<i64: 32, 128>}, {pipeline_mode = #tpu.pipeline_mode<synchronous>, transform_indices = @transform_3, window_bounds = array<i64: 1, 128>}, {pipeline_mode = #tpu.pipeline_mode<synchronous>, transform_indices = @transform_4, window_bounds = array<i64: 32, 32>}, {pipeline_mode = #tpu.pipeline_mode<synchronous>, transform_indices = @transform_5, window_bounds = array<i64: 1, 32>}, {pipeline_mode = #tpu.pipeline_mode<synchronous>, transform_indices = @transform_6, window_bounds = array<i64: 1, 32>}, {pipeline_mode = #tpu.pipeline_mode<synchronous>, transform_indices = @transform_7, window_bounds = array<i64: 32, 8>}, {pipeline_mode = #tpu.pipeline_mode<synchronous>, transform_indices = @transform_8, window_bounds = array<i64: 1, 8>}, {transform_indices = @transform_9, window_bounds = array<i64: 2, 8>}]} {
    %c0_i32 = arith.constant 0 : i32
    %0 = arith.cmpi eq, %arg1, %c0_i32 : i32
    %1 = arith.extui %0 : i1 to i32
    %c0_i32_0 = arith.constant 0 : i32
    %2 = arith.cmpi ne, %1, %c0_i32_0 : i32
    scf.if %2 {
      %cst_78 = arith.constant 0.000000e+00 : bf16
      %196 = vector.broadcast %cst_78 : bf16 to vector<2x32xbf16>
      %c0_79 = arith.constant 0 : index
      %c0_80 = arith.constant 0 : index
      %197 = vector.load %arg12[%c0_79, %c0_80] : memref<2x32xbf16, #tpu.memory_space<vmem>>, vector<2x32xbf16>
      tpu.vector_store %arg12[%c0_79, %c0_80], %196 {strides = array<i32>} : memref<2x32xbf16, #tpu.memory_space<vmem>>, vector<2x32xbf16>,
      %cst_81 = arith.constant 0.000000e+00 : f32
      %198 = vector.broadcast %cst_81 : f32 to vector<2x32xf32>
      %c0_82 = arith.constant 0 : index
      %c0_83 = arith.constant 0 : index
      %199 = vector.load %arg13[%c0_82, %c0_83] : memref<2x32xf32, #tpu.memory_space<vmem>>, vector<2x32xf32>
      tpu.vector_store %arg13[%c0_82, %c0_83], %198 {strides = array<i32>} : memref<2x32xf32, #tpu.memory_space<vmem>>, vector<2x32xf32>,
    } else {
    }
    %c0 = arith.constant 0 : index
    %c0_1 = arith.constant 0 : index
    %c0_2 = arith.constant 0 : index
    %3 = vector.load %arg2[%c0, %c0_1, %c0_2] : memref<4x2x16xbf16, #tpu.memory_space<vmem>>, vector<4x2x16xbf16>
    %4 = vector.shape_cast %3 : vector<4x2x16xbf16> to vector<8x16xbf16>
    %c0_3 = arith.constant 0 : index
    %c0_4 = arith.constant 0 : index
    %5 = vector.load %arg3[%c0_3, %c0_4] : memref<16x128xbf16, #tpu.memory_space<vmem>>, vector<16x128xbf16>
    %cst = arith.constant dense<0.000000e+00> : vector<8x128xf32>
    %6 = tpu.matmul %4, %5, %cst {dimension_numbers = #tpu.dot_dimension_numbers<[1], [0], [0], [1], [0, 0, 1, 1], [], []>} : vector<8x16xbf16>, vector<16x128xbf16>, vector<8x128xf32> -> vector<8x128xf32>
    %c0_5 = arith.constant 0 : index
    %c0_6 = arith.constant 0 : index
    %7 = vector.load %arg5[%c0_5, %c0_6] : memref<1x128xf32, #tpu.memory_space<vmem>>, vector<1x128xf32>
    %8 = vector.broadcast %7 : vector<1x128xf32> to vector<8x128xf32>
    %9 = arith.addf %6, %8 : vector<8x128xf32>
    %10 = vector.shape_cast %9 : vector<8x128xf32> to vector<4x2x128xf32>
    %11 = arith.truncf %10 : vector<4x2x128xf32> to vector<4x2x128xbf16>
    %c0_7 = arith.constant 0 : index
    %c0_8 = arith.constant 0 : index
    %c0_9 = arith.constant 0 : index
    %12 = vector.load %arg15[%c0_7, %c0_8, %c0_9] : memref<4x2x128xbf16, #tpu.memory_space<vmem>>, vector<4x2x128xbf16>
    tpu.vector_store %arg15[%c0_7, %c0_8, %c0_9], %11 {strides = array<i32>} : memref<4x2x128xbf16, #tpu.memory_space<vmem>>, vector<4x2x128xbf16>,
    %c0_10 = arith.constant 0 : index
    %c0_11 = arith.constant 0 : index
    %13 = vector.load %arg12[%c0_10, %c0_11] : memref<2x32xbf16, #tpu.memory_space<vmem>>, vector<2x32xbf16>
    %c0_12 = arith.constant 0 : index
    %c0_13 = arith.constant 0 : index
    %14 = vector.load %arg13[%c0_12, %c0_13] : memref<2x32xf32, #tpu.memory_space<vmem>>, vector<2x32xf32>
    %c0_i32_14 = arith.constant 0 : i32
    %c0_15 = arith.constant 0 : index
    %c0_16 = arith.constant 0 : index
    %15 = vector.load %arg4[%c0_15, %c0_16] : memref<32x128xbf16, #tpu.memory_space<vmem>>, vector<32x128xbf16>
    %cst_17 = arith.constant dense<0.000000e+00> : vector<2x128xf32>
    %16 = tpu.matmul %13, %15, %cst_17 {dimension_numbers = #tpu.dot_dimension_numbers<[1], [0], [0], [1], [0, 0, 1, 1], [], []>} : vector<2x32xbf16>, vector<32x128xbf16>, vector<2x128xf32> -> vector<2x128xf32>
    %17 = arith.index_cast %c0_i32_14 : i32 to index
    %c0_18 = arith.constant 0 : index
    %c0_19 = arith.constant 0 : index
    %18 = vector.load %arg15[%17, %c0_18, %c0_19] : memref<4x2x128xbf16, #tpu.memory_space<vmem>>, vector<1x2x128xbf16>
    %19 = vector.shape_cast %18 : vector<1x2x128xbf16> to vector<2x128xbf16>
    %20 = arith.extf %19 : vector<2x128xbf16> to vector<2x128xf32>
    %21 = arith.addf %16, %20 : vector<2x128xf32>
    %22 = vector.extract_strided_slice %21 {offsets = [0, 0], sizes = [2, 32], strides = [1, 1]} : vector<2x128xf32> to vector<2x32xf32>
    %23 = arith.negf %22 : vector<2x32xf32>
    %24 = math.exp %23 : vector<2x32xf32>
    %cst_20 = arith.constant 1.000000e+00 : f32
    %25 = vector.broadcast %cst_20 : f32 to vector<2x32xf32>
    %26 = arith.addf %25, %24 : vector<2x32xf32>
    %27 = arith.divf %25, %26 : vector<2x32xf32>
    %28 = vector.extract_strided_slice %21 {offsets = [0, 32], sizes = [2, 32], strides = [1, 1]} : vector<2x128xf32> to vector<2x32xf32>
    %29 = arith.negf %28 : vector<2x32xf32>
    %30 = math.exp %29 : vector<2x32xf32>
    %cst_21 = arith.constant 1.000000e+00 : f32
    %31 = vector.broadcast %cst_21 : f32 to vector<2x32xf32>
    %32 = arith.addf %31, %30 : vector<2x32xf32>
    %33 = arith.divf %31, %32 : vector<2x32xf32>
    %34 = vector.extract_strided_slice %21 {offsets = [0, 64], sizes = [2, 32], strides = [1, 1]} : vector<2x128xf32> to vector<2x32xf32>
    %35 = math.tanh %34 : vector<2x32xf32>
    %36 = vector.extract_strided_slice %21 {offsets = [0, 96], sizes = [2, 32], strides = [1, 1]} : vector<2x128xf32> to vector<2x32xf32>
    %37 = arith.negf %36 : vector<2x32xf32>
    %38 = math.exp %37 : vector<2x32xf32>
    %cst_22 = arith.constant 1.000000e+00 : f32
    %39 = vector.broadcast %cst_22 : f32 to vector<2x32xf32>
    %40 = arith.addf %39, %38 : vector<2x32xf32>
    %41 = arith.divf %39, %40 : vector<2x32xf32>
    %42 = arith.mulf %33, %14 : vector<2x32xf32>
    %43 = arith.mulf %27, %35 : vector<2x32xf32>
    %44 = arith.addf %42, %43 : vector<2x32xf32>
    %45 = math.tanh %44 : vector<2x32xf32>
    %46 = arith.mulf %41, %45 : vector<2x32xf32>
    %47 = arith.truncf %46 : vector<2x32xf32> to vector<2x32xbf16>
    %c4_i32 = arith.constant 4 : i32
    %48 = arith.muli %arg1, %c4_i32 : i32
    %49 = arith.addi %48, %c0_i32_14 : i32
    %50 = arith.index_cast %49 : i32 to index
    %c0_23 = arith.constant 0 : index
    %c0_24 = arith.constant 0 : index
    %51 = vector.load %arg14[%50, %c0_23, %c0_24] : memref<8x2x32xbf16, #tpu.memory_space<vmem>>, vector<1x2x32xbf16>
    %52 = vector.shape_cast %51 : vector<1x2x32xbf16> to vector<2x32xbf16>
    %53 = vector.shape_cast %47 : vector<2x32xbf16> to vector<1x2x32xbf16>
    tpu.vector_store %arg14[%50, %c0_23, %c0_24], %53 {strides = array<i32>} : memref<8x2x32xbf16, #tpu.memory_space<vmem>>, vector<1x2x32xbf16>,
    %c1_i32 = arith.constant 1 : i32
    %c0_25 = arith.constant 0 : index
    %c0_26 = arith.constant 0 : index
    %54 = vector.load %arg4[%c0_25, %c0_26] : memref<32x128xbf16, #tpu.memory_space<vmem>>, vector<32x128xbf16>
    %cst_27 = arith.constant dense<0.000000e+00> : vector<2x128xf32>
    %55 = tpu.matmul %47, %54, %cst_27 {dimension_numbers = #tpu.dot_dimension_numbers<[1], [0], [0], [1], [0, 0, 1, 1], [], []>} : vector<2x32xbf16>, vector<32x128xbf16>, vector<2x128xf32> -> vector<2x128xf32>
    %56 = arith.index_cast %c1_i32 : i32 to index
    %c0_28 = arith.constant 0 : index
    %c0_29 = arith.constant 0 : index
    %57 = vector.load %arg15[%56, %c0_28, %c0_29] : memref<4x2x128xbf16, #tpu.memory_space<vmem>>, vector<1x2x128xbf16>
    %58 = vector.shape_cast %57 : vector<1x2x128xbf16> to vector<2x128xbf16>
    %59 = arith.extf %58 : vector<2x128xbf16> to vector<2x128xf32>
    %60 = arith.addf %55, %59 : vector<2x128xf32>
    %61 = vector.extract_strided_slice %60 {offsets = [0, 0], sizes = [2, 32], strides = [1, 1]} : vector<2x128xf32> to vector<2x32xf32>
    %62 = arith.negf %61 : vector<2x32xf32>
    %63 = math.exp %62 : vector<2x32xf32>
    %cst_30 = arith.constant 1.000000e+00 : f32
    %64 = vector.broadcast %cst_30 : f32 to vector<2x32xf32>
    %65 = arith.addf %64, %63 : vector<2x32xf32>
    %66 = arith.divf %64, %65 : vector<2x32xf32>
    %67 = vector.extract_strided_slice %60 {offsets = [0, 32], sizes = [2, 32], strides = [1, 1]} : vector<2x128xf32> to vector<2x32xf32>
    %68 = arith.negf %67 : vector<2x32xf32>
    %69 = math.exp %68 : vector<2x32xf32>
    %cst_31 = arith.constant 1.000000e+00 : f32
    %70 = vector.broadcast %cst_31 : f32 to vector<2x32xf32>
    %71 = arith.addf %70, %69 : vector<2x32xf32>
    %72 = arith.divf %70, %71 : vector<2x32xf32>
    %73 = vector.extract_strided_slice %60 {offsets = [0, 64], sizes = [2, 32], strides = [1, 1]} : vector<2x128xf32> to vector<2x32xf32>
    %74 = math.tanh %73 : vector<2x32xf32>
    %75 = vector.extract_strided_slice %60 {offsets = [0, 96], sizes = [2, 32], strides = [1, 1]} : vector<2x128xf32> to vector<2x32xf32>
    %76 = arith.negf %75 : vector<2x32xf32>
    %77 = math.exp %76 : vector<2x32xf32>
    %cst_32 = arith.constant 1.000000e+00 : f32
    %78 = vector.broadcast %cst_32 : f32 to vector<2x32xf32>
    %79 = arith.addf %78, %77 : vector<2x32xf32>
    %80 = arith.divf %78, %79 : vector<2x32xf32>
    %81 = arith.mulf %72, %44 : vector<2x32xf32>
    %82 = arith.mulf %66, %74 : vector<2x32xf32>
    %83 = arith.addf %81, %82 : vector<2x32xf32>
    %84 = math.tanh %83 : vector<2x32xf32>
    %85 = arith.mulf %80, %84 : vector<2x32xf32>
    %86 = arith.truncf %85 : vector<2x32xf32> to vector<2x32xbf16>
    %c4_i32_33 = arith.constant 4 : i32
    %87 = arith.muli %arg1, %c4_i32_33 : i32
    %88 = arith.addi %87, %c1_i32 : i32
    %89 = arith.index_cast %88 : i32 to index
    %c0_34 = arith.constant 0 : index
    %c0_35 = arith.constant 0 : index
    %90 = vector.load %arg14[%89, %c0_34, %c0_35] : memref<8x2x32xbf16, #tpu.memory_space<vmem>>, vector<1x2x32xbf16>
    %91 = vector.shape_cast %90 : vector<1x2x32xbf16> to vector<2x32xbf16>
    %92 = vector.shape_cast %86 : vector<2x32xbf16> to vector<1x2x32xbf16>
    tpu.vector_store %arg14[%89, %c0_34, %c0_35], %92 {strides = array<i32>} : memref<8x2x32xbf16, #tpu.memory_space<vmem>>, vector<1x2x32xbf16>,
    %c2_i32 = arith.constant 2 : i32
    %c0_36 = arith.constant 0 : index
    %c0_37 = arith.constant 0 : index
    %93 = vector.load %arg4[%c0_36, %c0_37] : memref<32x128xbf16, #tpu.memory_space<vmem>>, vector<32x128xbf16>
    %cst_38 = arith.constant dense<0.000000e+00> : vector<2x128xf32>
    %94 = tpu.matmul %86, %93, %cst_38 {dimension_numbers = #tpu.dot_dimension_numbers<[1], [0], [0], [1], [0, 0, 1, 1], [], []>} : vector<2x32xbf16>, vector<32x128xbf16>, vector<2x128xf32> -> vector<2x128xf32>
    %95 = arith.index_cast %c2_i32 : i32 to index
    %c0_39 = arith.constant 0 : index
    %c0_40 = arith.constant 0 : index
    %96 = vector.load %arg15[%95, %c0_39, %c0_40] : memref<4x2x128xbf16, #tpu.memory_space<vmem>>, vector<1x2x128xbf16>
    %97 = vector.shape_cast %96 : vector<1x2x128xbf16> to vector<2x128xbf16>
    %98 = arith.extf %97 : vector<2x128xbf16> to vector<2x128xf32>
    %99 = arith.addf %94, %98 : vector<2x128xf32>
    %100 = vector.extract_strided_slice %99 {offsets = [0, 0], sizes = [2, 32], strides = [1, 1]} : vector<2x128xf32> to vector<2x32xf32>
    %101 = arith.negf %100 : vector<2x32xf32>
    %102 = math.exp %101 : vector<2x32xf32>
    %cst_41 = arith.constant 1.000000e+00 : f32
    %103 = vector.broadcast %cst_41 : f32 to vector<2x32xf32>
    %104 = arith.addf %103, %102 : vector<2x32xf32>
    %105 = arith.divf %103, %104 : vector<2x32xf32>
    %106 = vector.extract_strided_slice %99 {offsets = [0, 32], sizes = [2, 32], strides = [1, 1]} : vector<2x128xf32> to vector<2x32xf32>
    %107 = arith.negf %106 : vector<2x32xf32>
    %108 = math.exp %107 : vector<2x32xf32>
    %cst_42 = arith.constant 1.000000e+00 : f32
    %109 = vector.broadcast %cst_42 : f32 to vector<2x32xf32>
    %110 = arith.addf %109, %108 : vector<2x32xf32>
    %111 = arith.divf %109, %110 : vector<2x32xf32>
    %112 = vector.extract_strided_slice %99 {offsets = [0, 64], sizes = [2, 32], strides = [1, 1]} : vector<2x128xf32> to vector<2x32xf32>
    %113 = math.tanh %112 : vector<2x32xf32>
    %114 = vector.extract_strided_slice %99 {offsets = [0, 96], sizes = [2, 32], strides = [1, 1]} : vector<2x128xf32> to vector<2x32xf32>
    %115 = arith.negf %114 : vector<2x32xf32>
    %116 = math.exp %115 : vector<2x32xf32>
    %cst_43 = arith.constant 1.000000e+00 : f32
    %117 = vector.broadcast %cst_43 : f32 to vector<2x32xf32>
    %118 = arith.addf %117, %116 : vector<2x32xf32>
    %119 = arith.divf %117, %118 : vector<2x32xf32>
    %120 = arith.mulf %111, %83 : vector<2x32xf32>
    %121 = arith.mulf %105, %113 : vector<2x32xf32>
    %122 = arith.addf %120, %121 : vector<2x32xf32>
    %123 = math.tanh %122 : vector<2x32xf32>
    %124 = arith.mulf %119, %123 : vector<2x32xf32>
    %125 = arith.truncf %124 : vector<2x32xf32> to vector<2x32xbf16>
    %c4_i32_44 = arith.constant 4 : i32
    %126 = arith.muli %arg1, %c4_i32_44 : i32
    %127 = arith.addi %126, %c2_i32 : i32
    %128 = arith.index_cast %127 : i32 to index
    %c0_45 = arith.constant 0 : index
    %c0_46 = arith.constant 0 : index
    %129 = vector.load %arg14[%128, %c0_45, %c0_46] : memref<8x2x32xbf16, #tpu.memory_space<vmem>>, vector<1x2x32xbf16>
    %130 = vector.shape_cast %129 : vector<1x2x32xbf16> to vector<2x32xbf16>
    %131 = vector.shape_cast %125 : vector<2x32xbf16> to vector<1x2x32xbf16>
    tpu.vector_store %arg14[%128, %c0_45, %c0_46], %131 {strides = array<i32>} : memref<8x2x32xbf16, #tpu.memory_space<vmem>>, vector<1x2x32xbf16>,
    %c3_i32 = arith.constant 3 : i32
    %c0_47 = arith.constant 0 : index
    %c0_48 = arith.constant 0 : index
    %132 = vector.load %arg4[%c0_47, %c0_48] : memref<32x128xbf16, #tpu.memory_space<vmem>>, vector<32x128xbf16>
    %cst_49 = arith.constant dense<0.000000e+00> : vector<2x128xf32>
    %133 = tpu.matmul %125, %132, %cst_49 {dimension_numbers = #tpu.dot_dimension_numbers<[1], [0], [0], [1], [0, 0, 1, 1], [], []>} : vector<2x32xbf16>, vector<32x128xbf16>, vector<2x128xf32> -> vector<2x128xf32>
    %134 = arith.index_cast %c3_i32 : i32 to index
    %c0_50 = arith.constant 0 : index
    %c0_51 = arith.constant 0 : index
    %135 = vector.load %arg15[%134, %c0_50, %c0_51] : memref<4x2x128xbf16, #tpu.memory_space<vmem>>, vector<1x2x128xbf16>
    %136 = vector.shape_cast %135 : vector<1x2x128xbf16> to vector<2x128xbf16>
    %137 = arith.extf %136 : vector<2x128xbf16> to vector<2x128xf32>
    %138 = arith.addf %133, %137 : vector<2x128xf32>
    %139 = vector.extract_strided_slice %138 {offsets = [0, 0], sizes = [2, 32], strides = [1, 1]} : vector<2x128xf32> to vector<2x32xf32>
    %140 = arith.negf %139 : vector<2x32xf32>
    %141 = math.exp %140 : vector<2x32xf32>
    %cst_52 = arith.constant 1.000000e+00 : f32
    %142 = vector.broadcast %cst_52 : f32 to vector<2x32xf32>
    %143 = arith.addf %142, %141 : vector<2x32xf32>
    %144 = arith.divf %142, %143 : vector<2x32xf32>
    %145 = vector.extract_strided_slice %138 {offsets = [0, 32], sizes = [2, 32], strides = [1, 1]} : vector<2x128xf32> to vector<2x32xf32>
    %146 = arith.negf %145 : vector<2x32xf32>
    %147 = math.exp %146 : vector<2x32xf32>
    %cst_53 = arith.constant 1.000000e+00 : f32
    %148 = vector.broadcast %cst_53 : f32 to vector<2x32xf32>
    %149 = arith.addf %148, %147 : vector<2x32xf32>
    %150 = arith.divf %148, %149 : vector<2x32xf32>
    %151 = vector.extract_strided_slice %138 {offsets = [0, 64], sizes = [2, 32], strides = [1, 1]} : vector<2x128xf32> to vector<2x32xf32>
    %152 = math.tanh %151 : vector<2x32xf32>
    %153 = vector.extract_strided_slice %138 {offsets = [0, 96], sizes = [2, 32], strides = [1, 1]} : vector<2x128xf32> to vector<2x32xf32>
    %154 = arith.negf %153 : vector<2x32xf32>
    %155 = math.exp %154 : vector<2x32xf32>
    %cst_54 = arith.constant 1.000000e+00 : f32
    %156 = vector.broadcast %cst_54 : f32 to vector<2x32xf32>
    %157 = arith.addf %156, %155 : vector<2x32xf32>
    %158 = arith.divf %156, %157 : vector<2x32xf32>
    %159 = arith.mulf %150, %122 : vector<2x32xf32>
    %160 = arith.mulf %144, %152 : vector<2x32xf32>
    %161 = arith.addf %159, %160 : vector<2x32xf32>
    %162 = math.tanh %161 : vector<2x32xf32>
    %163 = arith.mulf %158, %162 : vector<2x32xf32>
    %164 = arith.truncf %163 : vector<2x32xf32> to vector<2x32xbf16>
    %c4_i32_55 = arith.constant 4 : i32
    %165 = arith.muli %arg1, %c4_i32_55 : i32
    %166 = arith.addi %165, %c3_i32 : i32
    %167 = arith.index_cast %166 : i32 to index
    %c0_56 = arith.constant 0 : index
    %c0_57 = arith.constant 0 : index
    %168 = vector.load %arg14[%167, %c0_56, %c0_57] : memref<8x2x32xbf16, #tpu.memory_space<vmem>>, vector<1x2x32xbf16>
    %169 = vector.shape_cast %168 : vector<1x2x32xbf16> to vector<2x32xbf16>
    %170 = vector.shape_cast %164 : vector<2x32xbf16> to vector<1x2x32xbf16>
    tpu.vector_store %arg14[%167, %c0_56, %c0_57], %170 {strides = array<i32>} : memref<8x2x32xbf16, #tpu.memory_space<vmem>>, vector<1x2x32xbf16>,
    %c4_i32_58 = arith.constant 4 : i32
    %c0_59 = arith.constant 0 : index
    %c0_60 = arith.constant 0 : index
    %171 = vector.load %arg12[%c0_59, %c0_60] : memref<2x32xbf16, #tpu.memory_space<vmem>>, vector<2x32xbf16>
    tpu.vector_store %arg12[%c0_59, %c0_60], %164 {strides = array<i32>} : memref<2x32xbf16, #tpu.memory_space<vmem>>, vector<2x32xbf16>,
    %c0_61 = arith.constant 0 : index
    %c0_62 = arith.constant 0 : index
    %172 = vector.load %arg13[%c0_61, %c0_62] : memref<2x32xf32, #tpu.memory_space<vmem>>, vector<2x32xf32>
    tpu.vector_store %arg13[%c0_61, %c0_62], %161 {strides = array<i32>} : memref<2x32xf32, #tpu.memory_space<vmem>>, vector<2x32xf32>,
    %c4_i32_63 = arith.constant 4 : i32
    %173 = arith.muli %arg1, %c4_i32_63 : i32
    %174 = arith.index_cast %173 : i32 to index
    %c0_64 = arith.constant 0 : index
    %c0_65 = arith.constant 0 : index
    %175 = vector.load %arg14[%174, %c0_64, %c0_65] : memref<8x2x32xbf16, #tpu.memory_space<vmem>>, vector<4x2x32xbf16>
    %176 = vector.shape_cast %175 : vector<4x2x32xbf16> to vector<8x32xbf16>
    %c0_66 = arith.constant 0 : index
    %c0_67 = arith.constant 0 : index
    %177 = vector.load %arg6[%c0_66, %c0_67] : memref<32x32xbf16, #tpu.memory_space<vmem>>, vector<32x32xbf16>
    %cst_68 = arith.constant dense<0.000000e+00> : vector<8x32xf32>
    %178 = tpu.matmul %176, %177, %cst_68 {dimension_numbers = #tpu.dot_dimension_numbers<[1], [0], [0], [1], [0, 0, 1, 1], [], []>} : vector<8x32xbf16>, vector<32x32xbf16>, vector<8x32xf32> -> vector<8x32xf32>
    %c0_69 = arith.constant 0 : index
    %c0_70 = arith.constant 0 : index
    %179 = vector.load %arg7[%c0_69, %c0_70] : memref<1x32xf32, #tpu.memory_space<vmem>>, vector<1x32xf32>
    %180 = vector.broadcast %179 : vector<1x32xf32> to vector<8x32xf32>
    %181 = arith.addf %178, %180 : vector<8x32xf32>
    %182 = math.tanh %181 : vector<8x32xf32>
    %183 = vector.shape_cast %182 : vector<8x32xf32> to vector<4x2x32xf32>
    %c0_71 = arith.constant 0 : index
    %c0_72 = arith.constant 0 : index
    %184 = vector.load %arg8[%c0_71, %c0_72] : memref<1x32xf32, #tpu.memory_space<vmem>>, vector<1x32xf32>
    %185 = vector.shape_cast %184 : vector<1x32xf32> to vector<1x1x32xf32>
    %186 = vector.broadcast %185 : vector<1x1x32xf32> to vector<4x2x32xf32>
    %187 = arith.mulf %183, %186 : vector<4x2x32xf32>
    %cst_73 = arith.constant dense<0.000000e+00> : vector<4x2xf32>
    %188 = vector.multi_reduction <add>, %187, %cst_73 [2] : vector<4x2x32xf32> to vector<4x2xf32>
    %189 = arith.index_cast %arg1 : i32 to index
    %c0_74 = arith.constant 0 : index
    %c0_75 = arith.constant 0 : index
    %190 = vector.load %arg16[%189, %c0_74, %c0_75] : memref<2x4x2xf32, #tpu.memory_space<vmem>>, vector<1x4x2xf32>
    %191 = vector.shape_cast %190 : vector<1x4x2xf32> to vector<4x2xf32>
    %192 = vector.shape_cast %188 : vector<4x2xf32> to vector<1x4x2xf32>
    tpu.vector_store %arg16[%189, %c0_74, %c0_75], %192 {strides = array<i32>} : memref<2x4x2xf32, #tpu.memory_space<vmem>>, vector<1x4x2xf32>,
    %c1_i32_76 = arith.constant 1 : i32
    %193 = arith.cmpi eq, %arg1, %c1_i32_76 : i32
    %194 = arith.extui %193 : i1 to i32
    %c0_i32_77 = arith.constant 0 : i32
    %195 = arith.cmpi ne, %194, %c0_i32_77 : i32
    scf.if %195 {
      %c0_78 = arith.constant 0 : index
      %c0_79 = arith.constant 0 : index
      %c0_80 = arith.constant 0 : index
      %196 = vector.load %arg16[%c0_78, %c0_79, %c0_80] : memref<2x4x2xf32, #tpu.memory_space<vmem>>, vector<2x4x2xf32>
      %cst_81 = arith.constant dense<0xFF800000> : vector<2x2xf32>
      %197 = vector.multi_reduction <maximumf>, %196, %cst_81 [1] : vector<2x4x2xf32> to vector<2x2xf32>
      %198 = vector.shape_cast %197 : vector<2x2xf32> to vector<2x1x2xf32>
      %cst_82 = arith.constant dense<0xFF800000> : vector<1x2xf32>
      %199 = vector.multi_reduction <maximumf>, %198, %cst_82 [0] : vector<2x1x2xf32> to vector<1x2xf32>
      %200 = vector.shape_cast %199 : vector<1x2xf32> to vector<1x1x2xf32>
      %201 = vector.broadcast %200 : vector<1x1x2xf32> to vector<2x4x2xf32>
      %202 = arith.subf %196, %201 : vector<2x4x2xf32>
      %203 = math.exp %202 : vector<2x4x2xf32>
      %cst_83 = arith.constant dense<0.000000e+00> : vector<2x2xf32>
      %204 = vector.multi_reduction <add>, %203, %cst_83 [1] : vector<2x4x2xf32> to vector<2x2xf32>
      %205 = vector.shape_cast %204 : vector<2x2xf32> to vector<2x1x2xf32>
      %cst_84 = arith.constant dense<0.000000e+00> : vector<1x2xf32>
      %206 = vector.multi_reduction <add>, %205, %cst_84 [0] : vector<2x1x2xf32> to vector<1x2xf32>
      %207 = vector.shape_cast %206 : vector<1x2xf32> to vector<1x1x2xf32>
      %208 = vector.broadcast %207 : vector<1x1x2xf32> to vector<2x4x2xf32>
      %209 = arith.divf %203, %208 : vector<2x4x2xf32>
      %c0_85 = arith.constant 0 : index
      %c0_86 = arith.constant 0 : index
      %c0_87 = arith.constant 0 : index
      %210 = vector.load %arg16[%c0_85, %c0_86, %c0_87] : memref<2x4x2xf32, #tpu.memory_space<vmem>>, vector<2x4x2xf32>
      tpu.vector_store %arg16[%c0_85, %c0_86, %c0_87], %209 {strides = array<i32>} : memref<2x4x2xf32, #tpu.memory_space<vmem>>, vector<2x4x2xf32>,
      %cst_88 = arith.constant 0.000000e+00 : f32
      %211 = vector.broadcast %cst_88 : f32 to vector<2x32xf32>
      %c0_i32_89 = arith.constant 0 : i32
      %c2_i32_90 = arith.constant 2 : i32
      %212 = arith.addi %c0_i32_89, %c2_i32_90 : i32
      %c1_i32_91 = arith.constant 1 : i32
      %213 = scf.for %arg17 = %c0_i32_89 to %212 step %c1_i32_91 iter_args(%arg18 = %211) -> (vector<2x32xf32>)  : i32 {
        %221 = arith.index_cast %arg17 : i32 to index
        %c0_100 = arith.constant 0 : index
        %c0_101 = arith.constant 0 : index
        %222 = vector.load %arg16[%221, %c0_100, %c0_101] : memref<2x4x2xf32, #tpu.memory_space<vmem>>, vector<1x4x2xf32>
        %223 = vector.shape_cast %222 : vector<1x4x2xf32> to vector<4x2xf32>
        %c4_i32_102 = arith.constant 4 : i32
        %224 = arith.muli %arg17, %c4_i32_102 : i32
        %225 = arith.index_cast %224 : i32 to index
        %c0_103 = arith.constant 0 : index
        %c0_104 = arith.constant 0 : index
        %226 = vector.load %arg14[%225, %c0_103, %c0_104] : memref<8x2x32xbf16, #tpu.memory_space<vmem>>, vector<4x2x32xbf16>
        %227 = arith.extf %226 : vector<4x2x32xbf16> to vector<4x2x32xf32>
        %228 = vector.shape_cast %223 : vector<4x2xf32> to vector<4x2x1xf32>
        %229 = vector.broadcast %228 : vector<4x2x1xf32> to vector<4x2x32xf32>
        %230 = arith.mulf %229, %227 : vector<4x2x32xf32>
        %cst_105 = arith.constant dense<0.000000e+00> : vector<2x32xf32>
        %231 = vector.multi_reduction <add>, %230, %cst_105 [0] : vector<4x2x32xf32> to vector<2x32xf32>
        %232 = arith.addf %arg18, %231 : vector<2x32xf32>
        scf.yield %232 : vector<2x32xf32>
      }
      %c2_i32_92 = arith.constant 2 : i32
      %214 = arith.truncf %213 : vector<2x32xf32> to vector<2x32xbf16>
      %c0_93 = arith.constant 0 : index
      %c0_94 = arith.constant 0 : index
      %215 = vector.load %arg9[%c0_93, %c0_94] : memref<32x8xbf16, #tpu.memory_space<vmem>>, vector<32x8xbf16>
      %cst_95 = arith.constant dense<0.000000e+00> : vector<2x8xf32>
      %216 = tpu.matmul %214, %215, %cst_95 {dimension_numbers = #tpu.dot_dimension_numbers<[1], [0], [0], [1], [0, 0, 1, 1], [], []>} : vector<2x32xbf16>, vector<32x8xbf16>, vector<2x8xf32> -> vector<2x8xf32>
      %c0_96 = arith.constant 0 : index
      %c0_97 = arith.constant 0 : index
      %217 = vector.load %arg10[%c0_96, %c0_97] : memref<1x8xf32, #tpu.memory_space<vmem>>, vector<1x8xf32>
      %218 = vector.broadcast %217 : vector<1x8xf32> to vector<2x8xf32>
      %219 = arith.addf %216, %218 : vector<2x8xf32>
      %c0_98 = arith.constant 0 : index
      %c0_99 = arith.constant 0 : index
      %220 = vector.load %arg11[%c0_98, %c0_99] : memref<2x8xf32, #tpu.memory_space<vmem>>, vector<2x8xf32>
      tpu.vector_store %arg11[%c0_98, %c0_99], %219 {strides = array<i32>} : memref<2x8xf32, #tpu.memory_space<vmem>>, vector<2x8xf32>,
    } else {
    }
    return
  }
  func.func @transform_0(%arg0: i32, %arg1: i32) -> (i32, i32, i32) {
    %c0_i32 = arith.constant 0 : i32
    %c0_i32_0 = arith.constant 0 : i32
    return %arg1, %arg0, %c0_i32 : i32, i32, i32
  }
  func.func @transform_1(%arg0: i32, %arg1: i32) -> (i32, i32) {
    %c0_i32 = arith.constant 0 : i32
    %c0_i32_0 = arith.constant 0 : i32
    %c0_i32_1 = arith.constant 0 : i32
    return %c0_i32, %c0_i32_0 : i32, i32
  }
  func.func @transform_2(%arg0: i32, %arg1: i32) -> (i32, i32) {
    %c0_i32 = arith.constant 0 : i32
    %c0_i32_0 = arith.constant 0 : i32
    %c0_i32_1 = arith.constant 0 : i32
    return %c0_i32, %c0_i32_0 : i32, i32
  }
  func.func @transform_3(%arg0: i32, %arg1: i32) -> (i32, i32) {
    %c0_i32 = arith.constant 0 : i32
    %c0_i32_0 = arith.constant 0 : i32
    %c0_i32_1 = arith.constant 0 : i32
    return %c0_i32, %c0_i32_0 : i32, i32
  }
  func.func @transform_4(%arg0: i32, %arg1: i32) -> (i32, i32) {
    %c0_i32 = arith.constant 0 : i32
    %c0_i32_0 = arith.constant 0 : i32
    %c0_i32_1 = arith.constant 0 : i32
    return %c0_i32, %c0_i32_0 : i32, i32
  }
  func.func @transform_5(%arg0: i32, %arg1: i32) -> (i32, i32) {
    %c0_i32 = arith.constant 0 : i32
    %c0_i32_0 = arith.constant 0 : i32
    %c0_i32_1 = arith.constant 0 : i32
    return %c0_i32, %c0_i32_0 : i32, i32
  }
  func.func @transform_6(%arg0: i32, %arg1: i32) -> (i32, i32) {
    %c0_i32 = arith.constant 0 : i32
    %c0_i32_0 = arith.constant 0 : i32
    %c0_i32_1 = arith.constant 0 : i32
    return %c0_i32, %c0_i32_0 : i32, i32
  }
  func.func @transform_7(%arg0: i32, %arg1: i32) -> (i32, i32) {
    %c0_i32 = arith.constant 0 : i32
    %c0_i32_0 = arith.constant 0 : i32
    %c0_i32_1 = arith.constant 0 : i32
    return %c0_i32, %c0_i32_0 : i32, i32
  }
  func.func @transform_8(%arg0: i32, %arg1: i32) -> (i32, i32) {
    %c0_i32 = arith.constant 0 : i32
    %c0_i32_0 = arith.constant 0 : i32
    %c0_i32_1 = arith.constant 0 : i32
    return %c0_i32, %c0_i32_0 : i32, i32
  }
  func.func @transform_9(%arg0: i32, %arg1: i32) -> (i32, i32) {
    %c0_i32 = arith.constant 0 : i32
    %c0_i32_0 = arith.constant 0 : i32
    return %arg0, %c0_i32 : i32, i32
  }
}

module attributes {stable_mosaic.version = 11 : i64} {
  func.func @lstm_attn_kernel(%arg0: i32, %arg1: i32, %arg2: memref<4x2x16xbf16, #tpu.memory_space<vmem>>, %arg3: memref<16x128xbf16, #tpu.memory_space<vmem>>, %arg4: memref<32x128xbf16, #tpu.memory_space<vmem>>, %arg5: memref<1x128xf32, #tpu.memory_space<vmem>>, %arg6: memref<32x32xbf16, #tpu.memory_space<vmem>>, %arg7: memref<1x32xf32, #tpu.memory_space<vmem>>, %arg8: memref<1x32xf32, #tpu.memory_space<vmem>>, %arg9: memref<32x8xbf16, #tpu.memory_space<vmem>>, %arg10: memref<1x8xf32, #tpu.memory_space<vmem>>, %arg11: memref<2x8xf32, #tpu.memory_space<vmem>>, %arg12: memref<2x32xbf16, #tpu.memory_space<vmem>>, %arg13: memref<2x32xf32, #tpu.memory_space<vmem>>, %arg14: memref<8x2x32xbf16, #tpu.memory_space<vmem>>, %arg15: memref<4x2x128xbf16, #tpu.memory_space<vmem>>, %arg16: memref<2x4x2xf32, #tpu.memory_space<vmem>>) attributes {dimension_semantics = [#tpu.dimension_semantics<parallel>, #tpu.dimension_semantics<arbitrary>], iteration_bounds = array<i64: 1, 2>, scalar_prefetch = 0 : i64, scratch_operands = 5 : i64, tpu.core_type = #tpu.core_type<tc>, window_params = [{transform_indices = @transform_0, window_bounds = array<i64: 4, 2, 16>}, {pipeline_mode = #tpu.pipeline_mode<synchronous>, transform_indices = @transform_1, window_bounds = array<i64: 16, 128>}, {pipeline_mode = #tpu.pipeline_mode<synchronous>, transform_indices = @transform_2, window_bounds = array<i64: 32, 128>}, {pipeline_mode = #tpu.pipeline_mode<synchronous>, transform_indices = @transform_3, window_bounds = array<i64: 1, 128>}, {pipeline_mode = #tpu.pipeline_mode<synchronous>, transform_indices = @transform_4, window_bounds = array<i64: 32, 32>}, {pipeline_mode = #tpu.pipeline_mode<synchronous>, transform_indices = @transform_5, window_bounds = array<i64: 1, 32>}, {pipeline_mode = #tpu.pipeline_mode<synchronous>, transform_indices = @transform_6, window_bounds = array<i64: 1, 32>}, {pipeline_mode = #tpu.pipeline_mode<synchronous>, transform_indices = @transform_7, window_bounds = array<i64: 32, 8>}, {pipeline_mode = #tpu.pipeline_mode<synchronous>, transform_indices = @transform_8, window_bounds = array<i64: 1, 8>}, {transform_indices = @transform_9, window_bounds = array<i64: 2, 8>}]} {
    %c0_i32 = arith.constant 0 : i32
    %0 = arith.cmpi eq, %arg1, %c0_i32 : i32
    %1 = arith.extui %0 : i1 to i32
    %c0_i32_0 = arith.constant 0 : i32
    %2 = arith.cmpi ne, %1, %c0_i32_0 : i32
    scf.if %2 {
      %cst_78 = arith.constant 0.000000e+00 : bf16
      %196 = vector.broadcast %cst_78 : bf16 to vector<2x32xbf16>
      %c0_79 = arith.constant 0 : index
      %c0_80 = arith.constant 0 : index
      %197 = vector.load %arg12[%c0_79, %c0_80] : memref<2x32xbf16, #tpu.memory_space<vmem>>, vector<2x32xbf16>
      tpu.vector_store %arg12[%c0_79, %c0_80], %196 {strides = array<i32>} : memref<2x32xbf16, #tpu.memory_space<vmem>>, vector<2x32xbf16>,
      %cst_81 = arith.constant 0.000000e+00 : f32
      %198 = vector.broadcast %cst_81 : f32 to vector<2x32xf32>
      %c0_82 = arith.constant 0 : index
      %c0_83 = arith.constant 0 : index
      %199 = vector.load %arg13[%c0_82, %c0_83] : memref<2x32xf32, #tpu.memory_space<vmem>>, vector<2x32xf32>
      tpu.vector_store %arg13[%c0_82, %c0_83], %198 {strides = array<i32>} : memref<2x32xf32, #tpu.memory_space<vmem>>, vector<2x32xf32>,
    } else {
    }
    %c0 = arith.constant 0 : index
    %c0_1 = arith.constant 0 : index
    %c0_2 = arith.constant 0 : index
    %3 = vector.load %arg2[%c0, %c0_1, %c0_2] : memref<4x2x16xbf16, #tpu.memory_space<vmem>>, vector<4x2x16xbf16>
    %4 = vector.shape_cast %3 : vector<4x2x16xbf16> to vector<8x16xbf16>
    %c0_3 = arith.constant 0 : index
    %c0_4 = arith.constant 0 : index
    %5 = vector.load %arg3[%c0_3, %c0_4] : memref<16x128xbf16, #tpu.memory_space<vmem>>, vector<16x128xbf16>
    %cst = arith.constant dense<0.000000e+00> : vector<8x128xf32>
    %6 = tpu.matmul %4, %5, %cst {dimension_numbers = #tpu.dot_dimension_numbers<[1], [0], [0], [1], [0, 0, 1, 1], [], []>} : vector<8x16xbf16>, vector<16x128xbf16>, vector<8x128xf32> -> vector<8x128xf32>
    %c0_5 = arith.constant 0 : index
    %c0_6 = arith.constant 0 : index
    %7 = vector.load %arg5[%c0_5, %c0_6] : memref<1x128xf32, #tpu.memory_space<vmem>>, vector<1x128xf32>
    %8 = vector.broadcast %7 : vector<1x128xf32> to vector<8x128xf32>
    %9 = arith.addf %6, %8 : vector<8x128xf32>
    %10 = vector.shape_cast %9 : vector<8x128xf32> to vector<4x2x128xf32>
    %11 = arith.truncf %10 : vector<4x2x128xf32> to vector<4x2x128xbf16>
    %c0_7 = arith.constant 0 : index
    %c0_8 = arith.constant 0 : index
    %c0_9 = arith.constant 0 : index
    %12 = vector.load %arg15[%c0_7, %c0_8, %c0_9] : memref<4x2x128xbf16, #tpu.memory_space<vmem>>, vector<4x2x128xbf16>
    tpu.vector_store %arg15[%c0_7, %c0_8, %c0_9], %11 {strides = array<i32>} : memref<4x2x128xbf16, #tpu.memory_space<vmem>>, vector<4x2x128xbf16>,
    %c0_10 = arith.constant 0 : index
    %c0_11 = arith.constant 0 : index
    %13 = vector.load %arg12[%c0_10, %c0_11] : memref<2x32xbf16, #tpu.memory_space<vmem>>, vector<2x32xbf16>
    %c0_12 = arith.constant 0 : index
    %c0_13 = arith.constant 0 : index
    %14 = vector.load %arg13[%c0_12, %c0_13] : memref<2x32xf32, #tpu.memory_space<vmem>>, vector<2x32xf32>
    %c0_i32_14 = arith.constant 0 : i32
    %c0_15 = arith.constant 0 : index
    %c0_16 = arith.constant 0 : index
    %15 = vector.load %arg4[%c0_15, %c0_16] : memref<32x128xbf16, #tpu.memory_space<vmem>>, vector<32x128xbf16>
    %cst_17 = arith.constant dense<0.000000e+00> : vector<2x128xf32>
    %16 = tpu.matmul %13, %15, %cst_17 {dimension_numbers = #tpu.dot_dimension_numbers<[1], [0], [0], [1], [0, 0, 1, 1], [], []>} : vector<2x32xbf16>, vector<32x128xbf16>, vector<2x128xf32> -> vector<2x128xf32>
    %17 = arith.index_cast %c0_i32_14 : i32 to index
    %c0_18 = arith.constant 0 : index
    %c0_19 = arith.constant 0 : index
    %18 = vector.load %arg15[%17, %c0_18, %c0_19] : memref<4x2x128xbf16, #tpu.memory_space<vmem>>, vector<1x2x128xbf16>
    %19 = vector.shape_cast %18 : vector<1x2x128xbf16> to vector<2x128xbf16>
    %20 = arith.extf %19 : vector<2x128xbf16> to vector<2x128xf32>
    %21 = arith.addf %16, %20 : vector<2x128xf32>
    %22 = vector.extract_strided_slice %21 {offsets = [0, 0], sizes = [2, 32], strides = [1, 1]} : vector<2x128xf32> to vector<2x32xf32>
    %23 = arith.negf %22 : vector<2x32xf32>
    %24 = math.exp %23 : vector<2x32xf32>
    %cst_20 = arith.constant 1.000000e+00 : f32
    %25 = vector.broadcast %cst_20 : f32 to vector<2x32xf32>
    %26 = arith.addf %25, %24 : vector<2x32xf32>
    %27 = arith.divf %25, %26 : vector<2x32xf32>
    %28 = vector.extract_strided_slice %21 {offsets = [0, 32], sizes = [2, 32], strides = [1, 1]} : vector<2x128xf32> to vector<2x32xf32>
    %29 = arith.negf %28 : vector<2x32xf32>
    %30 = math.exp %29 : vector<2x32xf32>
    %cst_21 = arith.constant 1.000000e+00 : f32
    %31 = vector.broadcast %cst_21 : f32 to vector<2x32xf32>
    %32 = arith.addf %31, %30 : vector<2x32xf32>
    %33 = arith.divf %31, %32 : vector<2x32xf32>
    %34 = vector.extract_strided_slice %21 {offsets = [0, 64], sizes = [2, 32], strides = [1, 1]} : vector<2x128xf32> to vector<2x32xf32>
    %35 = math.tanh %34 : vector<2x32xf32>
    %36 = vector.extract_strided_slice %21 {offsets = [0, 96], sizes = [2, 32], strides = [1, 1]} : vector<2x128xf32> to vector<2x32xf32>
    %37 = arith.negf %36 : vector<2x32xf32>
    %38 = math.exp %37 : vector<2x32xf32>
    %cst_22 = arith.constant 1.000000e+00 : f32
    %39 = vector.broadcast %cst_22 : f32 to vector<2x32xf32>
    %40 = arith.addf %39, %38 : vector<2x32xf32>
    %41 = arith.divf %39, %40 : vector<2x32xf32>
    %42 = arith.mulf %33, %14 : vector<2x32xf32>
    %43 = arith.mulf %27, %35 : vector<2x32xf32>
    %44 = arith.addf %42, %43 : vector<2x32xf32>
    %45 = math.tanh %44 : vector<2x32xf32>
    %46 = arith.mulf %41, %45 : vector<2x32xf32>
    %47 = arith.truncf %46 : vector<2x32xf32> to vector<2x32xbf16>
    %c4_i32 = arith.constant 4 : i32
    %48 = arith.muli %arg1, %c4_i32 : i32
    %49 = arith.addi %48, %c0_i32_14 : i32
    %50 = arith.index_cast %49 : i32 to index
    %c0_23 = arith.constant 0 : index
    %c0_24 = arith.constant 0 : index
    %51 = vector.load %arg14[%50, %c0_23, %c0_24] : memref<8x2x32xbf16, #tpu.memory_space<vmem>>, vector<1x2x32xbf16>
    %52 = vector.shape_cast %51 : vector<1x2x32xbf16> to vector<2x32xbf16>
    %53 = vector.shape_cast %47 : vector<2x32xbf16> to vector<1x2x32xbf16>
    tpu.vector_store %arg14[%50, %c0_23, %c0_24], %53 {strides = array<i32>} : memref<8x2x32xbf16, #tpu.memory_space<vmem>>, vector<1x2x32xbf16>,
    %c1_i32 = arith.constant 1 : i32
    %c0_25 = arith.constant 0 : index
    %c0_26 = arith.constant 0 : index
    %54 = vector.load %arg4[%c0_25, %c0_26] : memref<32x128xbf16, #tpu.memory_space<vmem>>, vector<32x128xbf16>
    %cst_27 = arith.constant dense<0.000000e+00> : vector<2x128xf32>
    %55 = tpu.matmul %47, %54, %cst_27 {dimension_numbers = #tpu.dot_dimension_numbers<[1], [0], [0], [1], [0, 0, 1, 1], [], []>} : vector<2x32xbf16>, vector<32x128xbf16>, vector<2x128xf32> -> vector<2x128xf32>
    %56 = arith.index_cast %c1_i32 : i32 to index
    %c0_28 = arith.constant 0 : index
    %c0_29 = arith.constant 0 : index
    %57 = vector.load %arg15[%56, %c0_28, %c0_29] : memref<4x2x128xbf16, #tpu.memory_space<vmem>>, vector<1x2x128xbf16>
    %58 = vector.shape_cast %57 : vector<1x2x128xbf16> to vector<2x128xbf16>
    %59 = arith.extf %58 : vector<2x128xbf16> to vector<2x128xf32>
    %60 = arith.addf %55, %59 : vector<2x128xf32>
    %61 = vector.extract_strided_slice %60 {offsets = [0, 0], sizes = [2, 32], strides = [1, 1]} : vector<2x128xf32> to vector<2x32xf32>
    %62 = arith.negf %61 : vector<2x32xf32>
    %63 = math.exp %62 : vector<2x32xf32>
    %cst_30 = arith.constant 1.000000e+00 : f32
    %64 = vector.broadcast %cst_30 : f32 to vector<2x32xf32>
    %65 = arith.addf %64, %63 : vector<2x32xf32>
    %66 = arith.divf %64, %65 : vector<2x32xf32>
    %67 = vector.extract_strided_slice %60 {offsets = [0, 32], sizes = [2, 32], strides = [1, 1]} : vector<2x128xf32> to vector<2x32xf32>
    %68 = arith.negf %67 : vector<2x32xf32>
    %69 = math.exp %68 : vector<2x32xf32>
    %cst_31 = arith.constant 1.000000e+00 : f32
    %70 = vector.broadcast %cst_31 : f32 to vector<2x32xf32>
    %71 = arith.addf %70, %69 : vector<2x32xf32>
    %72 = arith.divf %70, %71 : vector<2x32xf32>
    %73 = vector.extract_strided_slice %60 {offsets = [0, 64], sizes = [2, 32], strides = [1, 1]} : vector<2x128xf32> to vector<2x32xf32>
    %74 = math.tanh %73 : vector<2x32xf32>
    %75 = vector.extract_strided_slice %60 {offsets = [0, 96], sizes = [2, 32], strides = [1, 1]} : vector<2x128xf32> to vector<2x32xf32>
    %76 = arith.negf %75 : vector<2x32xf32>
    %77 = math.exp %76 : vector<2x32xf32>
    %cst_32 = arith.constant 1.000000e+00 : f32
    %78 = vector.broadcast %cst_32 : f32 to vector<2x32xf32>
    %79 = arith.addf %78, %77 : vector<2x32xf32>
    %80 = arith.divf %78, %79 : vector<2x32xf32>
    %81 = arith.mulf %72, %44 : vector<2x32xf32>
    %82 = arith.mulf %66, %74 : vector<2x32xf32>
    %83 = arith.addf %81, %82 : vector<2x32xf32>
    %84 = math.tanh %83 : vector<2x32xf32>
    %85 = arith.mulf %80, %84 : vector<2x32xf32>
    %86 = arith.truncf %85 : vector<2x32xf32> to vector<2x32xbf16>
    %c4_i32_33 = arith.constant 4 : i32
    %87 = arith.muli %arg1, %c4_i32_33 : i32
    %88 = arith.addi %87, %c1_i32 : i32
    %89 = arith.index_cast %88 : i32 to index
    %c0_34 = arith.constant 0 : index
    %c0_35 = arith.constant 0 : index
    %90 = vector.load %arg14[%89, %c0_34, %c0_35] : memref<8x2x32xbf16, #tpu.memory_space<vmem>>, vector<1x2x32xbf16>
    %91 = vector.shape_cast %90 : vector<1x2x32xbf16> to vector<2x32xbf16>
    %92 = vector.shape_cast %86 : vector<2x32xbf16> to vector<1x2x32xbf16>
    tpu.vector_store %arg14[%89, %c0_34, %c0_35], %92 {strides = array<i32>} : memref<8x2x32xbf16, #tpu.memory_space<vmem>>, vector<1x2x32xbf16>,
    %c2_i32 = arith.constant 2 : i32
    %c0_36 = arith.constant 0 : index
    %c0_37 = arith.constant 0 : index
    %93 = vector.load %arg4[%c0_36, %c0_37] : memref<32x128xbf16, #tpu.memory_space<vmem>>, vector<32x128xbf16>
    %cst_38 = arith.constant dense<0.000000e+00> : vector<2x128xf32>
    %94 = tpu.matmul %86, %93, %cst_38 {dimension_numbers = #tpu.dot_dimension_numbers<[1], [0], [0], [1], [0, 0, 1, 1], [], []>} : vector<2x32xbf16>, vector<32x128xbf16>, vector<2x128xf32> -> vector<2x128xf32>
    %95 = arith.index_cast %c2_i32 : i32 to index
    %c0_39 = arith.constant 0 : index
    %c0_40 = arith.constant 0 : index
    %96 = vector.load %arg15[%95, %c0_39, %c0_40] : memref<4x2x128xbf16, #tpu.memory_space<vmem>>, vector<1x2x128xbf16>
    %97 = vector.shape_cast %96 : vector<1x2x128xbf16> to vector<2x128xbf16>
    %98 = arith.extf %97 : vector<2x128xbf16> to vector<2x128xf32>
    %99 = arith.addf %94, %98 : vector<2x128xf32>
    %100 = vector.extract_strided_slice %99 {offsets = [0, 0], sizes = [2, 32], strides = [1, 1]} : vector<2x128xf32> to vector<2x32xf32>
    %101 = arith.negf %100 : vector<2x32xf32>
    %102 = math.exp %101 : vector<2x32xf32>
    %cst_41 = arith.constant 1.000000e+00 : f32
    %103 = vector.broadcast %cst_41 : f32 to vector<2x32xf32>
    %104 = arith.addf %103, %102 : vector<2x32xf32>
    %105 = arith.divf %103, %104 : vector<2x32xf32>
    %106 = vector.extract_strided_slice %99 {offsets = [0, 32], sizes = [2, 32], strides = [1, 1]} : vector<2x128xf32> to vector<2x32xf32>
    %107 = arith.negf %106 : vector<2x32xf32>
    %108 = math.exp %107 : vector<2x32xf32>
    %cst_42 = arith.constant 1.000000e+00 : f32
    %109 = vector.broadcast %cst_42 : f32 to vector<2x32xf32>
    %110 = arith.addf %109, %108 : vector<2x32xf32>
    %111 = arith.divf %109, %110 : vector<2x32xf32>
    %112 = vector.extract_strided_slice %99 {offsets = [0, 64], sizes = [2, 32], strides = [1, 1]} : vector<2x128xf32> to vector<2x32xf32>
    %113 = math.tanh %112 : vector<2x32xf32>
    %114 = vector.extract_strided_slice %99 {offsets = [0, 96], sizes = [2, 32], strides = [1, 1]} : vector<2x128xf32> to vector<2x32xf32>
    %115 = arith.negf %114 : vector<2x32xf32>
    %116 = math.exp %115 : vector<2x32xf32>
    %cst_43 = arith.constant 1.000000e+00 : f32
    %117 = vector.broadcast %cst_43 : f32 to vector<2x32xf32>
    %118 = arith.addf %117, %116 : vector<2x32xf32>
    %119 = arith.divf %117, %118 : vector<2x32xf32>
    %120 = arith.mulf %111, %83 : vector<2x32xf32>
    %121 = arith.mulf %105, %113 : vector<2x32xf32>
    %122 = arith.addf %120, %121 : vector<2x32xf32>
    %123 = math.tanh %122 : vector<2x32xf32>
    %124 = arith.mulf %119, %123 : vector<2x32xf32>
    %125 = arith.truncf %124 : vector<2x32xf32> to vector<2x32xbf16>
    %c4_i32_44 = arith.constant 4 : i32
    %126 = arith.muli %arg1, %c4_i32_44 : i32
    %127 = arith.addi %126, %c2_i32 : i32
    %128 = arith.index_cast %127 : i32 to index
    %c0_45 = arith.constant 0 : index
    %c0_46 = arith.constant 0 : index
    %129 = vector.load %arg14[%128, %c0_45, %c0_46] : memref<8x2x32xbf16, #tpu.memory_space<vmem>>, vector<1x2x32xbf16>
    %130 = vector.shape_cast %129 : vector<1x2x32xbf16> to vector<2x32xbf16>
    %131 = vector.shape_cast %125 : vector<2x32xbf16> to vector<1x2x32xbf16>
    tpu.vector_store %arg14[%128, %c0_45, %c0_46], %131 {strides = array<i32>} : memref<8x2x32xbf16, #tpu.memory_space<vmem>>, vector<1x2x32xbf16>,
    %c3_i32 = arith.constant 3 : i32
    %c0_47 = arith.constant 0 : index
    %c0_48 = arith.constant 0 : index
    %132 = vector.load %arg4[%c0_47, %c0_48] : memref<32x128xbf16, #tpu.memory_space<vmem>>, vector<32x128xbf16>
    %cst_49 = arith.constant dense<0.000000e+00> : vector<2x128xf32>
    %133 = tpu.matmul %125, %132, %cst_49 {dimension_numbers = #tpu.dot_dimension_numbers<[1], [0], [0], [1], [0, 0, 1, 1], [], []>} : vector<2x32xbf16>, vector<32x128xbf16>, vector<2x128xf32> -> vector<2x128xf32>
    %134 = arith.index_cast %c3_i32 : i32 to index
    %c0_50 = arith.constant 0 : index
    %c0_51 = arith.constant 0 : index
    %135 = vector.load %arg15[%134, %c0_50, %c0_51] : memref<4x2x128xbf16, #tpu.memory_space<vmem>>, vector<1x2x128xbf16>
    %136 = vector.shape_cast %135 : vector<1x2x128xbf16> to vector<2x128xbf16>
    %137 = arith.extf %136 : vector<2x128xbf16> to vector<2x128xf32>
    %138 = arith.addf %133, %137 : vector<2x128xf32>
    %139 = vector.extract_strided_slice %138 {offsets = [0, 0], sizes = [2, 32], strides = [1, 1]} : vector<2x128xf32> to vector<2x32xf32>
    %140 = arith.negf %139 : vector<2x32xf32>
    %141 = math.exp %140 : vector<2x32xf32>
    %cst_52 = arith.constant 1.000000e+00 : f32
    %142 = vector.broadcast %cst_52 : f32 to vector<2x32xf32>
    %143 = arith.addf %142, %141 : vector<2x32xf32>
    %144 = arith.divf %142, %143 : vector<2x32xf32>
    %145 = vector.extract_strided_slice %138 {offsets = [0, 32], sizes = [2, 32], strides = [1, 1]} : vector<2x128xf32> to vector<2x32xf32>
    %146 = arith.negf %145 : vector<2x32xf32>
    %147 = math.exp %146 : vector<2x32xf32>
    %cst_53 = arith.constant 1.000000e+00 : f32
    %148 = vector.broadcast %cst_53 : f32 to vector<2x32xf32>
    %149 = arith.addf %148, %147 : vector<2x32xf32>
    %150 = arith.divf %148, %149 : vector<2x32xf32>
    %151 = vector.extract_strided_slice %138 {offsets = [0, 64], sizes = [2, 32], strides = [1, 1]} : vector<2x128xf32> to vector<2x32xf32>
    %152 = math.tanh %151 : vector<2x32xf32>
    %153 = vector.extract_strided_slice %138 {offsets = [0, 96], sizes = [2, 32], strides = [1, 1]} : vector<2x128xf32> to vector<2x32xf32>
    %154 = arith.negf %153 : vector<2x32xf32>
    %155 = math.exp %154 : vector<2x32xf32>
    %cst_54 = arith.constant 1.000000e+00 : f32
    %156 = vector.broadcast %cst_54 : f32 to vector<2x32xf32>
    %157 = arith.addf %156, %155 : vector<2x32xf32>
    %158 = arith.divf %156, %157 : vector<2x32xf32>
    %159 = arith.mulf %150, %122 : vector<2x32xf32>
    %160 = arith.mulf %144, %152 : vector<2x32xf32>
    %161 = arith.addf %159, %160 : vector<2x32xf32>
    %162 = math.tanh %161 : vector<2x32xf32>
    %163 = arith.mulf %158, %162 : vector<2x32xf32>
    %164 = arith.truncf %163 : vector<2x32xf32> to vector<2x32xbf16>
    %c4_i32_55 = arith.constant 4 : i32
    %165 = arith.muli %arg1, %c4_i32_55 : i32
    %166 = arith.addi %165, %c3_i32 : i32
    %167 = arith.index_cast %166 : i32 to index
    %c0_56 = arith.constant 0 : index
    %c0_57 = arith.constant 0 : index
    %168 = vector.load %arg14[%167, %c0_56, %c0_57] : memref<8x2x32xbf16, #tpu.memory_space<vmem>>, vector<1x2x32xbf16>
    %169 = vector.shape_cast %168 : vector<1x2x32xbf16> to vector<2x32xbf16>
    %170 = vector.shape_cast %164 : vector<2x32xbf16> to vector<1x2x32xbf16>
    tpu.vector_store %arg14[%167, %c0_56, %c0_57], %170 {strides = array<i32>} : memref<8x2x32xbf16, #tpu.memory_space<vmem>>, vector<1x2x32xbf16>,
    %c4_i32_58 = arith.constant 4 : i32
    %c0_59 = arith.constant 0 : index
    %c0_60 = arith.constant 0 : index
    %171 = vector.load %arg12[%c0_59, %c0_60] : memref<2x32xbf16, #tpu.memory_space<vmem>>, vector<2x32xbf16>
    tpu.vector_store %arg12[%c0_59, %c0_60], %164 {strides = array<i32>} : memref<2x32xbf16, #tpu.memory_space<vmem>>, vector<2x32xbf16>,
    %c0_61 = arith.constant 0 : index
    %c0_62 = arith.constant 0 : index
    %172 = vector.load %arg13[%c0_61, %c0_62] : memref<2x32xf32, #tpu.memory_space<vmem>>, vector<2x32xf32>
    tpu.vector_store %arg13[%c0_61, %c0_62], %161 {strides = array<i32>} : memref<2x32xf32, #tpu.memory_space<vmem>>, vector<2x32xf32>,
    %c4_i32_63 = arith.constant 4 : i32
    %173 = arith.muli %arg1, %c4_i32_63 : i32
    %174 = arith.index_cast %173 : i32 to index
    %c0_64 = arith.constant 0 : index
    %c0_65 = arith.constant 0 : index
    %175 = vector.load %arg14[%174, %c0_64, %c0_65] : memref<8x2x32xbf16, #tpu.memory_space<vmem>>, vector<4x2x32xbf16>
    %176 = vector.shape_cast %175 : vector<4x2x32xbf16> to vector<8x32xbf16>
    %c0_66 = arith.constant 0 : index
    %c0_67 = arith.constant 0 : index
    %177 = vector.load %arg6[%c0_66, %c0_67] : memref<32x32xbf16, #tpu.memory_space<vmem>>, vector<32x32xbf16>
    %cst_68 = arith.constant dense<0.000000e+00> : vector<8x32xf32>
    %178 = tpu.matmul %176, %177, %cst_68 {dimension_numbers = #tpu.dot_dimension_numbers<[1], [0], [0], [1], [0, 0, 1, 1], [], []>} : vector<8x32xbf16>, vector<32x32xbf16>, vector<8x32xf32> -> vector<8x32xf32>
    %c0_69 = arith.constant 0 : index
    %c0_70 = arith.constant 0 : index
    %179 = vector.load %arg7[%c0_69, %c0_70] : memref<1x32xf32, #tpu.memory_space<vmem>>, vector<1x32xf32>
    %180 = vector.broadcast %179 : vector<1x32xf32> to vector<8x32xf32>
    %181 = arith.addf %178, %180 : vector<8x32xf32>
    %182 = math.tanh %181 : vector<8x32xf32>
    %183 = vector.shape_cast %182 : vector<8x32xf32> to vector<4x2x32xf32>
    %c0_71 = arith.constant 0 : index
    %c0_72 = arith.constant 0 : index
    %184 = vector.load %arg8[%c0_71, %c0_72] : memref<1x32xf32, #tpu.memory_space<vmem>>, vector<1x32xf32>
    %185 = vector.shape_cast %184 : vector<1x32xf32> to vector<1x1x32xf32>
    %186 = vector.broadcast %185 : vector<1x1x32xf32> to vector<4x2x32xf32>
    %187 = arith.mulf %183, %186 : vector<4x2x32xf32>
    %cst_73 = arith.constant dense<0.000000e+00> : vector<4x2xf32>
    %188 = vector.multi_reduction <add>, %187, %cst_73 [2] : vector<4x2x32xf32> to vector<4x2xf32>
    %189 = arith.index_cast %arg1 : i32 to index
    %c0_74 = arith.constant 0 : index
    %c0_75 = arith.constant 0 : index
    %190 = vector.load %arg16[%189, %c0_74, %c0_75] : memref<2x4x2xf32, #tpu.memory_space<vmem>>, vector<1x4x2xf32>
    %191 = vector.shape_cast %190 : vector<1x4x2xf32> to vector<4x2xf32>
    %192 = vector.shape_cast %188 : vector<4x2xf32> to vector<1x4x2xf32>
    tpu.vector_store %arg16[%189, %c0_74, %c0_75], %192 {strides = array<i32>} : memref<2x4x2xf32, #tpu.memory_space<vmem>>, vector<1x4x2xf32>,
    %c1_i32_76 = arith.constant 1 : i32
    %193 = arith.cmpi eq, %arg1, %c1_i32_76 : i32
    %194 = arith.extui %193 : i1 to i32
    %c0_i32_77 = arith.constant 0 : i32
    %195 = arith.cmpi ne, %194, %c0_i32_77 : i32
    scf.if %195 {
      %c0_78 = arith.constant 0 : index
      %c0_79 = arith.constant 0 : index
      %c0_80 = arith.constant 0 : index
      %196 = vector.load %arg16[%c0_78, %c0_79, %c0_80] : memref<2x4x2xf32, #tpu.memory_space<vmem>>, vector<2x4x2xf32>
      %cst_81 = arith.constant dense<0xFF800000> : vector<2x2xf32>
      %197 = vector.multi_reduction <maximumf>, %196, %cst_81 [1] : vector<2x4x2xf32> to vector<2x2xf32>
      %198 = vector.shape_cast %197 : vector<2x2xf32> to vector<2x1x2xf32>
      %cst_82 = arith.constant dense<0xFF800000> : vector<1x2xf32>
      %199 = vector.multi_reduction <maximumf>, %198, %cst_82 [0] : vector<2x1x2xf32> to vector<1x2xf32>
      %200 = vector.shape_cast %199 : vector<1x2xf32> to vector<1x1x2xf32>
      %201 = vector.broadcast %200 : vector<1x1x2xf32> to vector<2x4x2xf32>
      %202 = arith.subf %196, %201 : vector<2x4x2xf32>
      %203 = math.exp %202 : vector<2x4x2xf32>
      %cst_83 = arith.constant dense<0.000000e+00> : vector<2x2xf32>
      %204 = vector.multi_reduction <add>, %203, %cst_83 [1] : vector<2x4x2xf32> to vector<2x2xf32>
      %205 = vector.shape_cast %204 : vector<2x2xf32> to vector<2x1x2xf32>
      %cst_84 = arith.constant dense<0.000000e+00> : vector<1x2xf32>
      %206 = vector.multi_reduction <add>, %205, %cst_84 [0] : vector<2x1x2xf32> to vector<1x2xf32>
      %207 = vector.shape_cast %206 : vector<1x2xf32> to vector<1x1x2xf32>
      %208 = vector.broadcast %207 : vector<1x1x2xf32> to vector<2x4x2xf32>
      %209 = arith.divf %203, %208 : vector<2x4x2xf32>
      %c0_85 = arith.constant 0 : index
      %c0_86 = arith.constant 0 : index
      %c0_87 = arith.constant 0 : index
      %210 = vector.load %arg16[%c0_85, %c0_86, %c0_87] : memref<2x4x2xf32, #tpu.memory_space<vmem>>, vector<2x4x2xf32>
      tpu.vector_store %arg16[%c0_85, %c0_86, %c0_87], %209 {strides = array<i32>} : memref<2x4x2xf32, #tpu.memory_space<vmem>>, vector<2x4x2xf32>,
      %cst_88 = arith.constant 0.000000e+00 : f32
      %211 = vector.broadcast %cst_88 : f32 to vector<2x32xf32>
      %c0_i32_89 = arith.constant 0 : i32
      %c2_i32_90 = arith.constant 2 : i32
      %212 = arith.addi %c0_i32_89, %c2_i32_90 : i32
      %c1_i32_91 = arith.constant 1 : i32
      %213 = scf.for %arg17 = %c0_i32_89 to %212 step %c1_i32_91 iter_args(%arg18 = %211) -> (vector<2x32xf32>)  : i32 {
        %221 = arith.index_cast %arg17 : i32 to index
        %c0_100 = arith.constant 0 : index
        %c0_101 = arith.constant 0 : index
        %222 = vector.load %arg16[%221, %c0_100, %c0_101] : memref<2x4x2xf32, #tpu.memory_space<vmem>>, vector<1x4x2xf32>
        %223 = vector.shape_cast %222 : vector<1x4x2xf32> to vector<4x2xf32>
        %c4_i32_102 = arith.constant 4 : i32
        %224 = arith.muli %arg17, %c4_i32_102 : i32
        %225 = arith.index_cast %224 : i32 to index
        %c0_103 = arith.constant 0 : index
        %c0_104 = arith.constant 0 : index
        %226 = vector.load %arg14[%225, %c0_103, %c0_104] : memref<8x2x32xbf16, #tpu.memory_space<vmem>>, vector<4x2x32xbf16>
        %227 = arith.extf %226 : vector<4x2x32xbf16> to vector<4x2x32xf32>
        %228 = vector.shape_cast %223 : vector<4x2xf32> to vector<4x2x1xf32>
        %229 = vector.broadcast %228 : vector<4x2x1xf32> to vector<4x2x32xf32>
        %230 = arith.mulf %229, %227 : vector<4x2x32xf32>
        %cst_105 = arith.constant dense<0.000000e+00> : vector<2x32xf32>
        %231 = vector.multi_reduction <add>, %230, %cst_105 [0] : vector<4x2x32xf32> to vector<2x32xf32>
        %232 = arith.addf %arg18, %231 : vector<2x32xf32>
        scf.yield %232 : vector<2x32xf32>
      }
      %c2_i32_92 = arith.constant 2 : i32
      %214 = arith.truncf %213 : vector<2x32xf32> to vector<2x32xbf16>
      %c0_93 = arith.constant 0 : index
      %c0_94 = arith.constant 0 : index
      %215 = vector.load %arg9[%c0_93, %c0_94] : memref<32x8xbf16, #tpu.memory_space<vmem>>, vector<32x8xbf16>
      %cst_95 = arith.constant dense<0.000000e+00> : vector<2x8xf32>
      %216 = tpu.matmul %214, %215, %cst_95 {dimension_numbers = #tpu.dot_dimension_numbers<[1], [0], [0], [1], [0, 0, 1, 1], [], []>} : vector<2x32xbf16>, vector<32x8xbf16>, vector<2x8xf32> -> vector<2x8xf32>
      %c0_96 = arith.constant 0 : index
      %c0_97 = arith.constant 0 : index
      %217 = vector.load %arg10[%c0_96, %c0_97] : memref<1x8xf32, #tpu.memory_space<vmem>>, vector<1x8xf32>
      %218 = vector.broadcast %217 : vector<1x8xf32> to vector<2x8xf32>
      %219 = arith.addf %216, %218 : vector<2x8xf32>
      %c0_98 = arith.constant 0 : index
      %c0_99 = arith.constant 0 : index
      %220 = vector.load %arg11[%c0_98, %c0_99] : memref<2x8xf32, #tpu.memory_space<vmem>>, vector<2x8xf32>
      tpu.vector_store %arg11[%c0_98, %c0_99], %219 {strides = array<i32>} : memref<2x8xf32, #tpu.memory_space<vmem>>, vector<2x8xf32>,
    } else {
    }
    return
  }
  func.func @transform_0(%arg0: i32, %arg1: i32) -> (i32, i32, i32) {
    %c0_i32 = arith.constant 0 : i32
    %c0_i32_0 = arith.constant 0 : i32
    return %arg1, %arg0, %c0_i32 : i32, i32, i32
  }
  func.func @transform_1(%arg0: i32, %arg1: i32) -> (i32, i32) {
    %c0_i32 = arith.constant 0 : i32
    %c0_i32_0 = arith.constant 0 : i32
    %c0_i32_1 = arith.constant 0 : i32
    return %c0_i32, %c0_i32_0 : i32, i32
  }
  func.func @transform_2(%arg0: i32, %arg1: i32) -> (i32, i32) {
    %c0_i32 = arith.constant 0 : i32
    %c0_i32_0 = arith.constant 0 : i32
    %c0_i32_1 = arith.constant 0 : i32
    return %c0_i32, %c0_i32_0 : i32, i32
  }
  func.func @transform_3(%arg0: i32, %arg1: i32) -> (i32, i32) {
    %c0_i32 = arith.constant 0 : i32
    %c0_i32_0 = arith.constant 0 : i32
    %c0_i32_1 = arith.constant 0 : i32
    return %c0_i32, %c0_i32_0 : i32, i32
  }
  func.func @transform_4(%arg0: i32, %arg1: i32) -> (i32, i32) {
    %c0_i32 = arith.constant 0 : i32
    %c0_i32_0 = arith.constant 0 : i32
    %c0_i32_1 = arith.constant 0 : i32
    return %c0_i32, %c0_i32_0 : i32, i32
  }
  func.func @transform_5(%arg0: i32, %arg1: i32) -> (i32, i32) {
    %c0_i32 = arith.constant 0 : i32
    %c0_i32_0 = arith.constant 0 : i32
    %c0_i32_1 = arith.constant 0 : i32
    return %c0_i32, %c0_i32_0 : i32, i32
  }
  func.func @transform_6(%arg0: i32, %arg1: i32) -> (i32, i32) {
    %c0_i32 = arith.constant 0 : i32
    %c0_i32_0 = arith.constant 0 : i32
    %c0_i32_1 = arith.constant 0 : i32
    return %c0_i32, %c0_i32_0 : i32, i32
  }
  func.func @transform_7(%arg0: i32, %arg1: i32) -> (i32, i32) {
    %c0_i32 = arith.constant 0 : i32
    %c0_i32_0 = arith.constant 0 : i32
    %c0_i32_1 = arith.constant 0 : i32
    return %c0_i32, %c0_i32_0 : i32, i32
  }
  func.func @transform_8(%arg0: i32, %arg1: i32) -> (i32, i32) {
    %c0_i32 = arith.constant 0 : i32
    %c0_i32_0 = arith.constant 0 : i32
    %c0_i32_1 = arith.constant 0 : i32
    return %c0_i32, %c0_i32_0 : i32, i32
  }
  func.func @transform_9(%arg0: i32, %arg1: i32) -> (i32, i32) {
    %c0_i32 = arith.constant 0 : i32
    %c0_i32_0 = arith.constant 0 : i32
    return %arg0, %c0_i32 : i32, i32
  }
}

</mosaic_0001>

<bundles_post_ra>
// kernel: tpu_custom_call.1
= control target key start
LH: loop header
LB: loop body
LE: loop exit
PB: predicated region body
PF: predicated region fallthrough
CT: control target
= control target key end

     0   :  { %s2298_s0 = inlined_call_operand.hbm [shape: bf16[8,2,16], index: 0, kind: input, shape index: {}]   ;;  %s2299_s1 = inlined_call_operand.hbm [shape: bf16[16,128], index: 1, kind: input, shape index: {}]   ;;  %s2300_s2 = inlined_call_operand.vmem [shape: bf16[32,128], index: 2, kind: input, shape index: {}]   ;;  %s2301_s3 = inlined_call_operand.vmem [shape: f32[1,128], index: 3, kind: input, shape index: {}]   ;;  %s2302_s4 = inlined_call_operand.vmem [shape: bf16[32,32], index: 4, kind: input, shape index: {}]   ;;  %s2303_s5 = inlined_call_operand.vmem [shape: f32[1,32], index: 5, kind: input, shape index: {}]   ;;  %s2304_s6 = inlined_call_operand.vmem [shape: f32[1,32], index: 6, kind: input, shape index: {}]   ;;  %s2305_s7 = inlined_call_operand.vmem [shape: bf16[32,8], index: 7, kind: input, shape index: {}]   ;;  %s2306_s8 = inlined_call_operand.vmem [shape: f32[1,8], index: 8, kind: input, shape index: {}]   ;;  %s2307_s9 = inlined_call_operand.hbm [shape: f32[2,8], index: 9, kind: output, shape index: {}]  }
   0x1   :  { %2314 = sst [smem:[#allocation16_spill]] %s2307_s9 }
   0x2   :  { %14 = vsyncpa [#allocation8], 0 }
   0x3   :  { %16 = vsyncpa [#allocation8 + $0x1], 0 }
   0x4   :  { %17 = vsyncpa [#allocation11], 0 }
   0x5   :  { %18 = vsyncpa [#allocation9], 0  ;;  %s1932_s30 = smov 0   ;;  %s1934_s10 = smov 0  }
   0x6   :  { %s1936_s11 = smov 0   ;;  %s1938_s12 = smov 0  }
   0x7   :  { %s1940_s13 = smov 0   ;;  %s1942_s14 = smov 0  }
   0x8 LB: > { %s2312_s15 = sadd.s32 4294967295, %s1854_s14   ;;  %p58_p0 = scmp.ne.s32.totalorder %s1838_s10, %s1834_s30  ;;  %s1854_s14 = sphi %s1942_s14, %s24_s14   ;;  %s1850_s13 = sphi %s1940_s13, %s2330_s13   ;;  %s1846_s12 = sphi %s1938_s12, %s2329_s12   ;;  %s1842_s11 = sphi %s1936_s11, %s2328_s11   ;;  %s1838_s10 = sphi %s1934_s10, %s2327_s10   ;;  %s1834_s30 = sphi %s1932_s30, %s2326_s30  }
   0x9   : > { %p1964_p1 = scmp.eq.s32.totalorder %s2312_s15, 0  ;;  %p1421_p2 = scmp.ge.s32.totalorder %s1854_s14, 1 }
   0xa   : > { %p263_p3 = scmp.lt.s32.totalorder %s1854_s14, 3  ;;  %s1864_s19 = smov [#allocation10]  }
   0xb   : > { %s2315_s16 = scalar_select %p1964_p1, 1, 0 }
   0xc   : > { %p1972_p4 = por %p1964_p1, %p58_p0  ;;  %p1976_p5 = pnand %p1421_p2, %p263_p3 }
   0xd   : > { %s275_s20 = sshll.u32 %s1864_s19, 4  ;;  %s33_s22 = sadd.s32 1, %s1850_s13  ;;  %s276_s20 = int_to_ptr.vmem [resolvable:$true] %s275_s20 }
   0xe   : > { %s2316_s17 = scalar_select %p1972_p4, 1, 0 }
   0xf   : > { %s2317_s18 = scalar_select %p1976_p5, 1, 0 }
  0x10   : > { %p1557_p6 = pneg %p1976_p5  ;;  %s1704_s25 = scalar_lea.hbm %s2299_s1, 128 }
  0x11   : > { %p1705_p8 = scmp.ne.s32.totalorder %s2299_s1, %s1704_s25  ;;  %p1711_p12 = scmp.lt.u32.totalorder %s1704_s25, %s2299_s1 }
  0x12   : > { %p1984_p7 = pnand %p1557_p6, %p1964_p1 }
  0x14   : > { %p1706_p9 = pneg %p1984_p7 }
  0x16   : > { %p1707_p10 = pnand %p1706_p9, %p1705_p8 }
  0x18   : > { %p1708_p11 = pneg %p1707_p10 }
  0x1a   : > { %p1713_p13 = pnand %p1711_p12, %p1708_p11 }
  0x1c   : > { %1716 = shalt.err (!%p1713_p13)
}
  0x1d   : > { %s1717_s30 = scalar_lea.vmem %s276_s20, 128  ;;  %p1725_p6 = scmp.lt.s32.totalorder %s276_s20, %s276_s20 }
  0x1e   : > { %p1718_p0 = scmp.ne.s32.totalorder %s276_s20, %s1717_s30  ;;  %p1726_p1 = scmp.lt.s32.totalorder %s1717_s30, %s1717_s30 }
  0x20   : > { %p1720_p2 = pnand %p1718_p0, %p1706_p9  ;;  %p1727_p4 = por %p1726_p1, %p1725_p6 }
  0x22   : > { %p1721_p3 = pneg %p1720_p2 }
  0x24   : > { %p1728_p5 = pnand %p1727_p4, %p1721_p3 }
  0x26   : > { %1731 = shalt.err (!%p1728_p5)
}
  0x27   : > { %s1865_s19 = smov 64   ;;  %s1866_s23 = smov 4  }
  0x28   : > { %1560 = dma.hbm_to_vmem [thread:$0]  (!%p1984_p7), %s2299_s1, 128, %s276_s20, [#allocation11], %s1865_s19, %s1865_s19, %s1866_s23  }
  0x29   : > { %p34_p1 = scmp.ge.s32.totalorder %s33_s22, 2  ;;  %s45_s26 = sadd.s32 1, %s1842_s11 }
  0x2a   : > { %p52_p4 = scmp.ne.s32.totalorder %s1842_s11, %s1838_s10  ;;  %p53_p5 = scmp.eq.s32.totalorder %s1854_s14, 0 }
  0x2b   : > { %s2332_s22 = smov (%p34_p1, %s33_s22), 0  ;;  %p1566_p9 = scmp.lt.s32.totalorder %s1854_s14, 2 }
  0x2c   : > { %p54_p8 = por %p53_p5, %p52_p4  ;;  %s40_s27 = ssub.s32 %s1850_s13, %s2332_s22 }
  0x2d   : > { %s310_s28 = sand.u32 1, %s1842_s11   ;;  %p43_p10 = scmp.eq.s32.totalorder %s40_s27, 0 }
  0x2e   : > { %s1424_s29 = sshll.u32 %s310_s28, 2  ;;  %s1472_s30 = sshll.u32 %s1850_s13, 6 }
  0x2f   : > { %s2017_s15 = scalar_select %p43_p10, %s1842_s11, %s45_s26  }
  0x30   : > { %s2022_s20 = scalar_lea.hbm %s2298_s0, %s1472_s30  ;;  %s314_s19 = scalar_lea.vmem [#allocation7], %s1424_s29 }
  0x31   : > { %s322_s23 = sshll.u32 %s314_s19, 4  ;;  %p2024_p7 = pnand %p1566_p9, %p54_p8  ;;  %s2028_s23 = int_to_ptr.vmem [resolvable:$true] %s322_s23 }
  0x32   : > { %s2030_s25 = scalar_lea.sflag [#allocation8], %s310_s28  ;;  %s1732_s26 = scalar_lea.hbm %s2022_s20, 64 }
  0x33   : > { %p1733_p11 = scmp.ne.s32.totalorder %s2022_s20, %s1732_s26  ;;  %p1734_p12 = pneg %p2024_p7 }
  0x34   : > { %s1737_s29 = scalar_lea.hbm %s2298_s0, 128  ;;  %p1738_p2 = scmp.lt.u32.totalorder %s2022_s20, %s2298_s0 }
  0x35   : > { %p1735_p13 = pnand %p1734_p12, %p1733_p11  ;;  %p1739_p3 = scmp.lt.u32.totalorder %s1737_s29, %s1732_s26 }
  0x36   : > { %p1741_p1 = scmp.lt.u32.totalorder %s1732_s26, %s2022_s20 }
  0x37   : > { %p1736_p0 = pneg %p1735_p13  ;;  %p1740_p6 = por %p1739_p3, %p1738_p2 }
  0x39   : > { %p1742_p4 = por %p1741_p1, %p1740_p6 }
  0x3b   : > { %p1743_p5 = pnand %p1742_p4, %p1736_p0 }
  0x3d   : > { %1746 = shalt.err (!%p1743_p5)
}
  0x3e   : > { %s1747_s28 = scalar_lea.vmem %s2028_s23, 64  ;;  %s1867_s19 = smov [#allocation7]  }
  0x3f   : > { %p1748_p8 = scmp.ne.s32.totalorder %s2028_s23, %s1747_s28  ;;  %s1752_s9 = sshll.u32 %s1867_s19, 4  ;;  %s1753_s9 = int_to_ptr.vmem [resolvable:$false] %s1752_s9 }
  0x40   : > { %s1754_s27 = scalar_lea.vmem %s1753_s9, 128  ;;  %p1755_p11 = scmp.lt.s32.totalorder %s2028_s23, %s1753_s9 }
  0x41   : > { %p1750_p9 = pnand %p1748_p8, %p1734_p12  ;;  %p1756_p13 = scmp.lt.s32.totalorder %s1754_s27, %s1747_s28 }
  0x43   : > { %p1751_p10 = pneg %p1750_p9  ;;  %p1757_p2 = por %p1756_p13, %p1755_p11 }
  0x45   : > { %p1758_p3 = pnand %p1757_p2, %p1751_p10 }
  0x47   : > { %1761 = shalt.err (!%p1758_p3)
}
  0x48   : > { %s1868_s26 = smov 16   ;;  %s1869_s29 = smov 1  }
  0x49   : > { %1564 = dma.hbm_to_vmem [thread:$0]  (!%p2024_p7), %s2022_s20, 64, %s2028_s23, %s2030_s25, %s1868_s26, %s1868_s26, %s1869_s29  }
  0x4a   : > { %p2320_p12 = scmp.ne.s32.totalorder %s2317_s18, 0 }
  0x4b   : > { %s336_s30 = sand.u32 (!%p2320_p12), 1, %s1838_s10   ;;  %p2321_p0 = scmp.ne.s32.totalorder (!%p2320_p12), %s2316_s17, 0 }
  0x4c   : > { %334 = sbr.rel (%p2320_p12) target bundleno = 3803 (0xedb), region = 56  ;;  %s1428_s21 = sshll.u32 (!%p2320_p12), %s336_s30, 2 }
  0x4d   : > { %s337_s19 = scalar_lea.sflag (!%p2320_p12), [#allocation8], %s336_s30  ;;  %s340_s28 = scalar_lea.vmem (!%p2320_p12), [#allocation7], %s1428_s21 }
  0x53   : > { %1821 = dma.done.wait (%p2321_p0), %s337_s19, 64  }
  0x54   : > { %1823 = vsyncadd (%p2321_p0), %s337_s19, 4294967232  ;;  %p2322_p6 = scmp.ne.s32.totalorder %s2315_s16, 0 }
  0x56   : > { %1825 = dma.done.wait (%p2322_p6), [#allocation11], 128  }
  0x57   : > { %1827 = vsyncadd (%p2322_p6), [#allocation11], 4294967168  ;;  %p1430_p7 = scmp.ne.s32.totalorder %s1846_s12, 0 }
  0x58   : > { %vm380_vm0 = vcmask (!%p1430_p7), 253952   ;;  %vm382_vm1 = vcmask (!%p1430_p7), 254976   ;;  %v1870_v0 = vmov (!%p1430_p7), 0   ;;  %v1871_v1 = vmov (!%p1430_p7), 0.0  }
  0x59   : > { %379 = sbr.rel (%p1430_p7) target bundleno = 96 (0x60), region = 68  ;;  %381 = vst.msk [vmem:[#allocation2] sm:$0x1] (!%p1430_p7), %vm380_vm0, %v1870_v0 }
  0x5a   : > { %383 = vst.msk [vmem:[#allocation3] sm:$0x3] (!%p1430_p7), %vm382_vm1, %v1871_v1 }
  0x60 PF: > { %v1651_v2 = vld [vmem:[#allocation10] sm:$0xff]   ;;  %v406_v3 = vlaneseq  ;;  %v1872_v4 = vmov 0.0   ;;  %v384_v5 = vld [vmem:[%s340_s28] sm:$0x1]  ;;  %v385_v6 = vld [vmem:[%s340_s28 + $0x1] sm:$0x1] }
  0x61   : > { %1493 = vmatprep.subr.bf16.mxu0 %v1872_v4  ;;  %1499 = vmatprep.subr.bf16.mxu1 %v1872_v4  ;;  %vm1873_vm2 = vmmov 0   ;;  %v386_v7 = vld [vmem:[%s340_s28 + $0x2] sm:$0x1]  ;;  %v387_v8 = vld [vmem:[%s340_s28 + $0x3] sm:$0x1]  ;;  %v1652_v12 = vld [vmem:[%s2300_s2] sm:$0xff]   ;;  %v401_v13 = vcombine.low %v384_v5, %v385_v6 }
  0x62   : > { %1494 = vmatpush3.bf16.msra.mxu0 %v1651_v2  ;;  %1495 = vmatprep.mubr.msk.bf16.mxu0 %vm1873_vm2, %v1872_v4  ;;  %v1874_v9 = vmov 1966171168   ;;  %v2075_v11 = vshrl.u32 %v406_v3, 7  ;;  %v402_v14 = vcombine.low %v386_v7, %v387_v8  ;;  %v1653_v16 = vld [vmem:[%s2300_s2 + $0x8] sm:$0xff]   ;;  %vm525_vm3 = vcmask 261120   ;;  %s1876_s25 = smov 64  }
  0x63   : > { %v404_v10 = vunpack.c.l.s4 %v1874_v9  ;;  %1503 = vmatprep.mubr.msk.bf16.mxu1 %vm1873_vm2, %v1872_v4  ;;  %1507 = vmatprep.subr.bf16.mxu0 %v1872_v4  ;;  %v505_v18 = vld [vmem:[#allocation2] sm:$0x1]  ;;  %vm431_vm4 = vcmask 130048   ;;  %v1875_v23 = vmov 1983009808   ;;  %s1877_s9 = smov 32  }
  0x64   : > { %1500 = vmatpush3.bf16.msra.mxu1 %v1652_v12  ;;  %v478_v24 = vunpack.c.l.s4 %v1875_v23  ;;  %v1431_v27 = vld [vmem:[%s2301_s3] ss:$0 sm:$0xff]  ;;  %v506_v50 = vld [vmem:[#allocation3] sm:$0x3]  ;;  %v1655_v62 = vld [vmem:[%s2300_s2 + $0x8] sm:$0xff]   ;;  %s1438_s24 = sshll.u32 %s1846_s12, 2 }
  0x65   : > { %v405_v15 = vunpack.c.0.s8 %v404_v10  ;;  %1501 = vmatprep.subr.bf16.mxu1 %v1872_v4  ;;  %v1654_v61 = vld [vmem:[%s2300_s2] sm:$0xff]   ;;  %vm618_vm5 = vcmask 253952   ;;  %s617_s27 = scalar_lea.vmem [#allocation4], %s1438_s24  ;;  %vm955_vm6 = vcmask 254976   ;;  %s1878_s16 = smov 96   ;;  %vm1123_vm7 = vcmask 1041409  }
  0x66   : > { %v479_v25 = vunpack.c.0.s8 %v478_v24  ;;  %vm1125_vm8 = vcmask 1042434   ;;  %vm1127_vm9 = vcmask 1043459   ;;  %vm1131_vm10 = vcmask 11264   ;;  %s1130_s17 = scalar_lea.vmem [#allocation6], %s1438_s24  ;;  %p1462_p1 = scmp.ne.s32.totalorder %s1846_s12, 1 }
  0x67   : > { %v2088_v17 = vsub.s32 %v405_v15, %v2075_v11  ;;  %vm1153_vm11 = vcmask (!%p1462_p1), 15360   ;;  %s2225_s12 = smov (!%p1462_p1), 0  }
  0x68   : > { %1502 = vmatpush3.bf16.msra.mxu1 %v1653_v16  ;;  %v2103_v29 = vsub.s32 %v479_v25, %v2075_v11  ;;  %v1656_v25 = vld [vmem:[%s2300_s2] sm:$0xff]  }
  0x69   : > { %v409_v19 = vrot.slane %v401_v13, %v2088_v17  ;;  %v416_v20 = vrot.slane %v402_v14, %v2088_v17  ;;  %1515 = vmatprep.subr.bf16.mxu1 %v1872_v4 }
  0x6b   : > { %v417_v21 = vcombine.low %v409_v19, %v416_v20  ;;  %1504 = vmatmul.mubr.msk.bf16.vlgmr.msra.gmra.mrb[0].mxu1 %vm525_vm3, %v505_v18 }
  0x6c   : > { %1519 = vmatprep.mubr.msk.bf16.mxu1 %vm1873_vm2, %v1872_v4  ;;  %1516 = vmatpush3.bf16.msra.mxu1 %v1656_v25 }
  0x6d   : > { %v424_v22 = vrot.slane %v417_v21, %v2088_v17  ;;  %1517 = vmatprep.subr.bf16.mxu1 %v1872_v4 }
  0x6f   : > { %1496 = vmatmul.mubr.msk.bf16.vlgmr.msra.gmra.mrb[0].mxu0 %vm431_vm4, %v424_v22 }
  0x70   : > { %1511 = vmatprep.mubr.msk.bf16.mxu0 %vm1873_vm2, %v1872_v4  ;;  %1508 = vmatpush3.bf16.msra.mxu0 %v1654_v61 }
  0x71   : > { %1509 = vmatprep.subr.bf16.mxu0 %v1872_v4 }
  0x74   : > { %1510 = vmatpush3.bf16.msra.mxu0 %v1655_v62 }
  0x75   : > { %1523 = vmatprep.subr.bf16.mxu0 %v1872_v4 }
 0x13e   : > { %v563_v26 = vpop.f32.mrb[0].mxu1 }
 0x13f   : > { %v1505_v28 = vpop.f32.mrb[1].mxu1 }
 0x140   : > { %v566_v30 = vpop.f32.mrb[2].mxu1 }
 0x141   : > { %v1506_v32 = vpop.f32.mrb[3].mxu1 }
 0x142   : > { %v469_v31 = vpop.f32.mrb[0].mxu0 }
 0x143   : > { %v470_v33 = vadd.f32 %v1431_v27, %v469_v31  ;;  %v1497_v34 = vpop.f32.mrb[1].mxu0 }
 0x144   : > { %v472_v35 = vpop.f32.mrb[2].mxu0 }
 0x145   : > { %v476_v36 = vcombine.high %v470_v33, %v470_v33  ;;  %v483_v37 = vrot.slane %v470_v33, %v2103_v29  ;;  %v1498_v38 = vpop.f32.mrb[3].mxu0 }
 0x147   : > { %v490_v39 = vrot.slane %v476_v36, %v2103_v29  ;;  %v491_v40 = vcombine.high %v483_v37, %v483_v37  ;;  %v497_v41 = vpack.c.bf16 %v483_v37, %v483_v37 }
 0x149   : > { %v492_v42 = vcombine.high %v490_v39, %v490_v39  ;;  %v498_v43 = vpack.c.bf16 %v491_v40, %v491_v40  ;;  %v499_v44 = vpack.c.bf16 %v490_v39, %v490_v39  ;;  %501 = vst [vmem:[#allocation5] sm:$0x1] %v497_v41 }
 0x14b   : > { %v500_v45 = vpack.c.bf16 %v492_v42, %v492_v42  ;;  %502 = vst [vmem:[#allocation5 + $0x1] sm:$0x1] %v498_v43  ;;  %503 = vst [vmem:[#allocation5 + $0x2] sm:$0x1] %v499_v44 }
 0x14d   : > { %504 = vst [vmem:[#allocation5 + $0x3] sm:$0x1] %v500_v45 }
 0x150   : > { %v511_v46 = vld [vmem:[#allocation5] sm:$0x1] }
 0x151   : > { %v512_v47 = vunpack.c.l.bf16 %v511_v46 }
 0x152   : > { %v625_v6 = vld [vmem:[#allocation5 + $0x1] sm:$0x1]  ;;  %v735_v33 = vld [vmem:[#allocation5 + $0x2] sm:$0x1] }
 0x153   : > { %v564_v48 = vadd.f32 %v563_v26, %v512_v47  ;;  %v626_v7 = vunpack.c.l.bf16 %v625_v6  ;;  %v1657_v26 = vld [vmem:[%s2300_s2 + $0x8] sm:$0xff]   ;;  %v736_v34 = vunpack.c.l.bf16 %v735_v33 }
 0x154   : > { %1518 = vmatpush3.bf16.msra.mxu1 %v1657_v26 }
 0x155   : > { %1662 = vtanh.f32 %v564_v48  ;;  %v1437_v51 = vmul.f32 -1.442695, %v564_v48  ;;  %1531 = vmatprep.subr.bf16.mxu1 %v1872_v4 }
 0x157   : > { %1664 = vpow2.f32 %v1437_v51  ;;  %v1659_v51 = vld [vmem:[%s2300_s2 + $0x8] sm:$0xff]  }
 0x15f   : > { %v1663_v49 = vpop.eup %1662 }
 0x160   : > { %582 = vrot.lane.b32.xlu0 %v1663_v49, %s1876_s25 }
 0x161   : > { %v1665_v52 = vpop.eup %1664 }
 0x162   : > { %v572_v53 = vadd.f32 1.0, %v1665_v52 }
 0x164   : > { %577 = vrot.lane.b32.xlu0 %v506_v50, %s1877_s9  ;;  %1666 = vrcp.f32 %v572_v53  ;;  %v1658_v50 = vld [vmem:[%s2300_s2] sm:$0xff]  }
 0x16e   : > { %v1667_v54 = vpop.eup %1666 }
 0x1d2   : > { %v583_v55 = vpop.permute.xlu0 %582 }
 0x1d3   : > { %v585_v56 = vmul.f32 %v1667_v54, %v583_v55 }
 0x1d5   : > { %587 = vrot.lane.b32.xlu1 %v585_v56, %s1877_s9 }
 0x1d6   : > { %v578_v57 = vpop.permute.xlu0 %577 }
 0x1d7   : > { %v580_v58 = vmul.f32 %v1667_v54, %v578_v57  ;;  %v845_v57 = vld [vmem:[#allocation5 + $0x3] sm:$0x1] }
 0x247   : > { %v588_v59 = vpop.permute.xlu1 %587 }
 0x248   : > { %v590_v60 = vadd.f32 %v588_v59, %v580_v58  ;;  %v846_v58 = vunpack.c.l.bf16 %v845_v57 }
 0x24a   : > { %1668 = vtanh.f32 %v590_v60 }
 0x254   : > { %v1669_v63 = vpop.eup %1668 }
 0x255   : > { %593 = vrot.lane.b32.xlu1 %v1669_v63, %s1876_s25 }
 0x2c7   : > { %v594_v0 = vpop.permute.xlu1 %593 }
 0x2c8   : > { %v596_v1 = vmul.f32 %v1667_v54, %v594_v0 }
 0x2ca   : > { %v2119_v2 = vpack.c.bf16 %v596_v1, %v596_v1 }
 0x2cc   : > { %627 = vrot.lane.b32.xlu0 %v2119_v2, %s1877_s9 }
 0x33e   : > { %v628_v5 = vpop.permute.xlu0 %627 }
 0x33f   : > { %1512 = vmatmul.mubr.msk.bf16.vlgmr.msra.gmra.mrb[4].mxu0 %vm525_vm3, %v628_v5 }
 0x340   : > { %1527 = vmatprep.mubr.msk.bf16.mxu0 %vm1873_vm2, %v1872_v4  ;;  %1524 = vmatpush3.bf16.msra.mxu0 %v1658_v50 }
 0x341   : > { %1525 = vmatprep.subr.bf16.mxu0 %v1872_v4 }
 0x344   : > { %1526 = vmatpush3.bf16.msra.mxu0 %v1659_v51 }
 0x412   : > { %v678_v8 = vpop.f32.mrb[4].mxu0 }
 0x413   : > { %v679_v9 = vadd.f32 %v678_v8, %v626_v7  ;;  %v1513_v10 = vpop.f32.mrb[5].mxu0 }
 0x414   : > { %v681_v12 = vpop.f32.mrb[6].mxu0 }
 0x415   : > { %1670 = vtanh.f32 %v679_v9  ;;  %v1514_v13 = vpop.f32.mrb[7].mxu0  ;;  %v1442_v15 = vmul.f32 -1.442695, %v679_v9  ;;  %v606_v9 = vrot.slane %v2119_v2, %v2088_v17 }
 0x417   : > { %1672 = vpow2.f32 %v1442_v15  ;;  %v613_v13 = vrot.slane %v606_v9, %v2088_v17 }
 0x41f   : > { %v1671_v14 = vpop.eup %1670 }
 0x420   : > { %693 = vrot.lane.b32.xlu1 %v1671_v14, %s1876_s25 }
 0x421   : > { %v1673_v16 = vpop.eup %1672 }
 0x422   : > { %v687_v18 = vadd.f32 1.0, %v1673_v16 }
 0x424   : > { %1674 = vrcp.f32 %v687_v18 }
 0x42e   : > { %v1675_v19 = vpop.eup %1674 }
 0x42f   : > { %v691_v22 = vmul.f32 %v1675_v19, %v590_v60 }
 0x492   : > { %v694_v20 = vpop.permute.xlu1 %693 }
 0x493   : > { %v696_v21 = vmul.f32 %v1675_v19, %v694_v20 }
 0x495   : > { %698 = vrot.lane.b32.xlu0 %v696_v21, %s1877_s9 }
 0x507   : > { %v699_v23 = vpop.permute.xlu0 %698 }
 0x508   : > { %v701_v24 = vadd.f32 %v699_v23, %v691_v22  ;;  %v1660_v23 = vld [vmem:[%s2302_s4] sm:$0xff]  }
 0x50a   : > { %1676 = vtanh.f32 %v701_v24 }
 0x514   : > { %v1677_v27 = vpop.eup %1676 }
 0x515   : > { %704 = vrot.lane.b32.xlu1 %v1677_v27, %s1876_s25 }
 0x587   : > { %v705_v28 = vpop.permute.xlu1 %704 }
 0x588   : > { %v707_v30 = vmul.f32 %v1675_v19, %v705_v28 }
 0x58a   : > { %v2137_v31 = vpack.c.bf16 %v707_v30, %v707_v30 }
 0x58c   : > { %737 = vrot.lane.b32.xlu0 %v2137_v31, %s1877_s9  ;;  %v717_v20 = vrot.slane %v2137_v31, %v2088_v17 }
 0x58e   : > { %v724_v22 = vrot.slane %v717_v20, %v2088_v17 }
 0x5fe   : > { %v738_v32 = vpop.permute.xlu0 %737 }
 0x5ff   : > { %1520 = vmatmul.mubr.msk.bf16.vlgmr.msra.gmra.mrb[4].mxu1 %vm525_vm3, %v738_v32 }
 0x600   : > { %1535 = vmatprep.mubr.msk.bf16.mxu1 %vm1873_vm2, %v1872_v4  ;;  %1532 = vmatpush3.bf16.msra.mxu1 %v1660_v23 }
 0x601   : > { %1533 = vmatprep.subr.bf16.mxu1 %v1872_v4 }
 0x6d2   : > { %v788_v35 = vpop.f32.mrb[4].mxu1 }
 0x6d3   : > { %v789_v36 = vadd.f32 %v788_v35, %v736_v34  ;;  %v1521_v37 = vpop.f32.mrb[5].mxu1 }
 0x6d4   : > { %v791_v38 = vpop.f32.mrb[6].mxu1 }
 0x6d5   : > { %1678 = vtanh.f32 %v789_v36  ;;  %v1522_v39 = vpop.f32.mrb[7].mxu1  ;;  %v1448_v41 = vmul.f32 -1.442695, %v789_v36 }
 0x6d7   : > { %1680 = vpow2.f32 %v1448_v41 }
 0x6df   : > { %v1679_v40 = vpop.eup %1678 }
 0x6e0   : > { %803 = vrot.lane.b32.xlu1 %v1679_v40, %s1876_s25 }
 0x6e1   : > { %v1681_v42 = vpop.eup %1680 }
 0x6e2   : > { %v797_v43 = vadd.f32 1.0, %v1681_v42  ;;  %v1457_v42 = vld [vmem:[%s2303_s5] ss:$0 sm:$0xff] }
 0x6e4   : > { %1682 = vrcp.f32 %v797_v43 }
 0x6ee   : > { %v1683_v44 = vpop.eup %1682 }
 0x6ef   : > { %v801_v47 = vmul.f32 %v1683_v44, %v701_v24  ;;  %v1661_v24 = vld [vmem:[%s2302_s4 + $0x8] sm:$0xff]  }
 0x6f0   : > { %1534 = vmatpush3.bf16.msra.mxu1 %v1661_v24 }
 0x752   : > { %v804_v45 = vpop.permute.xlu1 %803 }
 0x753   : > { %v806_v46 = vmul.f32 %v1683_v44, %v804_v45 }
 0x755   : > { %808 = vrot.lane.b32.xlu0 %v806_v46, %s1877_s9 }
 0x7c7   : > { %v809_v48 = vpop.permute.xlu0 %808 }
 0x7c8   : > { %v811_v49 = vadd.f32 %v809_v48, %v801_v47 }
 0x7ca   : > { %1684 = vtanh.f32 %v811_v49 }
 0x7d4   : > { %v1685_v52 = vpop.eup %1684 }
 0x7d5   : > { %814 = vrot.lane.b32.xlu1 %v1685_v52, %s1876_s25 }
 0x847   : > { %v815_v53 = vpop.permute.xlu1 %814 }
 0x848   : > { %v817_v54 = vmul.f32 %v1683_v44, %v815_v53 }
 0x84a   : > { %v818_v55 = vpack.c.bf16 %v817_v54, %v817_v54 }
 0x84c   : > { %847 = vrot.lane.b32.xlu0 %v818_v55, %s1877_s9  ;;  %v827_v12 = vrot.slane %v818_v55, %v2088_v17 }
 0x84e   : > { %v834_v14 = vrot.slane %v827_v12, %v2088_v17 }
 0x8be   : > { %v848_v56 = vpop.permute.xlu0 %847 }
 0x8bf   : > { %1528 = vmatmul.mubr.msk.bf16.vlgmr.msra.gmra.mrb[8].mxu0 %vm525_vm3, %v848_v56 }
 0x992   : > { %v898_v59 = vpop.f32.mrb[8].mxu0 }
 0x993   : > { %v899_v60 = vadd.f32 %v898_v59, %v846_v58  ;;  %v1529_v61 = vpop.f32.mrb[9].mxu0 }
 0x994   : > { %v901_v62 = vpop.f32.mrb[10].mxu0 }
 0x995   : > { %1686 = vtanh.f32 %v899_v60  ;;  %v1530_v63 = vpop.f32.mrb[11].mxu0  ;;  %v1454_v1 = vmul.f32 -1.442695, %v899_v60 }
 0x997   : > { %1688 = vpow2.f32 %v1454_v1 }
 0x99f   : > { %v1687_v0 = vpop.eup %1686 }
 0x9a0   : > { %913 = vrot.lane.b32.xlu1 %v1687_v0, %s1876_s25 }
 0x9a1   : > { %v1689_v5 = vpop.eup %1688 }
 0x9a2   : > { %v907_v6 = vadd.f32 1.0, %v1689_v5 }
 0x9a4   : > { %1690 = vrcp.f32 %v907_v6 }
 0x9ae   : > { %v1691_v7 = vpop.eup %1690 }
 0x9af   : > { %v911_v15 = vmul.f32 %v1691_v7, %v811_v49  ;;  %v1461_v49 = vld [vmem:[%s2304_s6] ss:$0 sm:$0xff] }
 0xa12   : > { %v914_v8 = vpop.permute.xlu1 %913 }
 0xa13   : > { %v916_v10 = vmul.f32 %v1691_v7, %v914_v8 }
 0xa15   : > { %918 = vrot.lane.b32.xlu0 %v916_v10, %s1877_s9 }
 0xa19   : > { %614 = vrot.lane.b32.xlu0 %v613_v13, %s1877_s9 }
 0xa1d   : > { %835 = vrot.lane.b32.xlu0 %v834_v14, %s1877_s9 }
 0xa87   : > { %v919_v16 = vpop.permute.xlu0 %918 }
 0xa88   : > { %v2166_v18 = vadd.f32 %v919_v16, %v911_v15 }
 0xa8a   : > { %1692 = vtanh.f32 %v2166_v18 }
 0xa8b   : > { %v615_v2 = vpop.permute.xlu0 %614 }
 0xa8c   : > { %619 = vst.msk [vmem:[%s617_s27] sm:$0x1] %vm618_vm5, %v615_v2 }
 0xa8f   : > { %v836_v19 = vpop.permute.xlu0 %835 }
 0xa90   : > { %1450 = vst.msk [vmem:[%s617_s27 + $0x2] sm:$0x1] %vm618_vm5, %v836_v19 }
 0xa93   : > { %v957_v4 = vld [vmem:[%s617_s27] sm:$0x1] }
 0xa94   : > { %v1693_v21 = vpop.eup %1692 }
 0xa95   : > { %924 = vrot.lane.b32.xlu1 %v1693_v21, %s1876_s25 }
 0xa97   : > { %v959_v35 = vld [vmem:[%s617_s27 + $0x2] sm:$0x1] }
 0xa99   : > { %725 = vrot.lane.b32.xlu1 %v724_v22, %s1877_s9 }
 0xb07   : > { %v925_v25 = vpop.permute.xlu1 %924 }
 0xb08   : > { %v927_v26 = vmul.f32 %v1691_v7, %v925_v25 }
 0xb0a   : > { %v928_v27 = vpack.c.bf16 %v927_v26, %v927_v26 }
 0xb0b   : > { %v726_v28 = vpop.permute.xlu1 %725 }
 0xb0c   : > { %v937_v30 = vrot.slane %v928_v27, %v2088_v17  ;;  %1444 = vst.msk [vmem:[%s617_s27 + $0x1] sm:$0x1] %vm618_vm5, %v726_v28 }
 0xb0e   : > { %v944_v31 = vrot.slane %v937_v30, %v2088_v17 }
 0xb10   : > { %945 = vrot.lane.b32.xlu1 %v944_v31, %s1877_s9 }
 0xb13   : > { %v958_v33 = vld [vmem:[%s617_s27 + $0x1] sm:$0x1] }
 0xb14   : > { %v976_v34 = vcombine.low %v957_v4, %v958_v33 }
 0xb16   : > { %v984_v38 = vrot.slane %v976_v34, %v2088_v17 }
 0xb82   : > { %v946_v32 = vpop.permute.xlu1 %945 }
 0xb83   : > { %1456 = vst.msk [vmem:[%s617_s27 + $0x3] sm:$0x1] %vm618_vm5, %v946_v32  ;;  %950 = vst.msk [vmem:[#allocation2] sm:$0x1] %vm618_vm5, %v946_v32 }
 0xb8a   : > { %v960_v36 = vld [vmem:[%s617_s27 + $0x3] sm:$0x1] }
 0xb8b   : > { %v977_v37 = vcombine.low %v959_v35, %v960_v36 }
 0xb8d   : > { %v991_v39 = vrot.slane %v977_v37, %v2088_v17 }
 0xb8f   : > { %v992_v40 = vcombine.low %v984_v38, %v991_v39 }
 0xb91   : > { %v999_v41 = vrot.slane %v992_v40, %v2088_v17 }
 0xb93   : > { %1536 = vmatmul.mubr.msk.bf16.vlgmr.msra.gmra.mrb[8].mxu1 %vm525_vm3, %v999_v41 }
 0xc66   : > { %v1049_v43 = vpop.f32.mrb[8].mxu1 }
 0xc67   : > { %v1050_v44 = vadd.f32 %v1457_v42, %v1049_v43  ;;  %v1537_v45 = vpop.f32.mrb[9].mxu1 }
 0xc68   : > { %v1052_v46 = vpop.f32.mrb[10].mxu1 }
 0xc69   : > { %1694 = vtanh.f32 %v1050_v44  ;;  %v1538_v47 = vpop.f32.mrb[11].mxu1 }
 0xc73   : > { %v1695_v48 = vpop.eup %1694 }
 0xc74   : > { %v1064_v50 = vrot.slane %v1695_v48, %v2103_v29  ;;  %v1057_v17 = vcombine.high %v1695_v48, %v1695_v48 }
 0xc76   : > { %v1085_v51 = vmul.f32 %v1461_v49, %v1064_v50  ;;  %v1072_v52 = vcombine.high %v1064_v50, %v1064_v50  ;;  %v1071_v53 = vrot.slane %v1057_v17, %v2103_v29  ;;  %v1106_v29 = vand.u32 127, %v406_v3 }
 0xc78   : > { %v1089_v54 = vsel %vm955_vm6, %v1085_v51, 0.0  ;;  %v1086_v55 = vmul.f32 %v1461_v49, %v1072_v52  ;;  %v1087_v56 = vmul.f32 %v1461_v49, %v1071_v53  ;;  %v1073_v57 = vcombine.high %v1071_v53, %v1071_v53 }
 0xc79   : > { %1090 = vadd.xlane.f32.xlu0 %v1089_v54  ;;  %v1109_v63 = vsub.s32 %v1106_v29, %v2075_v11 }
 0xc7a   : > { %v1092_v58 = vsel %vm955_vm6, %v1086_v55, 0.0  ;;  %v1095_v59 = vsel %vm955_vm6, %v1087_v56, 0.0  ;;  %v1088_v60 = vmul.f32 %v1461_v49, %v1073_v57 }
 0xc7b   : > { %1093 = vadd.xlane.f32.xlu1 %v1092_v58  ;;  %v1856_v58 = vmov (!%p1462_p1), 0.0  }
 0xc7c   : > { %v1098_v61 = vsel %vm955_vm6, %v1088_v60, 0.0 }
 0xc7d   : > { %1096 = vadd.xlane.f32.xlu0 %v1095_v59 }
 0xc81   : > { %1099 = vadd.xlane.f32.xlu0 %v1098_v61 }
 0xc8c   : > { %952 = vrot.lane.b32.xlu1 %v2166_v18, %s1878_s16 }
 0xd06   : > { %v1091_v62 = vpop.xlane.xlu0 %1090 }
 0xd07   : > { %v1110_v6 = vrot.slane %v1091_v62, %v1109_v63 }
 0xd08   : > { %v1094_v0 = vpop.xlane.xlu1 %1093 }
 0xd09   : > { %v1114_v1 = vrot.slane %v1094_v0, %v1109_v63 }
 0xd0a   : > { %v1097_v5 = vpop.xlane.xlu0 %1096 }
 0xd0b   : > { %v1118_v7 = vrot.slane %v1097_v5, %v1109_v63  ;;  %v1124_v9 = vsel %vm1123_vm7, %v1114_v1, %v1110_v6 }
 0xd0c   : > { %v953_v8 = vpop.permute.xlu1 %952  ;;  %1136 = sbr.rel (%p1462_p1) target bundleno = 3772 (0xebc), region = 72 }
 0xd0d   : > { %956 = vst.msk [vmem:[#allocation3] sm:$0x3] %vm955_vm6, %v953_v8  ;;  %v1126_v3 = vsel %vm1125_vm8, %v1118_v7, %v1124_v9 }
 0xd0e   : > { %v1100_v10 = vpop.xlane.xlu0 %1099 }
 0xd0f   : > { %v1122_v12 = vrot.slane %v1100_v10, %v1109_v63 }
 0xd11   : > { %v1128_v13 = vsel %vm1127_vm9, %v1122_v12, %v1126_v3 }
 0xd12   : > { %1132 = vst.msk [vmem:[%s1130_s17] sm:$0xf] %vm1131_vm10, %v1128_v13 }
 0xd19   : > { %v1137_v14 = vld [vmem:[#allocation6] sm:$0xf]  ;;  %v1138_v15 = vld [vmem:[#allocation6 + $0x4] sm:$0xf] }
 0xd1a   : > { %v1139_v16 = vsel %vm1131_vm10, %v1137_v14, -inf  ;;  %v1146_v18 = vsel %vm1131_vm10, %v1138_v15, -inf }
 0xd1b   : > { %v1140_v2 = vrot.slane %v1139_v16, 4  ;;  %v1147_v19 = vrot.slane %v1146_v18, 4 }
 0xd1d   : > { %v1141_v20 = vmax.f32 %v1139_v16, %v1140_v2  ;;  %v1148_v21 = vmax.f32 %v1146_v18, %v1147_v19 }
 0xd1f   : > { %v1142_v22 = vrot.slane %v1141_v20, 2  ;;  %v1149_v23 = vrot.slane %v1148_v21, 2 }
 0xd21   : > { %v1143_v24 = vmax.f32 %v1141_v20, %v1142_v22  ;;  %v1150_v25 = vmax.f32 %v1148_v21, %v1149_v23 }
 0xd23   : > { %v1144_v26 = vrot.slane %v1143_v24, 1  ;;  %v1151_v27 = vrot.slane %v1150_v25, 1 }
 0xd25   : > { %v1145_v28 = vmax.f32 %v1143_v24, %v1144_v26  ;;  %v1152_v30 = vmax.f32 %v1150_v25, %v1151_v27 }
 0xd27   : > { %v1154_v31 = vsel %vm1153_vm11, %v1145_v28, -inf  ;;  %v1155_v32 = vsel %vm1153_vm11, %v1152_v30, -inf }
 0xd28   : > { %v1156_v33 = vmax.f32 %v1154_v31, %v1155_v32 }
 0xd2a   : > { %v1157_v4 = vsub.f32 %v1137_v14, %v1156_v33  ;;  %v1158_v34 = vsub.f32 %v1138_v15, %v1156_v33 }
 0xd2c   : > { %v1159_v35 = vmul.f32 1.442695, %v1157_v4  ;;  %v1161_v36 = vmul.f32 1.442695, %v1158_v34 }
 0xd2e   : > { %1696 = vpow2.f32 %v1159_v35 }
 0xd2f   : > { %1698 = vpow2.f32 %v1161_v36 }
 0xd38   : > { %v1697_v37 = vpop.eup %1696 }
 0xd39   : > { %v1699_v38 = vpop.eup %1698  ;;  %v1163_v39 = vsel %vm1131_vm10, %v1697_v37, 0.0 }
 0xd3a   : > { %v1164_v40 = vrot.slane %v1163_v39, 4  ;;  %v1170_v41 = vsel %vm1131_vm10, %v1699_v38, 0.0 }
 0xd3b   : > { %v1171_v42 = vrot.slane %v1170_v41, 4 }
 0xd3c   : > { %v1165_v43 = vadd.f32 %v1164_v40, %v1163_v39 }
 0xd3d   : > { %v1172_v44 = vadd.f32 %v1171_v42, %v1170_v41 }
 0xd3e   : > { %v1166_v45 = vrot.slane %v1165_v43, 2 }
 0xd3f   : > { %v1173_v46 = vrot.slane %v1172_v44, 2 }
 0xd40   : > { %v1167_v47 = vadd.f32 %v1166_v45, %v1165_v43 }
 0xd41   : > { %v1174_v48 = vadd.f32 %v1173_v46, %v1172_v44 }
 0xd42   : > { %v1168_v49 = vrot.slane %v1167_v47, 1 }
 0xd43   : > { %v1175_v50 = vrot.slane %v1174_v48, 1 }
 0xd44   : > { %v1169_v17 = vadd.f32 %v1168_v49, %v1167_v47 }
 0xd45   : > { %v1176_v51 = vadd.f32 %v1175_v50, %v1174_v48 }
 0xd46   : > { %v1177_v52 = vsel %vm1153_vm11, %v1169_v17, 0.0 }
 0xd47   : > { %v1178_v53 = vsel %vm1153_vm11, %v1176_v51, 0.0 }
 0xd48   : > { %v1179_v54 = vadd.f32 %v1178_v53, %v1177_v52 }
 0xd4a   : > { %1700 = vrcp.f32 %v1179_v54 }
 0xd54   : > { %v1701_v55 = vpop.eup %1700 }
 0xd55   : > { %v1181_v56 = vmul.f32 %v1701_v55, %v1697_v37  ;;  %v1182_v57 = vmul.f32 %v1701_v55, %v1699_v38 }
 0xd57   : > { %1183 = vst.msk [vmem:[#allocation6] sm:$0xf] %vm1131_vm10, %v1181_v56  ;;  %1184 = vst.msk [vmem:[#allocation6 + $0x4] sm:$0xf] %vm1131_vm10, %v1182_v57 }
 0xd58 LB: >> { %v1206_v59 = vsub.s32 0, %v2075_v11  ;;  %v1220_v60 = vsub.s32 2, %v2075_v11  ;;  %s1463_s18 = sshll.u32 %s1862_s12, 2  ;;  %v1213_v61 = vsub.s32 1, %v2075_v11  ;;  %v1227_v29 = vsub.s32 3, %v2075_v11  ;;  %s1190_s12 = sadd.s32 1, %s1862_s12   ;;  %s1862_s12 = sphi %s2225_s12, %s1190_s12   ;;  %v1858_v58 = vphi %v1856_v58, %v1857_v58  }
 0xd59   : >> { %s1193_s20 = scalar_lea.vmem [#allocation6], %s1463_s18  ;;  %s1195_s23 = scalar_lea.vmem [#allocation4], %s1463_s18 }
 0xd5a   : >> { %v1196_v6 = vld [vmem:[%s1195_s23] sm:$0x1]  ;;  %v1198_v7 = vld [vmem:[%s1195_s23 + $0x2] sm:$0x1]  ;;  %v1197_v8 = vld [vmem:[%s1195_s23 + $0x1] sm:$0x1] }
 0xd5b   : >> { %v1199_v9 = vld [vmem:[%s1195_s23 + $0x3] sm:$0x1]  ;;  %v1200_v10 = vunpack.c.l.bf16 %v1196_v6  ;;  %v1202_v13 = vunpack.c.l.bf16 %v1198_v7  ;;  %v1201_v14 = vunpack.c.l.bf16 %v1197_v8  ;;  %p1187_p4 = scmp.ge.s32.totalorder %s1190_s12, 2  }
 0xd5c   : >> { %v1203_v15 = vunpack.c.l.bf16 %v1199_v9  ;;  %v1702_v31 = vld [vmem:[%s2305_s7] sm:$0xff] (%p1187_p4)   ;;  %v1879_v32 = vmov (%p1187_p4), 0.0   ;;  %v1703_v33 = vld [vmem:[%s2305_s7 + $0x8] sm:$0xff] (%p1187_p4)   ;;  %vm1880_vm12 = vmmov (%p1187_p4), 0   ;;  %vm1311_vm13 = vcmask (%p1187_p4), 58368  }
 0xd5d   : > { %1539 = vmatprep.subr.bf16.mxu0 (%p1187_p4), %v1879_v32  ;;  %1543 = vmatprep.mubr.msk.bf16.mxu0 (%p1187_p4), %vm1880_vm12, %v1879_v32  ;;  %v1464_v11 = vld [vmem:[%s2306_s8] ss:$0 sm:$0xff] (%p1187_p4) }
 0xd5e   : >> { %v1194_v62 = vld [vmem:[%s1193_s20] sm:$0xf]  ;;  %1540 = vmatpush3.bf16.msra.mxu0 (%p1187_p4), %v1702_v31 }
 0xd5f   : >> { %v1207_v63 = vrot.slane %v1194_v62, %v1206_v59  ;;  %v1221_v0 = vrot.slane %v1194_v62, %v1220_v60  ;;  %v1214_v1 = vrot.slane %v1194_v62, %v1213_v61  ;;  %v1228_v5 = vrot.slane %v1194_v62, %v1227_v29  ;;  %1541 = vmatprep.subr.bf16.mxu0 (%p1187_p4), %v1879_v32 }
 0xd61   : >> { %1209 = vbcast.lane.b32.xlu0 %v1207_v63, 256  ;;  %1223 = vbcast.lane.b32.xlu1 %v1221_v0, 256 }
 0xd62   : > { %1542 = vmatpush3.bf16.msra.mxu0 (%p1187_p4), %v1703_v33 }
 0xd65   : >> { %1216 = vbcast.lane.b32.xlu0 %v1214_v1, 256  ;;  %1230 = vbcast.lane.b32.xlu1 %v1228_v5, 256 }
 0xdd3   : >> { %v1210_v12 = vpop.permute.xlu0 %1209  ;;  %v1224_v3 = vpop.permute.xlu1 %1223 }
 0xdd4   : >> { %v1232_v16 = vmul.f32 %v1210_v12, %v1200_v10  ;;  %v1234_v19 = vmul.f32 %v1224_v3, %v1202_v13 }
 0xdd6   : >> { %v1236_v22 = vsel %vm955_vm6, %v1232_v16, 0.0  ;;  %v1239_v25 = vsel %vm955_vm6, %v1234_v19, 0.0 }
 0xdd7   : >> { %v1217_v18 = vpop.permute.xlu0 %1216  ;;  %v1231_v2 = vpop.permute.xlu1 %1230 }
 0xdd8   : >> { %v1233_v20 = vmul.f32 %v1217_v18, %v1201_v14  ;;  %v1235_v21 = vmul.f32 %v1231_v2, %v1203_v15 }
 0xdda   : >> { %v1237_v23 = vsel %vm955_vm6, %v1233_v20, 0.0  ;;  %v1241_v26 = vsel %vm955_vm6, %v1235_v21, 0.0 }
 0xddb   : >> { %v1238_v24 = vadd.f32 %v1237_v23, %v1236_v22 }
 0xddd   : >> { %v1240_v27 = vadd.f32 %v1239_v25, %v1238_v24  ;;  %1189 = sbr.rel (!%p1187_p4) target bundleno = 3416 (0xd58), region = 123 }
 0xddf   : >> { %v1242_v28 = vadd.f32 %v1241_v26, %v1240_v27 }
 0xde1   : >> { %v1243_v30 = vadd.f32 %v1858_v58, %v1242_v28  }
 0xde3   : >> { %v1857_v58 = vmov %v1243_v30   ;;  %v1244_v4 = vpack.c.bf16 (%p1187_p4), %v1243_v30, %v1243_v30 }
 0xde5   : > { %1544 = vmatmul.mubr.msk.bf16.vlgmr.msra.gmra.mrb[0].mxu0 %vm525_vm3, %v1244_v4 }
 0xeb8   : > { %v1305_v34 = vpop.f32.mrb[0].mxu0 }
 0xeb9   : > { %v1306_v35 = vadd.f32 %v1464_v11, %v1305_v34  ;;  %v1545_v36 = vpop.f32.mrb[1].mxu0 }
 0xeba   : > { %v1308_v37 = vpop.f32.mrb[2].mxu0 }
 0xebb   : > { %1312 = vst.msk [vmem:[#allocation12] sm:$0x3] %vm1311_vm13, %v1306_v35  ;;  %v1546_v38 = vpop.f32.mrb[3].mxu0 }
 0xebc PF: > { %s2323_s25 = sadd.s32 4294967295, %s1854_s14   ;;  %s1881_s19 = smov [#allocation12]  }
 0xebd   : > { %p2254_p5 = scmp.eq.s32.totalorder %s2323_s25, 1  ;;  %s1322_s28 = sshll.u32 %s1881_s19, 4  ;;  %s1323_s28 = int_to_ptr.vmem [resolvable:$true] %s1322_s28 }
 0xebe   : > { %s1762_s16 = scalar_lea.vmem %s1323_s28, 32  ;;  %p1769_p11 = scmp.lt.s32.totalorder %s1323_s28, %s1323_s28 }
 0xebf   : > { %p1763_p8 = scmp.ne.s32.totalorder %s1323_s28, %s1762_s16  ;;  %p1770_p13 = scmp.lt.s32.totalorder %s1762_s16, %s1762_s16 }
 0xec1   : > { %p1764_p9 = pnand %p1763_p8, %p2254_p5  ;;  %p1771_p2 = por %p1770_p13, %p1769_p11 }
 0xec3   : > { %p1765_p10 = pneg %p1764_p9 }
 0xec5   : > { %p1772_p3 = pnand %p1771_p2, %p1765_p10 }
 0xec7   : > { %1775 = shalt.err (!%p1772_p3)
}
 0xec8   : > { %s2325_s18 = sld [smem:[#allocation16_spill]] }
 0xece   : > { %s1776_s20 = scalar_lea.hbm %s2325_s18, 32 }
 0xecf   : > { %p1777_p12 = scmp.ne.s32.totalorder %s2325_s18, %s1776_s20  ;;  %p1782_p7 = scmp.lt.u32.totalorder %s1776_s20, %s2325_s18 }
 0xed1   : > { %p1778_p0 = pnand %p1777_p12, %p2254_p5 }
 0xed3   : > { %p1779_p6 = pneg %p1778_p0 }
 0xed5   : > { %p1784_p1 = pnand %p1782_p7, %p1779_p6 }
 0xed7   : > { %1787 = shalt.err (!%p1784_p1)
}
 0xed8   : > { %1554 = dma.vmem_to_hbm [thread:$0]  (%p2254_p5), %s1323_s28, 32, %s2325_s18, [#allocation9]  }
 0xed9   : > { %1829 = dma.done.wait (%p2254_p5), [#allocation9], 32  }
 0xeda   : > { %1831 = vsyncadd (%p2254_p5), [#allocation9], 4294967264 }
 0xedb PF: > { %s24_s14 = sadd.s32 1, %s1854_s14   ;;  %s2326_s30 = smov %s1838_s10 }
 0xedc   : > { %p21_p4 = scmp.ge.s32.totalorder %s24_s14, 4   ;;  %s2327_s10 = smov %s1842_s11 }
 0xedd   : > { %s2328_s11 = smov %s2017_s15  ;;  %s2329_s12 = smov %s1850_s13 }
 0xede   : > { %s2330_s13 = smov %s2332_s22  ;;  %23 = sbr.rel (!%p21_p4) target bundleno = 8 (0x8), region = 134 }
 0xee5   :  { %1335 = vsyncpa [#allocation8], 1 }
 0xee6   :  { %1337 = vsyncpa [#allocation8 + $0x1], 1 }
 0xee7   :  { %1338 = vsyncpa [#allocation11], 1 }
 0xee8   :  { %1339 = vsyncpa [#allocation9], 1 }
 0xee9   :  { %1341 = vsyncpa [#allocation9 + $0x1], 1 }

// kernel: tpu_custom_call.1
= control target key start
LH: loop header
LB: loop body
LE: loop exit
PB: predicated region body
PF: predicated region fallthrough
CT: control target
= control target key end

     0   :  { %s2298_s0 = inlined_call_operand.hbm [shape: bf16[8,2,16], index: 0, kind: input, shape index: {}]   ;;  %s2299_s1 = inlined_call_operand.hbm [shape: bf16[16,128], index: 1, kind: input, shape index: {}]   ;;  %s2300_s2 = inlined_call_operand.vmem [shape: bf16[32,128], index: 2, kind: input, shape index: {}]   ;;  %s2301_s3 = inlined_call_operand.vmem [shape: f32[1,128], index: 3, kind: input, shape index: {}]   ;;  %s2302_s4 = inlined_call_operand.vmem [shape: bf16[32,32], index: 4, kind: input, shape index: {}]   ;;  %s2303_s5 = inlined_call_operand.vmem [shape: f32[1,32], index: 5, kind: input, shape index: {}]   ;;  %s2304_s6 = inlined_call_operand.vmem [shape: f32[1,32], index: 6, kind: input, shape index: {}]   ;;  %s2305_s7 = inlined_call_operand.vmem [shape: bf16[32,8], index: 7, kind: input, shape index: {}]   ;;  %s2306_s8 = inlined_call_operand.vmem [shape: f32[1,8], index: 8, kind: input, shape index: {}]   ;;  %s2307_s9 = inlined_call_operand.hbm [shape: f32[2,8], index: 9, kind: output, shape index: {}]  }
   0x1   :  { %2314 = sst [smem:[#allocation16_spill]] %s2307_s9 }
   0x2   :  { %14 = vsyncpa [#allocation8], 0 }
   0x3   :  { %16 = vsyncpa [#allocation8 + $0x1], 0 }
   0x4   :  { %17 = vsyncpa [#allocation11], 0 }
   0x5   :  { %18 = vsyncpa [#allocation9], 0  ;;  %s1932_s30 = smov 0   ;;  %s1934_s10 = smov 0  }
   0x6   :  { %s1936_s11 = smov 0   ;;  %s1938_s12 = smov 0  }
   0x7   :  { %s1940_s13 = smov 0   ;;  %s1942_s14 = smov 0  }
   0x8 LB: > { %s2312_s15 = sadd.s32 4294967295, %s1854_s14   ;;  %p58_p0 = scmp.ne.s32.totalorder %s1838_s10, %s1834_s30  ;;  %s1854_s14 = sphi %s1942_s14, %s24_s14   ;;  %s1850_s13 = sphi %s1940_s13, %s2330_s13   ;;  %s1846_s12 = sphi %s1938_s12, %s2329_s12   ;;  %s1842_s11 = sphi %s1936_s11, %s2328_s11   ;;  %s1838_s10 = sphi %s1934_s10, %s2327_s10   ;;  %s1834_s30 = sphi %s1932_s30, %s2326_s30  }
   0x9   : > { %p1964_p1 = scmp.eq.s32.totalorder %s2312_s15, 0  ;;  %p1421_p2 = scmp.ge.s32.totalorder %s1854_s14, 1 }
   0xa   : > { %p263_p3 = scmp.lt.s32.totalorder %s1854_s14, 3  ;;  %s1864_s19 = smov [#allocation10]  }
   0xb   : > { %s2315_s16 = scalar_select %p1964_p1, 1, 0 }
   0xc   : > { %p1972_p4 = por %p1964_p1, %p58_p0  ;;  %p1976_p5 = pnand %p1421_p2, %p263_p3 }
   0xd   : > { %s275_s20 = sshll.u32 %s1864_s19, 4  ;;  %s33_s22 = sadd.s32 1, %s1850_s13  ;;  %s276_s20 = int_to_ptr.vmem [resolvable:$true] %s275_s20 }
   0xe   : > { %s2316_s17 = scalar_select %p1972_p4, 1, 0 }
   0xf   : > { %s2317_s18 = scalar_select %p1976_p5, 1, 0 }
  0x10   : > { %p1557_p6 = pneg %p1976_p5  ;;  %s1704_s25 = scalar_lea.hbm %s2299_s1, 128 }
  0x11   : > { %p1705_p8 = scmp.ne.s32.totalorder %s2299_s1, %s1704_s25  ;;  %p1711_p12 = scmp.lt.u32.totalorder %s1704_s25, %s2299_s1 }
  0x12   : > { %p1984_p7 = pnand %p1557_p6, %p1964_p1 }
  0x14   : > { %p1706_p9 = pneg %p1984_p7 }
  0x16   : > { %p1707_p10 = pnand %p1706_p9, %p1705_p8 }
  0x18   : > { %p1708_p11 = pneg %p1707_p10 }
  0x1a   : > { %p1713_p13 = pnand %p1711_p12, %p1708_p11 }
  0x1c   : > { %1716 = shalt.err (!%p1713_p13)
}
  0x1d   : > { %s1717_s30 = scalar_lea.vmem %s276_s20, 128  ;;  %p1725_p6 = scmp.lt.s32.totalorder %s276_s20, %s276_s20 }
  0x1e   : > { %p1718_p0 = scmp.ne.s32.totalorder %s276_s20, %s1717_s30  ;;  %p1726_p1 = scmp.lt.s32.totalorder %s1717_s30, %s1717_s30 }
  0x20   : > { %p1720_p2 = pnand %p1718_p0, %p1706_p9  ;;  %p1727_p4 = por %p1726_p1, %p1725_p6 }
  0x22   : > { %p1721_p3 = pneg %p1720_p2 }
  0x24   : > { %p1728_p5 = pnand %p1727_p4, %p1721_p3 }
  0x26   : > { %1731 = shalt.err (!%p1728_p5)
}
  0x27   : > { %s1865_s19 = smov 64   ;;  %s1866_s23 = smov 4  }
  0x28   : > { %1560 = dma.hbm_to_vmem [thread:$0]  (!%p1984_p7), %s2299_s1, 128, %s276_s20, [#allocation11], %s1865_s19, %s1865_s19, %s1866_s23  }
  0x29   : > { %p34_p1 = scmp.ge.s32.totalorder %s33_s22, 2  ;;  %s45_s26 = sadd.s32 1, %s1842_s11 }
  0x2a   : > { %p52_p4 = scmp.ne.s32.totalorder %s1842_s11, %s1838_s10  ;;  %p53_p5 = scmp.eq.s32.totalorder %s1854_s14, 0 }
  0x2b   : > { %s2332_s22 = smov (%p34_p1, %s33_s22), 0  ;;  %p1566_p9 = scmp.lt.s32.totalorder %s1854_s14, 2 }
  0x2c   : > { %p54_p8 = por %p53_p5, %p52_p4  ;;  %s40_s27 = ssub.s32 %s1850_s13, %s2332_s22 }
  0x2d   : > { %s310_s28 = sand.u32 1, %s1842_s11   ;;  %p43_p10 = scmp.eq.s32.totalorder %s40_s27, 0 }
  0x2e   : > { %s1424_s29 = sshll.u32 %s310_s28, 2  ;;  %s1472_s30 = sshll.u32 %s1850_s13, 6 }
  0x2f   : > { %s2017_s15 = scalar_select %p43_p10, %s1842_s11, %s45_s26  }
  0x30   : > { %s2022_s20 = scalar_lea.hbm %s2298_s0, %s1472_s30  ;;  %s314_s19 = scalar_lea.vmem [#allocation7], %s1424_s29 }
  0x31   : > { %s322_s23 = sshll.u32 %s314_s19, 4  ;;  %p2024_p7 = pnand %p1566_p9, %p54_p8  ;;  %s2028_s23 = int_to_ptr.vmem [resolvable:$true] %s322_s23 }
  0x32   : > { %s2030_s25 = scalar_lea.sflag [#allocation8], %s310_s28  ;;  %s1732_s26 = scalar_lea.hbm %s2022_s20, 64 }
  0x33   : > { %p1733_p11 = scmp.ne.s32.totalorder %s2022_s20, %s1732_s26  ;;  %p1734_p12 = pneg %p2024_p7 }
  0x34   : > { %s1737_s29 = scalar_lea.hbm %s2298_s0, 128  ;;  %p1738_p2 = scmp.lt.u32.totalorder %s2022_s20, %s2298_s0 }
  0x35   : > { %p1735_p13 = pnand %p1734_p12, %p1733_p11  ;;  %p1739_p3 = scmp.lt.u32.totalorder %s1737_s29, %s1732_s26 }
  0x36   : > { %p1741_p1 = scmp.lt.u32.totalorder %s1732_s26, %s2022_s20 }
  0x37   : > { %p1736_p0 = pneg %p1735_p13  ;;  %p1740_p6 = por %p1739_p3, %p1738_p2 }
  0x39   : > { %p1742_p4 = por %p1741_p1, %p1740_p6 }
  0x3b   : > { %p1743_p5 = pnand %p1742_p4, %p1736_p0 }
  0x3d   : > { %1746 = shalt.err (!%p1743_p5)
}
  0x3e   : > { %s1747_s28 = scalar_lea.vmem %s2028_s23, 64  ;;  %s1867_s19 = smov [#allocation7]  }
  0x3f   : > { %p1748_p8 = scmp.ne.s32.totalorder %s2028_s23, %s1747_s28  ;;  %s1752_s9 = sshll.u32 %s1867_s19, 4  ;;  %s1753_s9 = int_to_ptr.vmem [resolvable:$false] %s1752_s9 }
  0x40   : > { %s1754_s27 = scalar_lea.vmem %s1753_s9, 128  ;;  %p1755_p11 = scmp.lt.s32.totalorder %s2028_s23, %s1753_s9 }
  0x41   : > { %p1750_p9 = pnand %p1748_p8, %p1734_p12  ;;  %p1756_p13 = scmp.lt.s32.totalorder %s1754_s27, %s1747_s28 }
  0x43   : > { %p1751_p10 = pneg %p1750_p9  ;;  %p1757_p2 = por %p1756_p13, %p1755_p11 }
  0x45   : > { %p1758_p3 = pnand %p1757_p2, %p1751_p10 }
  0x47   : > { %1761 = shalt.err (!%p1758_p3)
}
  0x48   : > { %s1868_s26 = smov 16   ;;  %s1869_s29 = smov 1  }
  0x49   : > { %1564 = dma.hbm_to_vmem [thread:$0]  (!%p2024_p7), %s2022_s20, 64, %s2028_s23, %s2030_s25, %s1868_s26, %s1868_s26, %s1869_s29  }
  0x4a   : > { %p2320_p12 = scmp.ne.s32.totalorder %s2317_s18, 0 }
  0x4b   : > { %s336_s30 = sand.u32 (!%p2320_p12), 1, %s1838_s10   ;;  %p2321_p0 = scmp.ne.s32.totalorder (!%p2320_p12), %s2316_s17, 0 }
  0x4c   : > { %334 = sbr.rel (%p2320_p12) target bundleno = 3803 (0xedb), region = 56  ;;  %s1428_s21 = sshll.u32 (!%p2320_p12), %s336_s30, 2 }
  0x4d   : > { %s337_s19 = scalar_lea.sflag (!%p2320_p12), [#allocation8], %s336_s30  ;;  %s340_s28 = scalar_lea.vmem (!%p2320_p12), [#allocation7], %s1428_s21 }
  0x53   : > { %1821 = dma.done.wait (%p2321_p0), %s337_s19, 64  }
  0x54   : > { %1823 = vsyncadd (%p2321_p0), %s337_s19, 4294967232  ;;  %p2322_p6 = scmp.ne.s32.totalorder %s2315_s16, 0 }
  0x56   : > { %1825 = dma.done.wait (%p2322_p6), [#allocation11], 128  }
  0x57   : > { %1827 = vsyncadd (%p2322_p6), [#allocation11], 4294967168  ;;  %p1430_p7 = scmp.ne.s32.totalorder %s1846_s12, 0 }
  0x58   : > { %vm380_vm0 = vcmask (!%p1430_p7), 253952   ;;  %vm382_vm1 = vcmask (!%p1430_p7), 254976   ;;  %v1870_v0 = vmov (!%p1430_p7), 0   ;;  %v1871_v1 = vmov (!%p1430_p7), 0.0  }
  0x59   : > { %379 = sbr.rel (%p1430_p7) target bundleno = 96 (0x60), region = 68  ;;  %381 = vst.msk [vmem:[#allocation2] sm:$0x1] (!%p1430_p7), %vm380_vm0, %v1870_v0 }
  0x5a   : > { %383 = vst.msk [vmem:[#allocation3] sm:$0x3] (!%p1430_p7), %vm382_vm1, %v1871_v1 }
  0x60 PF: > { %v1651_v2 = vld [vmem:[#allocation10] sm:$0xff]   ;;  %v406_v3 = vlaneseq  ;;  %v1872_v4 = vmov 0.0   ;;  %v384_v5 = vld [vmem:[%s340_s28] sm:$0x1]  ;;  %v385_v6 = vld [vmem:[%s340_s28 + $0x1] sm:$0x1] }
  0x61   : > { %1493 = vmatprep.subr.bf16.mxu0 %v1872_v4  ;;  %1499 = vmatprep.subr.bf16.mxu1 %v1872_v4  ;;  %vm1873_vm2 = vmmov 0   ;;  %v386_v7 = vld [vmem:[%s340_s28 + $0x2] sm:$0x1]  ;;  %v387_v8 = vld [vmem:[%s340_s28 + $0x3] sm:$0x1]  ;;  %v1652_v12 = vld [vmem:[%s2300_s2] sm:$0xff]   ;;  %v401_v13 = vcombine.low %v384_v5, %v385_v6 }
  0x62   : > { %1494 = vmatpush3.bf16.msra.mxu0 %v1651_v2  ;;  %1495 = vmatprep.mubr.msk.bf16.mxu0 %vm1873_vm2, %v1872_v4  ;;  %v1874_v9 = vmov 1966171168   ;;  %v2075_v11 = vshrl.u32 %v406_v3, 7  ;;  %v402_v14 = vcombine.low %v386_v7, %v387_v8  ;;  %v1653_v16 = vld [vmem:[%s2300_s2 + $0x8] sm:$0xff]   ;;  %vm525_vm3 = vcmask 261120   ;;  %s1876_s25 = smov 64  }
  0x63   : > { %v404_v10 = vunpack.c.l.s4 %v1874_v9  ;;  %1503 = vmatprep.mubr.msk.bf16.mxu1 %vm1873_vm2, %v1872_v4  ;;  %1507 = vmatprep.subr.bf16.mxu0 %v1872_v4  ;;  %v505_v18 = vld [vmem:[#allocation2] sm:$0x1]  ;;  %vm431_vm4 = vcmask 130048   ;;  %v1875_v23 = vmov 1983009808   ;;  %s1877_s9 = smov 32  }
  0x64   : > { %1500 = vmatpush3.bf16.msra.mxu1 %v1652_v12  ;;  %v478_v24 = vunpack.c.l.s4 %v1875_v23  ;;  %v1431_v27 = vld [vmem:[%s2301_s3] ss:$0 sm:$0xff]  ;;  %v506_v50 = vld [vmem:[#allocation3] sm:$0x3]  ;;  %v1655_v62 = vld [vmem:[%s2300_s2 + $0x8] sm:$0xff]   ;;  %s1438_s24 = sshll.u32 %s1846_s12, 2 }
  0x65   : > { %v405_v15 = vunpack.c.0.s8 %v404_v10  ;;  %1501 = vmatprep.subr.bf16.mxu1 %v1872_v4  ;;  %v1654_v61 = vld [vmem:[%s2300_s2] sm:$0xff]   ;;  %vm618_vm5 = vcmask 253952   ;;  %s617_s27 = scalar_lea.vmem [#allocation4], %s1438_s24  ;;  %vm955_vm6 = vcmask 254976   ;;  %s1878_s16 = smov 96   ;;  %vm1123_vm7 = vcmask 1041409  }
  0x66   : > { %v479_v25 = vunpack.c.0.s8 %v478_v24  ;;  %vm1125_vm8 = vcmask 1042434   ;;  %vm1127_vm9 = vcmask 1043459   ;;  %vm1131_vm10 = vcmask 11264   ;;  %s1130_s17 = scalar_lea.vmem [#allocation6], %s1438_s24  ;;  %p1462_p1 = scmp.ne.s32.totalorder %s1846_s12, 1 }
  0x67   : > { %v2088_v17 = vsub.s32 %v405_v15, %v2075_v11  ;;  %vm1153_vm11 = vcmask (!%p1462_p1), 15360   ;;  %s2225_s12 = smov (!%p1462_p1), 0  }
  0x68   : > { %1502 = vmatpush3.bf16.msra.mxu1 %v1653_v16  ;;  %v2103_v29 = vsub.s32 %v479_v25, %v2075_v11  ;;  %v1656_v25 = vld [vmem:[%s2300_s2] sm:$0xff]  }
  0x69   : > { %v409_v19 = vrot.slane %v401_v13, %v2088_v17  ;;  %v416_v20 = vrot.slane %v402_v14, %v2088_v17  ;;  %1515 = vmatprep.subr.bf16.mxu1 %v1872_v4 }
  0x6b   : > { %v417_v21 = vcombine.low %v409_v19, %v416_v20  ;;  %1504 = vmatmul.mubr.msk.bf16.vlgmr.msra.gmra.mrb[0].mxu1 %vm525_vm3, %v505_v18 }
  0x6c   : > { %1519 = vmatprep.mubr.msk.bf16.mxu1 %vm1873_vm2, %v1872_v4  ;;  %1516 = vmatpush3.bf16.msra.mxu1 %v1656_v25 }
  0x6d   : > { %v424_v22 = vrot.slane %v417_v21, %v2088_v17  ;;  %1517 = vmatprep.subr.bf16.mxu1 %v1872_v4 }
  0x6f   : > { %1496 = vmatmul.mubr.msk.bf16.vlgmr.msra.gmra.mrb[0].mxu0 %vm431_vm4, %v424_v22 }
  0x70   : > { %1511 = vmatprep.mubr.msk.bf16.mxu0 %vm1873_vm2, %v1872_v4  ;;  %1508 = vmatpush3.bf16.msra.mxu0 %v1654_v61 }
  0x71   : > { %1509 = vmatprep.subr.bf16.mxu0 %v1872_v4 }
  0x74   : > { %1510 = vmatpush3.bf16.msra.mxu0 %v1655_v62 }
  0x75   : > { %1523 = vmatprep.subr.bf16.mxu0 %v1872_v4 }
 0x13e   : > { %v563_v26 = vpop.f32.mrb[0].mxu1 }
 0x13f   : > { %v1505_v28 = vpop.f32.mrb[1].mxu1 }
 0x140   : > { %v566_v30 = vpop.f32.mrb[2].mxu1 }
 0x141   : > { %v1506_v32 = vpop.f32.mrb[3].mxu1 }
 0x142   : > { %v469_v31 = vpop.f32.mrb[0].mxu0 }
 0x143   : > { %v470_v33 = vadd.f32 %v1431_v27, %v469_v31  ;;  %v1497_v34 = vpop.f32.mrb[1].mxu0 }
 0x144   : > { %v472_v35 = vpop.f32.mrb[2].mxu0 }
 0x145   : > { %v476_v36 = vcombine.high %v470_v33, %v470_v33  ;;  %v483_v37 = vrot.slane %v470_v33, %v2103_v29  ;;  %v1498_v38 = vpop.f32.mrb[3].mxu0 }
 0x147   : > { %v490_v39 = vrot.slane %v476_v36, %v2103_v29  ;;  %v491_v40 = vcombine.high %v483_v37, %v483_v37  ;;  %v497_v41 = vpack.c.bf16 %v483_v37, %v483_v37 }
 0x149   : > { %v492_v42 = vcombine.high %v490_v39, %v490_v39  ;;  %v498_v43 = vpack.c.bf16 %v491_v40, %v491_v40  ;;  %v499_v44 = vpack.c.bf16 %v490_v39, %v490_v39  ;;  %501 = vst [vmem:[#allocation5] sm:$0x1] %v497_v41 }
 0x14b   : > { %v500_v45 = vpack.c.bf16 %v492_v42, %v492_v42  ;;  %502 = vst [vmem:[#allocation5 + $0x1] sm:$0x1] %v498_v43  ;;  %503 = vst [vmem:[#allocation5 + $0x2] sm:$0x1] %v499_v44 }
 0x14d   : > { %504 = vst [vmem:[#allocation5 + $0x3] sm:$0x1] %v500_v45 }
 0x150   : > { %v511_v46 = vld [vmem:[#allocation5] sm:$0x1] }
 0x151   : > { %v512_v47 = vunpack.c.l.bf16 %v511_v46 }
 0x152   : > { %v625_v6 = vld [vmem:[#allocation5 + $0x1] sm:$0x1]  ;;  %v735_v33 = vld [vmem:[#allocation5 + $0x2] sm:$0x1] }
 0x153   : > { %v564_v48 = vadd.f32 %v563_v26, %v512_v47  ;;  %v626_v7 = vunpack.c.l.bf16 %v625_v6  ;;  %v1657_v26 = vld [vmem:[%s2300_s2 + $0x8] sm:$0xff]   ;;  %v736_v34 = vunpack.c.l.bf16 %v735_v33 }
 0x154   : > { %1518 = vmatpush3.bf16.msra.mxu1 %v1657_v26 }
 0x155   : > { %1662 = vtanh.f32 %v564_v48  ;;  %v1437_v51 = vmul.f32 -1.442695, %v564_v48  ;;  %1531 = vmatprep.subr.bf16.mxu1 %v1872_v4 }
 0x157   : > { %1664 = vpow2.f32 %v1437_v51  ;;  %v1659_v51 = vld [vmem:[%s2300_s2 + $0x8] sm:$0xff]  }
 0x15f   : > { %v1663_v49 = vpop.eup %1662 }
 0x160   : > { %582 = vrot.lane.b32.xlu0 %v1663_v49, %s1876_s25 }
 0x161   : > { %v1665_v52 = vpop.eup %1664 }
 0x162   : > { %v572_v53 = vadd.f32 1.0, %v1665_v52 }
 0x164   : > { %577 = vrot.lane.b32.xlu0 %v506_v50, %s1877_s9  ;;  %1666 = vrcp.f32 %v572_v53  ;;  %v1658_v50 = vld [vmem:[%s2300_s2] sm:$0xff]  }
 0x16e   : > { %v1667_v54 = vpop.eup %1666 }
 0x1d2   : > { %v583_v55 = vpop.permute.xlu0 %582 }
 0x1d3   : > { %v585_v56 = vmul.f32 %v1667_v54, %v583_v55 }
 0x1d5   : > { %587 = vrot.lane.b32.xlu1 %v585_v56, %s1877_s9 }
 0x1d6   : > { %v578_v57 = vpop.permute.xlu0 %577 }
 0x1d7   : > { %v580_v58 = vmul.f32 %v1667_v54, %v578_v57  ;;  %v845_v57 = vld [vmem:[#allocation5 + $0x3] sm:$0x1] }
 0x247   : > { %v588_v59 = vpop.permute.xlu1 %587 }
 0x248   : > { %v590_v60 = vadd.f32 %v588_v59, %v580_v58  ;;  %v846_v58 = vunpack.c.l.bf16 %v845_v57 }
 0x24a   : > { %1668 = vtanh.f32 %v590_v60 }
 0x254   : > { %v1669_v63 = vpop.eup %1668 }
 0x255   : > { %593 = vrot.lane.b32.xlu1 %v1669_v63, %s1876_s25 }
 0x2c7   : > { %v594_v0 = vpop.permute.xlu1 %593 }
 0x2c8   : > { %v596_v1 = vmul.f32 %v1667_v54, %v594_v0 }
 0x2ca   : > { %v2119_v2 = vpack.c.bf16 %v596_v1, %v596_v1 }
 0x2cc   : > { %627 = vrot.lane.b32.xlu0 %v2119_v2, %s1877_s9 }
 0x33e   : > { %v628_v5 = vpop.permute.xlu0 %627 }
 0x33f   : > { %1512 = vmatmul.mubr.msk.bf16.vlgmr.msra.gmra.mrb[4].mxu0 %vm525_vm3, %v628_v5 }
 0x340   : > { %1527 = vmatprep.mubr.msk.bf16.mxu0 %vm1873_vm2, %v1872_v4  ;;  %1524 = vmatpush3.bf16.msra.mxu0 %v1658_v50 }
 0x341   : > { %1525 = vmatprep.subr.bf16.mxu0 %v1872_v4 }
 0x344   : > { %1526 = vmatpush3.bf16.msra.mxu0 %v1659_v51 }
 0x412   : > { %v678_v8 = vpop.f32.mrb[4].mxu0 }
 0x413   : > { %v679_v9 = vadd.f32 %v678_v8, %v626_v7  ;;  %v1513_v10 = vpop.f32.mrb[5].mxu0 }
 0x414   : > { %v681_v12 = vpop.f32.mrb[6].mxu0 }
 0x415   : > { %1670 = vtanh.f32 %v679_v9  ;;  %v1514_v13 = vpop.f32.mrb[7].mxu0  ;;  %v1442_v15 = vmul.f32 -1.442695, %v679_v9  ;;  %v606_v9 = vrot.slane %v2119_v2, %v2088_v17 }
 0x417   : > { %1672 = vpow2.f32 %v1442_v15  ;;  %v613_v13 = vrot.slane %v606_v9, %v2088_v17 }
 0x41f   : > { %v1671_v14 = vpop.eup %1670 }
 0x420   : > { %693 = vrot.lane.b32.xlu1 %v1671_v14, %s1876_s25 }
 0x421   : > { %v1673_v16 = vpop.eup %1672 }
 0x422   : > { %v687_v18 = vadd.f32 1.0, %v1673_v16 }
 0x424   : > { %1674 = vrcp.f32 %v687_v18 }
 0x42e   : > { %v1675_v19 = vpop.eup %1674 }
 0x42f   : > { %v691_v22 = vmul.f32 %v1675_v19, %v590_v60 }
 0x492   : > { %v694_v20 = vpop.permute.xlu1 %693 }
 0x493   : > { %v696_v21 = vmul.f32 %v1675_v19, %v694_v20 }
 0x495   : > { %698 = vrot.lane.b32.xlu0 %v696_v21, %s1877_s9 }
 0x507   : > { %v699_v23 = vpop.permute.xlu0 %698 }
 0x508   : > { %v701_v24 = vadd.f32 %v699_v23, %v691_v22  ;;  %v1660_v23 = vld [vmem:[%s2302_s4] sm:$0xff]  }
 0x50a   : > { %1676 = vtanh.f32 %v701_v24 }
 0x514   : > { %v1677_v27 = vpop.eup %1676 }
 0x515   : > { %704 = vrot.lane.b32.xlu1 %v1677_v27, %s1876_s25 }
 0x587   : > { %v705_v28 = vpop.permute.xlu1 %704 }
 0x588   : > { %v707_v30 = vmul.f32 %v1675_v19, %v705_v28 }
 0x58a   : > { %v2137_v31 = vpack.c.bf16 %v707_v30, %v707_v30 }
 0x58c   : > { %737 = vrot.lane.b32.xlu0 %v2137_v31, %s1877_s9  ;;  %v717_v20 = vrot.slane %v2137_v31, %v2088_v17 }
 0x58e   : > { %v724_v22 = vrot.slane %v717_v20, %v2088_v17 }
 0x5fe   : > { %v738_v32 = vpop.permute.xlu0 %737 }
 0x5ff   : > { %1520 = vmatmul.mubr.msk.bf16.vlgmr.msra.gmra.mrb[4].mxu1 %vm525_vm3, %v738_v32 }
 0x600   : > { %1535 = vmatprep.mubr.msk.bf16.mxu1 %vm1873_vm2, %v1872_v4  ;;  %1532 = vmatpush3.bf16.msra.mxu1 %v1660_v23 }
 0x601   : > { %1533 = vmatprep.subr.bf16.mxu1 %v1872_v4 }
 0x6d2   : > { %v788_v35 = vpop.f32.mrb[4].mxu1 }
 0x6d3   : > { %v789_v36 = vadd.f32 %v788_v35, %v736_v34  ;;  %v1521_v37 = vpop.f32.mrb[5].mxu1 }
 0x6d4   : > { %v791_v38 = vpop.f32.mrb[6].mxu1 }
 0x6d5   : > { %1678 = vtanh.f32 %v789_v36  ;;  %v1522_v39 = vpop.f32.mrb[7].mxu1  ;;  %v1448_v41 = vmul.f32 -1.442695, %v789_v36 }
 0x6d7   : > { %1680 = vpow2.f32 %v1448_v41 }
 0x6df   : > { %v1679_v40 = vpop.eup %1678 }
 0x6e0   : > { %803 = vrot.lane.b32.xlu1 %v1679_v40, %s1876_s25 }
 0x6e1   : > { %v1681_v42 = vpop.eup %1680 }
 0x6e2   : > { %v797_v43 = vadd.f32 1.0, %v1681_v42  ;;  %v1457_v42 = vld [vmem:[%s2303_s5] ss:$0 sm:$0xff] }
 0x6e4   : > { %1682 = vrcp.f32 %v797_v43 }
 0x6ee   : > { %v1683_v44 = vpop.eup %1682 }
 0x6ef   : > { %v801_v47 = vmul.f32 %v1683_v44, %v701_v24  ;;  %v1661_v24 = vld [vmem:[%s2302_s4 + $0x8] sm:$0xff]  }
 0x6f0   : > { %1534 = vmatpush3.bf16.msra.mxu1 %v1661_v24 }
 0x752   : > { %v804_v45 = vpop.permute.xlu1 %803 }
 0x753   : > { %v806_v46 = vmul.f32 %v1683_v44, %v804_v45 }
 0x755   : > { %808 = vrot.lane.b32.xlu0 %v806_v46, %s1877_s9 }
 0x7c7   : > { %v809_v48 = vpop.permute.xlu0 %808 }
 0x7c8   : > { %v811_v49 = vadd.f32 %v809_v48, %v801_v47 }
 0x7ca   : > { %1684 = vtanh.f32 %v811_v49 }
 0x7d4   : > { %v1685_v52 = vpop.eup %1684 }
 0x7d5   : > { %814 = vrot.lane.b32.xlu1 %v1685_v52, %s1876_s25 }
 0x847   : > { %v815_v53 = vpop.permute.xlu1 %814 }
 0x848   : > { %v817_v54 = vmul.f32 %v1683_v44, %v815_v53 }
 0x84a   : > { %v818_v55 = vpack.c.bf16 %v817_v54, %v817_v54 }
 0x84c   : > { %847 = vrot.lane.b32.xlu0 %v818_v55, %s1877_s9  ;;  %v827_v12 = vrot.slane %v818_v55, %v2088_v17 }
 0x84e   : > { %v834_v14 = vrot.slane %v827_v12, %v2088_v17 }
 0x8be   : > { %v848_v56 = vpop.permute.xlu0 %847 }
 0x8bf   : > { %1528 = vmatmul.mubr.msk.bf16.vlgmr.msra.gmra.mrb[8].mxu0 %vm525_vm3, %v848_v56 }
 0x992   : > { %v898_v59 = vpop.f32.mrb[8].mxu0 }
 0x993   : > { %v899_v60 = vadd.f32 %v898_v59, %v846_v58  ;;  %v1529_v61 = vpop.f32.mrb[9].mxu0 }
 0x994   : > { %v901_v62 = vpop.f32.mrb[10].mxu0 }
 0x995   : > { %1686 = vtanh.f32 %v899_v60  ;;  %v1530_v63 = vpop.f32.mrb[11].mxu0  ;;  %v1454_v1 = vmul.f32 -1.442695, %v899_v60 }
 0x997   : > { %1688 = vpow2.f32 %v1454_v1 }
 0x99f   : > { %v1687_v0 = vpop.eup %1686 }
 0x9a0   : > { %913 = vrot.lane.b32.xlu1 %v1687_v0, %s1876_s25 }
 0x9a1   : > { %v1689_v5 = vpop.eup %1688 }
 0x9a2   : > { %v907_v6 = vadd.f32 1.0, %v1689_v5 }
 0x9a4   : > { %1690 = vrcp.f32 %v907_v6 }
 0x9ae   : > { %v1691_v7 = vpop.eup %1690 }
 0x9af   : > { %v911_v15 = vmul.f32 %v1691_v7, %v811_v49  ;;  %v1461_v49 = vld [vmem:[%s2304_s6] ss:$0 sm:$0xff] }
 0xa12   : > { %v914_v8 = vpop.permute.xlu1 %913 }
 0xa13   : > { %v916_v10 = vmul.f32 %v1691_v7, %v914_v8 }
 0xa15   : > { %918 = vrot.lane.b32.xlu0 %v916_v10, %s1877_s9 }
 0xa19   : > { %614 = vrot.lane.b32.xlu0 %v613_v13, %s1877_s9 }
 0xa1d   : > { %835 = vrot.lane.b32.xlu0 %v834_v14, %s1877_s9 }
 0xa87   : > { %v919_v16 = vpop.permute.xlu0 %918 }
 0xa88   : > { %v2166_v18 = vadd.f32 %v919_v16, %v911_v15 }
 0xa8a   : > { %1692 = vtanh.f32 %v2166_v18 }
 0xa8b   : > { %v615_v2 = vpop.permute.xlu0 %614 }
 0xa8c   : > { %619 = vst.msk [vmem:[%s617_s27] sm:$0x1] %vm618_vm5, %v615_v2 }
 0xa8f   : > { %v836_v19 = vpop.permute.xlu0 %835 }
 0xa90   : > { %1450 = vst.msk [vmem:[%s617_s27 + $0x2] sm:$0x1] %vm618_vm5, %v836_v19 }
 0xa93   : > { %v957_v4 = vld [vmem:[%s617_s27] sm:$0x1] }
 0xa94   : > { %v1693_v21 = vpop.eup %1692 }
 0xa95   : > { %924 = vrot.lane.b32.xlu1 %v1693_v21, %s1876_s25 }
 0xa97   : > { %v959_v35 = vld [vmem:[%s617_s27 + $0x2] sm:$0x1] }
 0xa99   : > { %725 = vrot.lane.b32.xlu1 %v724_v22, %s1877_s9 }
 0xb07   : > { %v925_v25 = vpop.permute.xlu1 %924 }
 0xb08   : > { %v927_v26 = vmul.f32 %v1691_v7, %v925_v25 }
 0xb0a   : > { %v928_v27 = vpack.c.bf16 %v927_v26, %v927_v26 }
 0xb0b   : > { %v726_v28 = vpop.permute.xlu1 %725 }
 0xb0c   : > { %v937_v30 = vrot.slane %v928_v27, %v2088_v17  ;;  %1444 = vst.msk [vmem:[%s617_s27 + $0x1] sm:$0x1] %vm618_vm5, %v726_v28 }
 0xb0e   : > { %v944_v31 = vrot.slane %v937_v30, %v2088_v17 }
 0xb10   : > { %945 = vrot.lane.b32.xlu1 %v944_v31, %s1877_s9 }
 0xb13   : > { %v958_v33 = vld [vmem:[%s617_s27 + $0x1] sm:$0x1] }
 0xb14   : > { %v976_v34 = vcombine.low %v957_v4, %v958_v33 }
 0xb16   : > { %v984_v38 = vrot.slane %v976_v34, %v2088_v17 }
 0xb82   : > { %v946_v32 = vpop.permute.xlu1 %945 }
 0xb83   : > { %1456 = vst.msk [vmem:[%s617_s27 + $0x3] sm:$0x1] %vm618_vm5, %v946_v32  ;;  %950 = vst.msk [vmem:[#allocation2] sm:$0x1] %vm618_vm5, %v946_v32 }
 0xb8a   : > { %v960_v36 = vld [vmem:[%s617_s27 + $0x3] sm:$0x1] }
 0xb8b   : > { %v977_v37 = vcombine.low %v959_v35, %v960_v36 }
 0xb8d   : > { %v991_v39 = vrot.slane %v977_v37, %v2088_v17 }
 0xb8f   : > { %v992_v40 = vcombine.low %v984_v38, %v991_v39 }
 0xb91   : > { %v999_v41 = vrot.slane %v992_v40, %v2088_v17 }
 0xb93   : > { %1536 = vmatmul.mubr.msk.bf16.vlgmr.msra.gmra.mrb[8].mxu1 %vm525_vm3, %v999_v41 }
 0xc66   : > { %v1049_v43 = vpop.f32.mrb[8].mxu1 }
 0xc67   : > { %v1050_v44 = vadd.f32 %v1457_v42, %v1049_v43  ;;  %v1537_v45 = vpop.f32.mrb[9].mxu1 }
 0xc68   : > { %v1052_v46 = vpop.f32.mrb[10].mxu1 }
 0xc69   : > { %1694 = vtanh.f32 %v1050_v44  ;;  %v1538_v47 = vpop.f32.mrb[11].mxu1 }
 0xc73   : > { %v1695_v48 = vpop.eup %1694 }
 0xc74   : > { %v1064_v50 = vrot.slane %v1695_v48, %v2103_v29  ;;  %v1057_v17 = vcombine.high %v1695_v48, %v1695_v48 }
 0xc76   : > { %v1085_v51 = vmul.f32 %v1461_v49, %v1064_v50  ;;  %v1072_v52 = vcombine.high %v1064_v50, %v1064_v50  ;;  %v1071_v53 = vrot.slane %v1057_v17, %v2103_v29  ;;  %v1106_v29 = vand.u32 127, %v406_v3 }
 0xc78   : > { %v1089_v54 = vsel %vm955_vm6, %v1085_v51, 0.0  ;;  %v1086_v55 = vmul.f32 %v1461_v49, %v1072_v52  ;;  %v1087_v56 = vmul.f32 %v1461_v49, %v1071_v53  ;;  %v1073_v57 = vcombine.high %v1071_v53, %v1071_v53 }
 0xc79   : > { %1090 = vadd.xlane.f32.xlu0 %v1089_v54  ;;  %v1109_v63 = vsub.s32 %v1106_v29, %v2075_v11 }
 0xc7a   : > { %v1092_v58 = vsel %vm955_vm6, %v1086_v55, 0.0  ;;  %v1095_v59 = vsel %vm955_vm6, %v1087_v56, 0.0  ;;  %v1088_v60 = vmul.f32 %v1461_v49, %v1073_v57 }
 0xc7b   : > { %1093 = vadd.xlane.f32.xlu1 %v1092_v58  ;;  %v1856_v58 = vmov (!%p1462_p1), 0.0  }
 0xc7c   : > { %v1098_v61 = vsel %vm955_vm6, %v1088_v60, 0.0 }
 0xc7d   : > { %1096 = vadd.xlane.f32.xlu0 %v1095_v59 }
 0xc81   : > { %1099 = vadd.xlane.f32.xlu0 %v1098_v61 }
 0xc8c   : > { %952 = vrot.lane.b32.xlu1 %v2166_v18, %s1878_s16 }
 0xd06   : > { %v1091_v62 = vpop.xlane.xlu0 %1090 }
 0xd07   : > { %v1110_v6 = vrot.slane %v1091_v62, %v1109_v63 }
 0xd08   : > { %v1094_v0 = vpop.xlane.xlu1 %1093 }
 0xd09   : > { %v1114_v1 = vrot.slane %v1094_v0, %v1109_v63 }
 0xd0a   : > { %v1097_v5 = vpop.xlane.xlu0 %1096 }
 0xd0b   : > { %v1118_v7 = vrot.slane %v1097_v5, %v1109_v63  ;;  %v1124_v9 = vsel %vm1123_vm7, %v1114_v1, %v1110_v6 }
 0xd0c   : > { %v953_v8 = vpop.permute.xlu1 %952  ;;  %1136 = sbr.rel (%p1462_p1) target bundleno = 3772 (0xebc), region = 72 }
 0xd0d   : > { %956 = vst.msk [vmem:[#allocation3] sm:$0x3] %vm955_vm6, %v953_v8  ;;  %v1126_v3 = vsel %vm1125_vm8, %v1118_v7, %v1124_v9 }
 0xd0e   : > { %v1100_v10 = vpop.xlane.xlu0 %1099 }
 0xd0f   : > { %v1122_v12 = vrot.slane %v1100_v10, %v1109_v63 }
 0xd11   : > { %v1128_v13 = vsel %vm1127_vm9, %v1122_v12, %v1126_v3 }
 0xd12   : > { %1132 = vst.msk [vmem:[%s1130_s17] sm:$0xf] %vm1131_vm10, %v1128_v13 }
 0xd19   : > { %v1137_v14 = vld [vmem:[#allocation6] sm:$0xf]  ;;  %v1138_v15 = vld [vmem:[#allocation6 + $0x4] sm:$0xf] }
 0xd1a   : > { %v1139_v16 = vsel %vm1131_vm10, %v1137_v14, -inf  ;;  %v1146_v18 = vsel %vm1131_vm10, %v1138_v15, -inf }
 0xd1b   : > { %v1140_v2 = vrot.slane %v1139_v16, 4  ;;  %v1147_v19 = vrot.slane %v1146_v18, 4 }
 0xd1d   : > { %v1141_v20 = vmax.f32 %v1139_v16, %v1140_v2  ;;  %v1148_v21 = vmax.f32 %v1146_v18, %v1147_v19 }
 0xd1f   : > { %v1142_v22 = vrot.slane %v1141_v20, 2  ;;  %v1149_v23 = vrot.slane %v1148_v21, 2 }
 0xd21   : > { %v1143_v24 = vmax.f32 %v1141_v20, %v1142_v22  ;;  %v1150_v25 = vmax.f32 %v1148_v21, %v1149_v23 }
 0xd23   : > { %v1144_v26 = vrot.slane %v1143_v24, 1  ;;  %v1151_v27 = vrot.slane %v1150_v25, 1 }
 0xd25   : > { %v1145_v28 = vmax.f32 %v1143_v24, %v1144_v26  ;;  %v1152_v30 = vmax.f32 %v1150_v25, %v1151_v27 }
 0xd27   : > { %v1154_v31 = vsel %vm1153_vm11, %v1145_v28, -inf  ;;  %v1155_v32 = vsel %vm1153_vm11, %v1152_v30, -inf }
 0xd28   : > { %v1156_v33 = vmax.f32 %v1154_v31, %v1155_v32 }
 0xd2a   : > { %v1157_v4 = vsub.f32 %v1137_v14, %v1156_v33  ;;  %v1158_v34 = vsub.f32 %v1138_v15, %v1156_v33 }
 0xd2c   : > { %v1159_v35 = vmul.f32 1.442695, %v1157_v4  ;;  %v1161_v36 = vmul.f32 1.442695, %v1158_v34 }
 0xd2e   : > { %1696 = vpow2.f32 %v1159_v35 }
 0xd2f   : > { %1698 = vpow2.f32 %v1161_v36 }
 0xd38   : > { %v1697_v37 = vpop.eup %1696 }
 0xd39   : > { %v1699_v38 = vpop.eup %1698  ;;  %v1163_v39 = vsel %vm1131_vm10, %v1697_v37, 0.0 }
 0xd3a   : > { %v1164_v40 = vrot.slane %v1163_v39, 4  ;;  %v1170_v41 = vsel %vm1131_vm10, %v1699_v38, 0.0 }
 0xd3b   : > { %v1171_v42 = vrot.slane %v1170_v41, 4 }
 0xd3c   : > { %v1165_v43 = vadd.f32 %v1164_v40, %v1163_v39 }
 0xd3d   : > { %v1172_v44 = vadd.f32 %v1171_v42, %v1170_v41 }
 0xd3e   : > { %v1166_v45 = vrot.slane %v1165_v43, 2 }
 0xd3f   : > { %v1173_v46 = vrot.slane %v1172_v44, 2 }
 0xd40   : > { %v1167_v47 = vadd.f32 %v1166_v45, %v1165_v43 }
 0xd41   : > { %v1174_v48 = vadd.f32 %v1173_v46, %v1172_v44 }
 0xd42   : > { %v1168_v49 = vrot.slane %v1167_v47, 1 }
 0xd43   : > { %v1175_v50 = vrot.slane %v1174_v48, 1 }
 0xd44   : > { %v1169_v17 = vadd.f32 %v1168_v49, %v1167_v47 }
 0xd45   : > { %v1176_v51 = vadd.f32 %v1175_v50, %v1174_v48 }
 0xd46   : > { %v1177_v52 = vsel %vm1153_vm11, %v1169_v17, 0.0 }
 0xd47   : > { %v1178_v53 = vsel %vm1153_vm11, %v1176_v51, 0.0 }
 0xd48   : > { %v1179_v54 = vadd.f32 %v1178_v53, %v1177_v52 }
 0xd4a   : > { %1700 = vrcp.f32 %v1179_v54 }
 0xd54   : > { %v1701_v55 = vpop.eup %1700 }
 0xd55   : > { %v1181_v56 = vmul.f32 %v1701_v55, %v1697_v37  ;;  %v1182_v57 = vmul.f32 %v1701_v55, %v1699_v38 }
 0xd57   : > { %1183 = vst.msk [vmem:[#allocation6] sm:$0xf] %vm1131_vm10, %v1181_v56  ;;  %1184 = vst.msk [vmem:[#allocation6 + $0x4] sm:$0xf] %vm1131_vm10, %v1182_v57 }
 0xd58 LB: >> { %v1206_v59 = vsub.s32 0, %v2075_v11  ;;  %v1220_v60 = vsub.s32 2, %v2075_v11  ;;  %s1463_s18 = sshll.u32 %s1862_s12, 2  ;;  %v1213_v61 = vsub.s32 1, %v2075_v11  ;;  %v1227_v29 = vsub.s32 3, %v2075_v11  ;;  %s1190_s12 = sadd.s32 1, %s1862_s12   ;;  %s1862_s12 = sphi %s2225_s12, %s1190_s12   ;;  %v1858_v58 = vphi %v1856_v58, %v1857_v58  }
 0xd59   : >> { %s1193_s20 = scalar_lea.vmem [#allocation6], %s1463_s18  ;;  %s1195_s23 = scalar_lea.vmem [#allocation4], %s1463_s18 }
 0xd5a   : >> { %v1196_v6 = vld [vmem:[%s1195_s23] sm:$0x1]  ;;  %v1198_v7 = vld [vmem:[%s1195_s23 + $0x2] sm:$0x1]  ;;  %v1197_v8 = vld [vmem:[%s1195_s23 + $0x1] sm:$0x1] }
 0xd5b   : >> { %v1199_v9 = vld [vmem:[%s1195_s23 + $0x3] sm:$0x1]  ;;  %v1200_v10 = vunpack.c.l.bf16 %v1196_v6  ;;  %v1202_v13 = vunpack.c.l.bf16 %v1198_v7  ;;  %v1201_v14 = vunpack.c.l.bf16 %v1197_v8  ;;  %p1187_p4 = scmp.ge.s32.totalorder %s1190_s12, 2  }
 0xd5c   : >> { %v1203_v15 = vunpack.c.l.bf16 %v1199_v9  ;;  %v1702_v31 = vld [vmem:[%s2305_s7] sm:$0xff] (%p1187_p4)   ;;  %v1879_v32 = vmov (%p1187_p4), 0.0   ;;  %v1703_v33 = vld [vmem:[%s2305_s7 + $0x8] sm:$0xff] (%p1187_p4)   ;;  %vm1880_vm12 = vmmov (%p1187_p4), 0   ;;  %vm1311_vm13 = vcmask (%p1187_p4), 58368  }
 0xd5d   : > { %1539 = vmatprep.subr.bf16.mxu0 (%p1187_p4), %v1879_v32  ;;  %1543 = vmatprep.mubr.msk.bf16.mxu0 (%p1187_p4), %vm1880_vm12, %v1879_v32  ;;  %v1464_v11 = vld [vmem:[%s2306_s8] ss:$0 sm:$0xff] (%p1187_p4) }
 0xd5e   : >> { %v1194_v62 = vld [vmem:[%s1193_s20] sm:$0xf]  ;;  %1540 = vmatpush3.bf16.msra.mxu0 (%p1187_p4), %v1702_v31 }
 0xd5f   : >> { %v1207_v63 = vrot.slane %v1194_v62, %v1206_v59  ;;  %v1221_v0 = vrot.slane %v1194_v62, %v1220_v60  ;;  %v1214_v1 = vrot.slane %v1194_v62, %v1213_v61  ;;  %v1228_v5 = vrot.slane %v1194_v62, %v1227_v29  ;;  %1541 = vmatprep.subr.bf16.mxu0 (%p1187_p4), %v1879_v32 }
 0xd61   : >> { %1209 = vbcast.lane.b32.xlu0 %v1207_v63, 256  ;;  %1223 = vbcast.lane.b32.xlu1 %v1221_v0, 256 }
 0xd62   : > { %1542 = vmatpush3.bf16.msra.mxu0 (%p1187_p4), %v1703_v33 }
 0xd65   : >> { %1216 = vbcast.lane.b32.xlu0 %v1214_v1, 256  ;;  %1230 = vbcast.lane.b32.xlu1 %v1228_v5, 256 }
 0xdd3   : >> { %v1210_v12 = vpop.permute.xlu0 %1209  ;;  %v1224_v3 = vpop.permute.xlu1 %1223 }
 0xdd4   : >> { %v1232_v16 = vmul.f32 %v1210_v12, %v1200_v10  ;;  %v1234_v19 = vmul.f32 %v1224_v3, %v1202_v13 }
 0xdd6   : >> { %v1236_v22 = vsel %vm955_vm6, %v1232_v16, 0.0  ;;  %v1239_v25 = vsel %vm955_vm6, %v1234_v19, 0.0 }
 0xdd7   : >> { %v1217_v18 = vpop.permute.xlu0 %1216  ;;  %v1231_v2 = vpop.permute.xlu1 %1230 }
 0xdd8   : >> { %v1233_v20 = vmul.f32 %v1217_v18, %v1201_v14  ;;  %v1235_v21 = vmul.f32 %v1231_v2, %v1203_v15 }
 0xdda   : >> { %v1237_v23 = vsel %vm955_vm6, %v1233_v20, 0.0  ;;  %v1241_v26 = vsel %vm955_vm6, %v1235_v21, 0.0 }
 0xddb   : >> { %v1238_v24 = vadd.f32 %v1237_v23, %v1236_v22 }
 0xddd   : >> { %v1240_v27 = vadd.f32 %v1239_v25, %v1238_v24  ;;  %1189 = sbr.rel (!%p1187_p4) target bundleno = 3416 (0xd58), region = 123 }
 0xddf   : >> { %v1242_v28 = vadd.f32 %v1241_v26, %v1240_v27 }
 0xde1   : >> { %v1243_v30 = vadd.f32 %v1858_v58, %v1242_v28  }
 0xde3   : >> { %v1857_v58 = vmov %v1243_v30   ;;  %v1244_v4 = vpack.c.bf16 (%p1187_p4), %v1243_v30, %v1243_v30 }
 0xde5   : > { %1544 = vmatmul.mubr.msk.bf16.vlgmr.msra.gmra.mrb[0].mxu0 %vm525_vm3, %v1244_v4 }
 0xeb8   : > { %v1305_v34 = vpop.f32.mrb[0].mxu0 }
 0xeb9   : > { %v1306_v35 = vadd.f32 %v1464_v11, %v1305_v34  ;;  %v1545_v36 = vpop.f32.mrb[1].mxu0 }
 0xeba   : > { %v1308_v37 = vpop.f32.mrb[2].mxu0 }
 0xebb   : > { %1312 = vst.msk [vmem:[#allocation12] sm:$0x3] %vm1311_vm13, %v1306_v35  ;;  %v1546_v38 = vpop.f32.mrb[3].mxu0 }
 0xebc PF: > { %s2323_s25 = sadd.s32 4294967295, %s1854_s14   ;;  %s1881_s19 = smov [#allocation12]  }
 0xebd   : > { %p2254_p5 = scmp.eq.s32.totalorder %s2323_s25, 1  ;;  %s1322_s28 = sshll.u32 %s1881_s19, 4  ;;  %s1323_s28 = int_to_ptr.vmem [resolvable:$true] %s1322_s28 }
 0xebe   : > { %s1762_s16 = scalar_lea.vmem %s1323_s28, 32  ;;  %p1769_p11 = scmp.lt.s32.totalorder %s1323_s28, %s1323_s28 }
 0xebf   : > { %p1763_p8 = scmp.ne.s32.totalorder %s1323_s28, %s1762_s16  ;;  %p1770_p13 = scmp.lt.s32.totalorder %s1762_s16, %s1762_s16 }
 0xec1   : > { %p1764_p9 = pnand %p1763_p8, %p2254_p5  ;;  %p1771_p2 = por %p1770_p13, %p1769_p11 }
 0xec3   : > { %p1765_p10 = pneg %p1764_p9 }
 0xec5   : > { %p1772_p3 = pnand %p1771_p2, %p1765_p10 }
 0xec7   : > { %1775 = shalt.err (!%p1772_p3)
}
 0xec8   : > { %s2325_s18 = sld [smem:[#allocation16_spill]] }
 0xece   : > { %s1776_s20 = scalar_lea.hbm %s2325_s18, 32 }
 0xecf   : > { %p1777_p12 = scmp.ne.s32.totalorder %s2325_s18, %s1776_s20  ;;  %p1782_p7 = scmp.lt.u32.totalorder %s1776_s20, %s2325_s18 }
 0xed1   : > { %p1778_p0 = pnand %p1777_p12, %p2254_p5 }
 0xed3   : > { %p1779_p6 = pneg %p1778_p0 }
 0xed5   : > { %p1784_p1 = pnand %p1782_p7, %p1779_p6 }
 0xed7   : > { %1787 = shalt.err (!%p1784_p1)
}
 0xed8   : > { %1554 = dma.vmem_to_hbm [thread:$0]  (%p2254_p5), %s1323_s28, 32, %s2325_s18, [#allocation9]  }
 0xed9   : > { %1829 = dma.done.wait (%p2254_p5), [#allocation9], 32  }
 0xeda   : > { %1831 = vsyncadd (%p2254_p5), [#allocation9], 4294967264 }
 0xedb PF: > { %s24_s14 = sadd.s32 1, %s1854_s14   ;;  %s2326_s30 = smov %s1838_s10 }
 0xedc   : > { %p21_p4 = scmp.ge.s32.totalorder %s24_s14, 4   ;;  %s2327_s10 = smov %s1842_s11 }
 0xedd   : > { %s2328_s11 = smov %s2017_s15  ;;  %s2329_s12 = smov %s1850_s13 }
 0xede   : > { %s2330_s13 = smov %s2332_s22  ;;  %23 = sbr.rel (!%p21_p4) target bundleno = 8 (0x8), region = 134 }
 0xee5   :  { %1335 = vsyncpa [#allocation8], 1 }
 0xee6   :  { %1337 = vsyncpa [#allocation8 + $0x1], 1 }
 0xee7   :  { %1338 = vsyncpa [#allocation11], 1 }
 0xee8   :  { %1339 = vsyncpa [#allocation9], 1 }
 0xee9   :  { %1341 = vsyncpa [#allocation9 + $0x1], 1 }

</bundles_post_ra>
